<compile_context>
chip_gen: v7x
topology: tpu7x:2x2x1
jax: 0.10.0
libtpu: 0.0.40
codegen_flags: <defaults>
</compile_context>

<pallas_src>
import functools
import inspect
import math

import jax
import jax.numpy as jnp
from jax.experimental import pallas as pl
from jax.experimental.pallas import tpu as pltpu


def _supports_single_buffered_weights():
    if not hasattr(pl, "Buffered"):
        return False
    try:
        return "pipeline_mode" in inspect.signature(pl.BlockSpec).parameters
    except (TypeError, ValueError):
        return False


_BUFFERED_OK = _supports_single_buffered_weights()


def _vmem_capacity_bytes():
    try:
        info = pltpu.get_tpu_info()
        return int(getattr(info, "vmem_capacity_bytes", 64 * 2 ** 20))
    except Exception:
        return 64 * 2 ** 20


def _pick_q_tile(S, vmem_cap):
    """256 on 128-MiB chips (v5e/v6e), 128 on v7x; otherwise the largest divisor of S
    that is a multiple of 8. Full-S only for tiny / indivisible sequences."""
    prefer = 256 if vmem_cap >= 96 * 2 ** 20 else 128
    for t in (prefer, 128, 64, 32, 16, 8):
        if t <= S and S % t == 0:
            return t
    start = min(S, 256)
    start -= start % 8
    for t in range(start, 7, -8):
        if S % t == 0:
            return t
    return S


def _encoder_layer_kernel(xq_ref, xkv_ref, mask_ref,
                          wq_ref, bq_ref, wk_ref, bk_ref, wv_ref, bv_ref,
                          woh_ref, bo_ref, g1_ref, be1_ref,
                          w1_ref, b1_ref, w2_ref, b2_ref, g2_ref, be2_ref,
                          *refs, num_heads, eps=1e-5):
    # refs = (out_ref[, attn_ref], kh_scratch, vh_scratch)
    kh_sc, vh_sc = refs[-2], refs[-1]
    out_ref = refs[0]
    attn_ref = refs[1] if len(refs) == 4 else None

    qi = pl.program_id(1)

    xq = xq_ref[0]                        # (Tq, D) f32 — query rows / residual
    Tq, D = xq.shape
    H = num_heads
    dk = D // H
    S = kh_sc.shape[1]
    scale = jnp.float32(1.0 / math.sqrt(dk))

    # ---- K/V projection + head split: ONCE per batch, cached bf16 in VMEM ----
    @pl.when(qi == 0)
    def _fill_kv_cache():
        xkv_b = xkv_ref[0].astype(jnp.bfloat16)                              # (S, D)
        k = jnp.dot(xkv_b, wk_ref[...], preferred_element_type=jnp.float32) + bk_ref[...]
        v = jnp.dot(xkv_b, wv_ref[...], preferred_element_type=jnp.float32) + bv_ref[...]
        kh_sc[...] = jnp.transpose(k.reshape(S, H, dk), (1, 0, 2)).astype(jnp.bfloat16)
        vh_sc[...] = jnp.transpose(v.reshape(S, H, dk), (1, 0, 2)).astype(jnp.bfloat16)

    # ---- Q projection for this query tile (1/sqrt(dk) folded into Q) ----
    xq_b = xq.astype(jnp.bfloat16)
    q = jnp.dot(xq_b, wq_ref[...], preferred_element_type=jnp.float32) + bq_ref[...]
    q = q * scale
    qh = jnp.transpose(q.reshape(Tq, H, dk), (1, 0, 2)).astype(jnp.bfloat16)

    # ---- batched attention scores against the cached K (no explicit K^T) ----
    scores = jnp.einsum("hqd,hkd->hqk", qh, kh_sc[...],
                        preferred_element_type=jnp.float32)                  # (H, Tq, S)
    # Additive -1e9 bias (equivalent to where-replacement after softmax).
    bias = jnp.where(mask_ref[...].reshape(1, 1, S) > 0,
                     jnp.float32(0.0), jnp.float32(-1e9))
    scores = scores + bias

    scores = scores - jnp.max(scores, axis=-1, keepdims=True)
    p = jnp.exp(scores)
    denom = jnp.sum(p, axis=-1, keepdims=True)

    if attn_ref is not None:
        attn = p / denom                           # exact: exported rows sum to 1
        attn_ref[0] = attn.astype(attn_ref.dtype)
    else:
        attn = p * pl.reciprocal(denom, approx=True)   # EUP slot, context path only

    # ---- context; head merge folded into the Wo contraction (no ctx relayout) ----
    ctx = jnp.einsum("hqk,hkd->hqd", attn.astype(jnp.bfloat16), vh_sc[...],
                     preferred_element_type=jnp.float32)                     # (H, Tq, dk)
    per_head = jax.lax.dot_general(
        ctx.astype(jnp.bfloat16), woh_ref[...],
        dimension_numbers=(((2,), (1,)), ((0,), (0,))),
        preferred_element_type=jnp.float32)                                  # (H, Tq, D)
    attn_out = jnp.sum(per_head, axis=0) + bo_ref[...]

    def layer_norm(z, g_ref, b_ref):
        mu = jnp.mean(z, axis=-1, keepdims=True)
        var = jnp.mean((z - mu) ** 2, axis=-1, keepdims=True)
        return (z - mu) * jax.lax.rsqrt(var + eps) * g_ref[...] + b_ref[...]

    y1 = layer_norm(attn_out + xq, g1_ref, be1_ref)                          # (Tq, D)

    # ---- position-wise FFN, relu fused into the consumer, bf16 MXU operands ----
    h1 = jnp.maximum(
        jnp.dot(y1.astype(jnp.bfloat16), w1_ref[...],
                preferred_element_type=jnp.float32) + b1_ref[...], 0.0)
    ff = jnp.dot(h1.astype(jnp.bfloat16), w2_ref[...],
                 preferred_element_type=jnp.float32) + b2_ref[...]

    out_ref[0] = layer_norm(ff + y1, g2_ref, be2_ref).astype(out_ref.dtype)


def prepare_params(params, num_heads):
    """Bake bf16 MXU weights once (outside the per-layer call) and reshape Wo to
    head-major (H, dk, D) so the head merge fuses into the output projection."""
    D = params["wq"].shape[0]
    dk = D // num_heads
    bf = jnp.bfloat16
    prepped = dict(params)
    for n in ("wq", "wk", "wv", "w1", "w2"):
        prepped[n] = params[n].astype(bf)
    prepped["wo_h"] = params["wo"].astype(bf).reshape(num_heads, dk, D)
    return prepped


def encoder_layer(x, mask, params, num_heads, *, return_attn=False,
                  attn_dtype=jnp.bfloat16, q_tile=None):
    B, S, D = x.shape
    assert D % num_heads == 0
    dk = D // num_heads

    if "wo_h" not in params:                       # accept raw params too
        params = prepare_params(params, num_heads)
    F = params["w1"].shape[1]

    if mask is None:
        mask = jnp.ones((B, 1, 1, S), jnp.float32)
    mask = mask.astype(jnp.float32)
    # Only key-padding masks are supported; reject other shapes instead of
    # silently mis-tiling (e.g. a (B,1,S,S) causal mask).
    assert mask.shape == (B, 1, 1, S), f"expected (B,1,1,S) padding mask, got {mask.shape}"

    vmem_cap = _vmem_capacity_bytes()
    if q_tile is None:
        q_tile = _pick_q_tile(S, vmem_cap)
    assert S % q_tile == 0
    grid = (B, S // q_tile)

    attn_itemsize = jnp.dtype(attn_dtype).itemsize

    # ---- advisory cost estimate for XLA scheduling around the custom call ----
    flops = int(2 * B * S * D * (4 * D + 2 * F) + 4 * B * S * S * D)
    transcendentals = int(B * num_heads * S * S)
    bytes_accessed = int(
        8 * B * S * D                                  # x in + out (f32)
        + 2 * (4 * D * D + 2 * D * F)                  # bf16 weights
        + 4 * B * S                                    # mask
        + (B * num_heads * S * S * attn_itemsize if return_attn else 0))
    cost = pl.CostEstimate(flops=flops, transcendentals=transcendentals,
                           bytes_accessed=bytes_accessed)

    # ---- VMEM budget: estimate + 2x headroom, capped at ~72% of physical VMEM ----
    weight_bytes = 2 * 2 * (4 * D * D + 2 * D * F)     # bf16, double-buffered worst case
    small_bytes = 2 * 4 * (9 * D + F)
    kv_cache_bytes = 2 * 2 * S * D                     # bf16 K/V head cache (scratch)
    act_bytes = 4 * (3 * num_heads * q_tile * S + q_tile * (4 * D + F) + 2 * S * D)
    attn_out_bytes = 2 * num_heads * q_tile * S * attn_itemsize if return_attn else 0
    need = weight_bytes + small_bytes + kv_cache_bytes + act_bytes + attn_out_bytes
    vmem_limit = int(min(0.72 * vmem_cap, max(32 * 2 ** 20, 2 * need)))

    kernel = functools.partial(_encoder_layer_kernel, num_heads=num_heads)

    out_shape = [jax.ShapeDtypeStruct((B, S, D), jnp.float32)]
    if return_attn:
        out_shape.append(jax.ShapeDtypeStruct((B, num_heads, S, S), attn_dtype))

    scratch_shapes = [pltpu.VMEM((num_heads, S, dk), jnp.bfloat16),   # K heads (per batch)
                      pltpu.VMEM((num_heads, S, dk), jnp.bfloat16)]   # V heads (per batch)

    def make_call(single_buffer_weights):
        def w_spec(shape):
            n = len(shape)
            kwargs = {}
            if single_buffer_weights:
                # Grid-invariant weights: single-buffer (halves weight VMEM, key on v7x).
                kwargs["pipeline_mode"] = pl.Buffered(buffer_count=1)
            return pl.BlockSpec(shape, lambda b, qi, n=n: (0,) * n, **kwargs)

        in_specs = [
            pl.BlockSpec((1, q_tile, D), lambda b, qi: (b, qi, 0)),   # x: query tile
            pl.BlockSpec((1, S, D), lambda b, qi: (b, 0, 0)),         # x: full seq (K/V src)
            pl.BlockSpec((1, 1, 1, S), lambda b, qi: (b, 0, 0, 0)),   # padding mask
            w_spec((D, D)), w_spec((1, D)),                           # Wq, bq
            w_spec((D, D)), w_spec((1, D)),                           # Wk, bk
            w_spec((D, D)), w_spec((1, D)),                           # Wv, bv
            w_spec((num_heads, dk, D)), w_spec((1, D)),               # Wo (head-major), bo
            w_spec((1, D)), w_spec((1, D)),                           # ln1 gamma, beta
            w_spec((D, F)), w_spec((1, F)),                           # W1, b1
            w_spec((F, D)), w_spec((1, D)),                           # W2, b2
            w_spec((1, D)), w_spec((1, D)),                           # ln2 gamma, beta
        ]
        out_specs = [pl.BlockSpec((1, q_tile, D), lambda b, qi: (b, qi, 0))]
        if return_attn:
            out_specs.append(
                pl.BlockSpec((1, num_heads, q_tile, S), lambda b, qi: (b, 0, qi, 0)))

        return pl.pallas_call(
            kernel,
            grid=grid,
            in_specs=in_specs,
            out_specs=out_specs,
            out_shape=out_shape,
            scratch_shapes=scratch_shapes,
            compiler_params=pltpu.CompilerParams(
                # qi must iterate sequentially per core: the K/V cache is filled at qi==0.
                dimension_semantics=("parallel", "arbitrary"),
                vmem_limit_bytes=vmem_limit),
            cost_estimate=cost,
        )

    args = (x, x, mask,
            params["wq"], params["bq"], params["wk"], params["bk"],
            params["wv"], params["bv"], params["wo_h"], params["bo"],
            params["g1"], params["be1"], params["w1"], params["b1"],
            params["w2"], params["b2"], params["g2"], params["be2"])

    try:
        outs = make_call(_BUFFERED_OK)(*args)
    except Exception:
        if not _BUFFERED_OK:
            raise
        outs = make_call(False)(*args)   # graceful fallback: double-buffered weights

    if return_attn:
        return outs[0], outs[1]
    return outs[0]


def _reference(x, mask, params, num_heads):
    """Pure-JAX f32 reference with identical semantics, for correctness check."""
    B, S, D = x.shape
    dk = D // num_heads
    q = x @ params["wq"] + params["bq"]
    k = x @ params["wk"] + params["bk"]
    v = x @ params["wv"] + params["bv"]
    qh = q.reshape(B, S, num_heads, dk).transpose(0, 2, 1, 3)
    kh = k.reshape(B, S, num_heads, dk).transpose(0, 2, 1, 3)
    vh = v.reshape(B, S, num_heads, dk).transpose(0, 2, 1, 3)
    s = jnp.einsum("bhqd,bhkd->bhqk", qh, kh) / jnp.sqrt(jnp.float32(dk))
    s = jnp.where(mask > 0, s, -1e9)
    a = jax.nn.softmax(s, axis=-1)
    ctx = jnp.einsum("bhqk,bhkd->bhqd", a, vh).transpose(0, 2, 1, 3).reshape(B, S, D)
    attn_out = ctx @ params["wo"] + params["bo"]

    def ln(z, g, b, eps=1e-5):
        mu = jnp.mean(z, -1, keepdims=True)
        var = jnp.mean((z - mu) ** 2, -1, keepdims=True)
        return (z - mu) * jax.lax.rsqrt(var + eps) * g + b

    y1 = ln(attn_out + x, params["g1"], params["be1"])
    ff = jnp.maximum(y1 @ params["w1"] + params["b1"], 0.0) @ params["w2"] + params["b2"]
    return ln(ff + y1, params["g2"], params["be2"]), a


def init_params(key, d_model, d_ff):
    ks = jax.random.split(key, 6)
    std = 0.02
    return {
        "wq": jax.random.normal(ks[0], (d_model, d_model), jnp.float32) * std,
        "bq": jnp.zeros((1, d_model), jnp.float32),
        "wk": jax.random.normal(ks[1], (d_model, d_model), jnp.float32) * std,
        "bk": jnp.zeros((1, d_model), jnp.float32),
        "wv": jax.random.normal(ks[2], (d_model, d_model), jnp.float32) * std,
        "bv": jnp.zeros((1, d_model), jnp.float32),
        "wo": jax.random.normal(ks[3], (d_model, d_model), jnp.float32) * std,
        "bo": jnp.zeros((1, d_model), jnp.float32),
        "g1": jnp.ones((1, d_model), jnp.float32),
        "be1": jnp.zeros((1, d_model), jnp.float32),
        "w1": jax.random.normal(ks[4], (d_model, d_ff), jnp.float32) * std,
        "b1": jnp.zeros((1, d_ff), jnp.float32),
        "w2": jax.random.normal(ks[5], (d_ff, d_model), jnp.float32) * std,
        "b2": jnp.zeros((1, d_model), jnp.float32),
        "g2": jnp.ones((1, d_model), jnp.float32),
        "be2": jnp.zeros((1, d_model), jnp.float32),
    }


if __name__ == "__main__":
    B, S, D, H, FF = 2, 8, 32, 4, 64
    key = jax.random.PRNGKey(0)
    kx, kp = jax.random.split(key, 2)

    x = jax.random.normal(kx, (B, S, D), jnp.float32)
    # Padding mask (batch, 1, 1, seq): mask out the last two positions of batch 1.
    mask = jnp.ones((B, 1, 1, S), jnp.float32)
    mask = mask.at[1, 0, 0, -2:].set(0.0)
    params = init_params(kp, D, FF)
    prepped = prepare_params(params, H)   # bf16 weights baked once, outside the call

    # The PyTorch module returns (output, attention_weights): request both here.
    out, attn = encoder_layer(x, mask, prepped, H, return_attn=True)
    out = jax.block_until_ready(out)
    attn = jax.block_until_ready(attn)

    ref_out, ref_attn = _reference(x, mask, params, H)
    assert out.shape == (B, S, D) and attn.shape == (B, H, S, S)
    # bf16 MXU operands / bf16 attn writeback -> compare at loosened tolerance.
    assert jnp.allclose(out, ref_out, atol=2e-2, rtol=2e-2)
    assert jnp.allclose(attn.astype(jnp.float32), ref_attn, atol=2e-2, rtol=2e-2)

    print("KERNEL_OK")
</pallas_src>

<mosaic_0001>
module attributes {stable_mosaic.version = 11 : i64} {
  func.func @_encoder_layer_kernel(%arg0: i32, %arg1: i32, %arg2: memref<1x8x32xf32, #tpu.memory_space<vmem>>, %arg3: memref<1x8x32xf32, #tpu.memory_space<vmem>>, %arg4: memref<1x1x1x8xf32, #tpu.memory_space<vmem>>, %arg5: memref<32x32xbf16, #tpu.memory_space<vmem>>, %arg6: memref<1x32xf32, #tpu.memory_space<vmem>>, %arg7: memref<32x32xbf16, #tpu.memory_space<vmem>>, %arg8: memref<1x32xf32, #tpu.memory_space<vmem>>, %arg9: memref<32x32xbf16, #tpu.memory_space<vmem>>, %arg10: memref<1x32xf32, #tpu.memory_space<vmem>>, %arg11: memref<4x8x32xbf16, #tpu.memory_space<vmem>>, %arg12: memref<1x32xf32, #tpu.memory_space<vmem>>, %arg13: memref<1x32xf32, #tpu.memory_space<vmem>>, %arg14: memref<1x32xf32, #tpu.memory_space<vmem>>, %arg15: memref<32x64xbf16, #tpu.memory_space<vmem>>, %arg16: memref<1x64xf32, #tpu.memory_space<vmem>>, %arg17: memref<64x32xbf16, #tpu.memory_space<vmem>>, %arg18: memref<1x32xf32, #tpu.memory_space<vmem>>, %arg19: memref<1x32xf32, #tpu.memory_space<vmem>>, %arg20: memref<1x32xf32, #tpu.memory_space<vmem>>, %arg21: memref<1x8x32xf32, #tpu.memory_space<vmem>>, %arg22: memref<1x4x8x8xbf16, #tpu.memory_space<vmem>>, %arg23: memref<4x8x8xbf16, #tpu.memory_space<vmem>>, %arg24: memref<4x8x8xbf16, #tpu.memory_space<vmem>>) attributes {dimension_semantics = [#tpu.dimension_semantics<parallel>, #tpu.dimension_semantics<arbitrary>], iteration_bounds = array<i64: 2, 1>, scalar_prefetch = 0 : i64, scratch_operands = 2 : i64, tpu.core_type = #tpu.core_type<tc>, window_params = [{transform_indices = @transform_0, window_bounds = array<i64: 1, 8, 32>}, {transform_indices = @transform_1, window_bounds = array<i64: 1, 8, 32>}, {transform_indices = @transform_2, window_bounds = array<i64: 1, 1, 1, 8>}, {pipeline_mode = #tpu.pipeline_mode<synchronous>, transform_indices = @transform_3, window_bounds = array<i64: 32, 32>}, {pipeline_mode = #tpu.pipeline_mode<synchronous>, transform_indices = @transform_4, window_bounds = array<i64: 1, 32>}, {pipeline_mode = #tpu.pipeline_mode<synchronous>, transform_indices = @transform_5, window_bounds = array<i64: 32, 32>}, {pipeline_mode = #tpu.pipeline_mode<synchronous>, transform_indices = @transform_6, window_bounds = array<i64: 1, 32>}, {pipeline_mode = #tpu.pipeline_mode<synchronous>, transform_indices = @transform_7, window_bounds = array<i64: 32, 32>}, {pipeline_mode = #tpu.pipeline_mode<synchronous>, transform_indices = @transform_8, window_bounds = array<i64: 1, 32>}, {pipeline_mode = #tpu.pipeline_mode<synchronous>, transform_indices = @transform_9, window_bounds = array<i64: 4, 8, 32>}, {pipeline_mode = #tpu.pipeline_mode<synchronous>, transform_indices = @transform_10, window_bounds = array<i64: 1, 32>}, {pipeline_mode = #tpu.pipeline_mode<synchronous>, transform_indices = @transform_11, window_bounds = array<i64: 1, 32>}, {pipeline_mode = #tpu.pipeline_mode<synchronous>, transform_indices = @transform_12, window_bounds = array<i64: 1, 32>}, {pipeline_mode = #tpu.pipeline_mode<synchronous>, transform_indices = @transform_13, window_bounds = array<i64: 32, 64>}, {pipeline_mode = #tpu.pipeline_mode<synchronous>, transform_indices = @transform_14, window_bounds = array<i64: 1, 64>}, {pipeline_mode = #tpu.pipeline_mode<synchronous>, transform_indices = @transform_15, window_bounds = array<i64: 64, 32>}, {pipeline_mode = #tpu.pipeline_mode<synchronous>, transform_indices = @transform_16, window_bounds = array<i64: 1, 32>}, {pipeline_mode = #tpu.pipeline_mode<synchronous>, transform_indices = @transform_17, window_bounds = array<i64: 1, 32>}, {pipeline_mode = #tpu.pipeline_mode<synchronous>, transform_indices = @transform_18, window_bounds = array<i64: 1, 32>}, {transform_indices = @transform_19, window_bounds = array<i64: 1, 8, 32>}, {transform_indices = @transform_20, window_bounds = array<i64: 1, 4, 8, 8>}]} {
    %c0 = arith.constant 0 : index
    %c0_0 = arith.constant 0 : index
    %c0_1 = arith.constant 0 : index
    %0 = vector.load %arg2[%c0, %c0_0, %c0_1] : memref<1x8x32xf32, #tpu.memory_space<vmem>>, vector<1x8x32xf32>
    %1 = vector.shape_cast %0 : vector<1x8x32xf32> to vector<8x32xf32>
    %c0_i32 = arith.constant 0 : i32
    %2 = arith.cmpi eq, %arg1, %c0_i32 : i32
    %3 = arith.extui %2 : i1 to i32
    %c0_i32_2 = arith.constant 0 : i32
    %4 = arith.cmpi ne, %3, %c0_i32_2 : i32
    scf.if %4 {
      %c0_68 = arith.constant 0 : index
      %c0_69 = arith.constant 0 : index
      %c0_70 = arith.constant 0 : index
      %117 = vector.load %arg3[%c0_68, %c0_69, %c0_70] : memref<1x8x32xf32, #tpu.memory_space<vmem>>, vector<1x8x32xf32>
      %118 = vector.shape_cast %117 : vector<1x8x32xf32> to vector<8x32xf32>
      %119 = arith.truncf %118 : vector<8x32xf32> to vector<8x32xbf16>
      %c0_71 = arith.constant 0 : index
      %c0_72 = arith.constant 0 : index
      %120 = vector.load %arg7[%c0_71, %c0_72] : memref<32x32xbf16, #tpu.memory_space<vmem>>, vector<32x32xbf16>
      %cst_73 = arith.constant dense<0.000000e+00> : vector<8x32xf32>
      %121 = tpu.matmul %119, %120, %cst_73 {dimension_numbers = #tpu.dot_dimension_numbers<[1], [0], [0], [1], [0, 0, 1, 1], [], []>} : vector<8x32xbf16>, vector<32x32xbf16>, vector<8x32xf32> -> vector<8x32xf32>
      %c0_74 = arith.constant 0 : index
      %c0_75 = arith.constant 0 : index
      %122 = vector.load %arg8[%c0_74, %c0_75] : memref<1x32xf32, #tpu.memory_space<vmem>>, vector<1x32xf32>
      %123 = vector.broadcast %122 : vector<1x32xf32> to vector<8x32xf32>
      %124 = arith.addf %121, %123 : vector<8x32xf32>
      %c0_76 = arith.constant 0 : index
      %c0_77 = arith.constant 0 : index
      %125 = vector.load %arg9[%c0_76, %c0_77] : memref<32x32xbf16, #tpu.memory_space<vmem>>, vector<32x32xbf16>
      %cst_78 = arith.constant dense<0.000000e+00> : vector<8x32xf32>
      %126 = tpu.matmul %119, %125, %cst_78 {dimension_numbers = #tpu.dot_dimension_numbers<[1], [0], [0], [1], [0, 0, 1, 1], [], []>} : vector<8x32xbf16>, vector<32x32xbf16>, vector<8x32xf32> -> vector<8x32xf32>
      %c0_79 = arith.constant 0 : index
      %c0_80 = arith.constant 0 : index
      %127 = vector.load %arg10[%c0_79, %c0_80] : memref<1x32xf32, #tpu.memory_space<vmem>>, vector<1x32xf32>
      %128 = vector.broadcast %127 : vector<1x32xf32> to vector<8x32xf32>
      %129 = arith.addf %126, %128 : vector<8x32xf32>
      %130 = vector.shape_cast %124 : vector<8x32xf32> to vector<8x4x8xf32>
      %131 = tpu.transpose %130, [1, 0, 2] : vector<8x4x8xf32> -> vector<4x8x8xf32>
      %132 = arith.truncf %131 : vector<4x8x8xf32> to vector<4x8x8xbf16>
      %c0_81 = arith.constant 0 : index
      %c0_82 = arith.constant 0 : index
      %c0_83 = arith.constant 0 : index
      %133 = vector.load %arg23[%c0_81, %c0_82, %c0_83] : memref<4x8x8xbf16, #tpu.memory_space<vmem>>, vector<4x8x8xbf16>
      tpu.vector_store %arg23[%c0_81, %c0_82, %c0_83], %132 {strides = array<i32>} : memref<4x8x8xbf16, #tpu.memory_space<vmem>>, vector<4x8x8xbf16>,
      %134 = vector.shape_cast %129 : vector<8x32xf32> to vector<8x4x8xf32>
      %135 = tpu.transpose %134, [1, 0, 2] : vector<8x4x8xf32> -> vector<4x8x8xf32>
      %136 = arith.truncf %135 : vector<4x8x8xf32> to vector<4x8x8xbf16>
      %c0_84 = arith.constant 0 : index
      %c0_85 = arith.constant 0 : index
      %c0_86 = arith.constant 0 : index
      %137 = vector.load %arg24[%c0_84, %c0_85, %c0_86] : memref<4x8x8xbf16, #tpu.memory_space<vmem>>, vector<4x8x8xbf16>
      tpu.vector_store %arg24[%c0_84, %c0_85, %c0_86], %136 {strides = array<i32>} : memref<4x8x8xbf16, #tpu.memory_space<vmem>>, vector<4x8x8xbf16>,
    } else {
    }
    %5 = arith.truncf %1 : vector<8x32xf32> to vector<8x32xbf16>
    %c0_3 = arith.constant 0 : index
    %c0_4 = arith.constant 0 : index
    %6 = vector.load %arg5[%c0_3, %c0_4] : memref<32x32xbf16, #tpu.memory_space<vmem>>, vector<32x32xbf16>
    %cst = arith.constant dense<0.000000e+00> : vector<8x32xf32>
    %7 = tpu.matmul %5, %6, %cst {dimension_numbers = #tpu.dot_dimension_numbers<[1], [0], [0], [1], [0, 0, 1, 1], [], []>} : vector<8x32xbf16>, vector<32x32xbf16>, vector<8x32xf32> -> vector<8x32xf32>
    %c0_5 = arith.constant 0 : index
    %c0_6 = arith.constant 0 : index
    %8 = vector.load %arg6[%c0_5, %c0_6] : memref<1x32xf32, #tpu.memory_space<vmem>>, vector<1x32xf32>
    %9 = vector.broadcast %8 : vector<1x32xf32> to vector<8x32xf32>
    %10 = arith.addf %7, %9 : vector<8x32xf32>
    %cst_7 = arith.constant 0.353553385 : f32
    %11 = vector.broadcast %cst_7 : f32 to vector<8x32xf32>
    %12 = arith.mulf %10, %11 : vector<8x32xf32>
    %13 = vector.shape_cast %12 : vector<8x32xf32> to vector<8x4x8xf32>
    %14 = tpu.transpose %13, [1, 0, 2] : vector<8x4x8xf32> -> vector<4x8x8xf32>
    %15 = arith.truncf %14 : vector<4x8x8xf32> to vector<4x8x8xbf16>
    %c0_8 = arith.constant 0 : index
    %c0_9 = arith.constant 0 : index
    %c0_10 = arith.constant 0 : index
    %16 = vector.load %arg23[%c0_8, %c0_9, %c0_10] : memref<4x8x8xbf16, #tpu.memory_space<vmem>>, vector<4x8x8xbf16>
    "tpu.trace_start"() <{level = 10 : i32, message = "hqd,hkd->hqk"}> : () -> ()
    %cst_11 = arith.constant dense<0.000000e+00> : vector<4x8x8xf32>
    %17 = tpu.matmul %15, %16, %cst_11 {dimension_numbers = #tpu.dot_dimension_numbers<[2], [2], [1], [1], [0, 0, 0, 1, 1, 1], [0], [0]>} : vector<4x8x8xbf16>, vector<4x8x8xbf16>, vector<4x8x8xf32> -> vector<4x8x8xf32>
    "tpu.trace_stop"() : () -> ()
    %c0_12 = arith.constant 0 : index
    %c0_13 = arith.constant 0 : index
    %c0_14 = arith.constant 0 : index
    %c0_15 = arith.constant 0 : index
    %18 = vector.load %arg4[%c0_12, %c0_13, %c0_14, %c0_15] : memref<1x1x1x8xf32, #tpu.memory_space<vmem>>, vector<1x1x1x8xf32>
    %19 = vector.shape_cast %18 : vector<1x1x1x8xf32> to vector<1x1x8xf32>
    %cst_16 = arith.constant 0.000000e+00 : f32
    %20 = vector.broadcast %cst_16 : f32 to vector<1x1x8xf32>
    %21 = arith.cmpf ogt, %19, %20 : vector<1x1x8xf32>
    %cst_17 = arith.constant 0.000000e+00 : f32
    %cst_18 = arith.constant -1.000000e+09 : f32
    %22 = vector.broadcast %cst_17 : f32 to vector<1x1x8xf32>
    %23 = vector.broadcast %cst_18 : f32 to vector<1x1x8xf32>
    %24 = arith.select %21, %22, %23 : vector<1x1x8xi1>, vector<1x1x8xf32>
    %25 = vector.broadcast %24 : vector<1x1x8xf32> to vector<4x8x8xf32>
    %26 = arith.addf %17, %25 : vector<4x8x8xf32>
    %cst_19 = arith.constant dense<0xFF800000> : vector<4x8xf32>
    %27 = vector.multi_reduction <maximumf>, %26, %cst_19 [2] : vector<4x8x8xf32> to vector<4x8xf32>
    %28 = vector.shape_cast %27 : vector<4x8xf32> to vector<4x8x1xf32>
    %29 = vector.broadcast %28 : vector<4x8x1xf32> to vector<4x8x8xf32>
    %30 = arith.subf %26, %29 : vector<4x8x8xf32>
    %31 = math.exp %30 : vector<4x8x8xf32>
    %cst_20 = arith.constant dense<0.000000e+00> : vector<4x8xf32>
    %32 = vector.multi_reduction <add>, %31, %cst_20 [2] : vector<4x8x8xf32> to vector<4x8xf32>
    %33 = vector.shape_cast %32 : vector<4x8xf32> to vector<4x8x1xf32>
    %34 = vector.broadcast %33 : vector<4x8x1xf32> to vector<4x8x8xf32>
    %35 = arith.divf %31, %34 : vector<4x8x8xf32>
    %36 = arith.truncf %35 : vector<4x8x8xf32> to vector<4x8x8xbf16>
    %c0_21 = arith.constant 0 : index
    %c0_22 = arith.constant 0 : index
    %c0_23 = arith.constant 0 : index
    %c0_24 = arith.constant 0 : index
    %37 = vector.load %arg22[%c0_21, %c0_22, %c0_23, %c0_24] : memref<1x4x8x8xbf16, #tpu.memory_space<vmem>>, vector<1x4x8x8xbf16>
    %38 = vector.shape_cast %37 : vector<1x4x8x8xbf16> to vector<4x8x8xbf16>
    %39 = vector.shape_cast %36 : vector<4x8x8xbf16> to vector<1x4x8x8xbf16>
    tpu.vector_store %arg22[%c0_21, %c0_22, %c0_23, %c0_24], %39 {strides = array<i32>} : memref<1x4x8x8xbf16, #tpu.memory_space<vmem>>, vector<1x4x8x8xbf16>,
    %40 = arith.truncf %35 : vector<4x8x8xf32> to vector<4x8x8xbf16>
    %c0_25 = arith.constant 0 : index
    %c0_26 = arith.constant 0 : index
    %c0_27 = arith.constant 0 : index
    %41 = vector.load %arg24[%c0_25, %c0_26, %c0_27] : memref<4x8x8xbf16, #tpu.memory_space<vmem>>, vector<4x8x8xbf16>
    "tpu.trace_start"() <{level = 10 : i32, message = "hqk,hkd->hqd"}> : () -> ()
    %cst_28 = arith.constant dense<0.000000e+00> : vector<4x8x8xf32>
    %42 = tpu.matmul %40, %41, %cst_28 {dimension_numbers = #tpu.dot_dimension_numbers<[2], [1], [1], [2], [0, 0, 0, 1, 1, 2], [0], [0]>} : vector<4x8x8xbf16>, vector<4x8x8xbf16>, vector<4x8x8xf32> -> vector<4x8x8xf32>
    "tpu.trace_stop"() : () -> ()
    %43 = arith.truncf %42 : vector<4x8x8xf32> to vector<4x8x8xbf16>
    %c0_29 = arith.constant 0 : index
    %c0_30 = arith.constant 0 : index
    %c0_31 = arith.constant 0 : index
    %44 = vector.load %arg11[%c0_29, %c0_30, %c0_31] : memref<4x8x32xbf16, #tpu.memory_space<vmem>>, vector<4x8x32xbf16>
    %cst_32 = arith.constant dense<0.000000e+00> : vector<4x8x32xf32>
    %45 = tpu.matmul %43, %44, %cst_32 {dimension_numbers = #tpu.dot_dimension_numbers<[2], [1], [1], [2], [0, 0, 0, 1, 1, 2], [0], [0]>} : vector<4x8x8xbf16>, vector<4x8x32xbf16>, vector<4x8x32xf32> -> vector<4x8x32xf32>
    %cst_33 = arith.constant dense<0.000000e+00> : vector<8x32xf32>
    %46 = vector.multi_reduction <add>, %45, %cst_33 [0] : vector<4x8x32xf32> to vector<8x32xf32>
    %c0_34 = arith.constant 0 : index
    %c0_35 = arith.constant 0 : index
    %47 = vector.load %arg12[%c0_34, %c0_35] : memref<1x32xf32, #tpu.memory_space<vmem>>, vector<1x32xf32>
    %48 = vector.broadcast %47 : vector<1x32xf32> to vector<8x32xf32>
    %49 = arith.addf %46, %48 : vector<8x32xf32>
    %50 = arith.addf %49, %1 : vector<8x32xf32>
    %cst_36 = arith.constant dense<0.000000e+00> : vector<8xf32>
    %51 = vector.multi_reduction <add>, %50, %cst_36 [1] : vector<8x32xf32> to vector<8xf32>
    %52 = vector.shape_cast %51 : vector<8xf32> to vector<8x1xf32>
    %cst_37 = arith.constant 3.200000e+01 : f32
    %53 = vector.broadcast %cst_37 : f32 to vector<8x1xf32>
    %54 = arith.divf %52, %53 : vector<8x1xf32>
    %55 = vector.broadcast %54 : vector<8x1xf32> to vector<8x32xf32>
    %56 = arith.subf %50, %55 : vector<8x32xf32>
    %57 = arith.mulf %56, %56 : vector<8x32xf32>
    %cst_38 = arith.constant dense<0.000000e+00> : vector<8xf32>
    %58 = vector.multi_reduction <add>, %57, %cst_38 [1] : vector<8x32xf32> to vector<8xf32>
    %59 = vector.shape_cast %58 : vector<8xf32> to vector<8x1xf32>
    %cst_39 = arith.constant 3.200000e+01 : f32
    %60 = vector.broadcast %cst_39 : f32 to vector<8x1xf32>
    %61 = arith.divf %59, %60 : vector<8x1xf32>
    %62 = vector.broadcast %54 : vector<8x1xf32> to vector<8x32xf32>
    %63 = arith.subf %50, %62 : vector<8x32xf32>
    %cst_40 = arith.constant 9.99999974E-6 : f32
    %64 = vector.broadcast %cst_40 : f32 to vector<8x1xf32>
    %65 = arith.addf %61, %64 : vector<8x1xf32>
    %66 = math.rsqrt %65 : vector<8x1xf32>
    %67 = vector.broadcast %66 : vector<8x1xf32> to vector<8x32xf32>
    %68 = arith.mulf %63, %67 : vector<8x32xf32>
    %c0_41 = arith.constant 0 : index
    %c0_42 = arith.constant 0 : index
    %69 = vector.load %arg13[%c0_41, %c0_42] : memref<1x32xf32, #tpu.memory_space<vmem>>, vector<1x32xf32>
    %70 = vector.broadcast %69 : vector<1x32xf32> to vector<8x32xf32>
    %71 = arith.mulf %68, %70 : vector<8x32xf32>
    %c0_43 = arith.constant 0 : index
    %c0_44 = arith.constant 0 : index
    %72 = vector.load %arg14[%c0_43, %c0_44] : memref<1x32xf32, #tpu.memory_space<vmem>>, vector<1x32xf32>
    %73 = vector.broadcast %72 : vector<1x32xf32> to vector<8x32xf32>
    %74 = arith.addf %71, %73 : vector<8x32xf32>
    %75 = arith.truncf %74 : vector<8x32xf32> to vector<8x32xbf16>
    %c0_45 = arith.constant 0 : index
    %c0_46 = arith.constant 0 : index
    %76 = vector.load %arg15[%c0_45, %c0_46] : memref<32x64xbf16, #tpu.memory_space<vmem>>, vector<32x64xbf16>
    %cst_47 = arith.constant dense<0.000000e+00> : vector<8x64xf32>
    %77 = tpu.matmul %75, %76, %cst_47 {dimension_numbers = #tpu.dot_dimension_numbers<[1], [0], [0], [1], [0, 0, 1, 1], [], []>} : vector<8x32xbf16>, vector<32x64xbf16>, vector<8x64xf32> -> vector<8x64xf32>
    %c0_48 = arith.constant 0 : index
    %c0_49 = arith.constant 0 : index
    %78 = vector.load %arg16[%c0_48, %c0_49] : memref<1x64xf32, #tpu.memory_space<vmem>>, vector<1x64xf32>
    %79 = vector.broadcast %78 : vector<1x64xf32> to vector<8x64xf32>
    %80 = arith.addf %77, %79 : vector<8x64xf32>
    %cst_50 = arith.constant 0.000000e+00 : f32
    %81 = vector.broadcast %cst_50 : f32 to vector<8x64xf32>
    %82 = arith.maximumf %80, %81 : vector<8x64xf32>
    %83 = arith.truncf %82 : vector<8x64xf32> to vector<8x64xbf16>
    %c0_51 = arith.constant 0 : index
    %c0_52 = arith.constant 0 : index
    %84 = vector.load %arg17[%c0_51, %c0_52] : memref<64x32xbf16, #tpu.memory_space<vmem>>, vector<64x32xbf16>
    %cst_53 = arith.constant dense<0.000000e+00> : vector<8x32xf32>
    %85 = tpu.matmul %83, %84, %cst_53 {dimension_numbers = #tpu.dot_dimension_numbers<[1], [0], [0], [1], [0, 0, 1, 1], [], []>} : vector<8x64xbf16>, vector<64x32xbf16>, vector<8x32xf32> -> vector<8x32xf32>
    %c0_54 = arith.constant 0 : index
    %c0_55 = arith.constant 0 : index
    %86 = vector.load %arg18[%c0_54, %c0_55] : memref<1x32xf32, #tpu.memory_space<vmem>>, vector<1x32xf32>
    %87 = vector.broadcast %86 : vector<1x32xf32> to vector<8x32xf32>
    %88 = arith.addf %85, %87 : vector<8x32xf32>
    %89 = arith.addf %88, %74 : vector<8x32xf32>
    %cst_56 = arith.constant dense<0.000000e+00> : vector<8xf32>
    %90 = vector.multi_reduction <add>, %89, %cst_56 [1] : vector<8x32xf32> to vector<8xf32>
    %91 = vector.shape_cast %90 : vector<8xf32> to vector<8x1xf32>
    %cst_57 = arith.constant 3.200000e+01 : f32
    %92 = vector.broadcast %cst_57 : f32 to vector<8x1xf32>
    %93 = arith.divf %91, %92 : vector<8x1xf32>
    %94 = vector.broadcast %93 : vector<8x1xf32> to vector<8x32xf32>
    %95 = arith.subf %89, %94 : vector<8x32xf32>
    %96 = arith.mulf %95, %95 : vector<8x32xf32>
    %cst_58 = arith.constant dense<0.000000e+00> : vector<8xf32>
    %97 = vector.multi_reduction <add>, %96, %cst_58 [1] : vector<8x32xf32> to vector<8xf32>
    %98 = vector.shape_cast %97 : vector<8xf32> to vector<8x1xf32>
    %cst_59 = arith.constant 3.200000e+01 : f32
    %99 = vector.broadcast %cst_59 : f32 to vector<8x1xf32>
    %100 = arith.divf %98, %99 : vector<8x1xf32>
    %101 = vector.broadcast %93 : vector<8x1xf32> to vector<8x32xf32>
    %102 = arith.subf %89, %101 : vector<8x32xf32>
    %cst_60 = arith.constant 9.99999974E-6 : f32
    %103 = vector.broadcast %cst_60 : f32 to vector<8x1xf32>
    %104 = arith.addf %100, %103 : vector<8x1xf32>
    %105 = math.rsqrt %104 : vector<8x1xf32>
    %106 = vector.broadcast %105 : vector<8x1xf32> to vector<8x32xf32>
    %107 = arith.mulf %102, %106 : vector<8x32xf32>
    %c0_61 = arith.constant 0 : index
    %c0_62 = arith.constant 0 : index
    %108 = vector.load %arg19[%c0_61, %c0_62] : memref<1x32xf32, #tpu.memory_space<vmem>>, vector<1x32xf32>
    %109 = vector.broadcast %108 : vector<1x32xf32> to vector<8x32xf32>
    %110 = arith.mulf %107, %109 : vector<8x32xf32>
    %c0_63 = arith.constant 0 : index
    %c0_64 = arith.constant 0 : index
    %111 = vector.load %arg20[%c0_63, %c0_64] : memref<1x32xf32, #tpu.memory_space<vmem>>, vector<1x32xf32>
    %112 = vector.broadcast %111 : vector<1x32xf32> to vector<8x32xf32>
    %113 = arith.addf %110, %112 : vector<8x32xf32>
    %c0_65 = arith.constant 0 : index
    %c0_66 = arith.constant 0 : index
    %c0_67 = arith.constant 0 : index
    %114 = vector.load %arg21[%c0_65, %c0_66, %c0_67] : memref<1x8x32xf32, #tpu.memory_space<vmem>>, vector<1x8x32xf32>
    %115 = vector.shape_cast %114 : vector<1x8x32xf32> to vector<8x32xf32>
    %116 = vector.shape_cast %113 : vector<8x32xf32> to vector<1x8x32xf32>
    tpu.vector_store %arg21[%c0_65, %c0_66, %c0_67], %116 {strides = array<i32>} : memref<1x8x32xf32, #tpu.memory_space<vmem>>, vector<1x8x32xf32>,
    return
  }
  func.func @transform_0(%arg0: i32, %arg1: i32) -> (i32, i32, i32) {
    %c0_i32 = arith.constant 0 : i32
    %c0_i32_0 = arith.constant 0 : i32
    return %arg0, %arg1, %c0_i32 : i32, i32, i32
  }
  func.func @transform_1(%arg0: i32, %arg1: i32) -> (i32, i32, i32) {
    %c0_i32 = arith.constant 0 : i32
    %c0_i32_0 = arith.constant 0 : i32
    %c0_i32_1 = arith.constant 0 : i32
    return %arg0, %c0_i32, %c0_i32_0 : i32, i32, i32
  }
  func.func @transform_2(%arg0: i32, %arg1: i32) -> (i32, i32, i32, i32) {
    %c0_i32 = arith.constant 0 : i32
    %c0_i32_0 = arith.constant 0 : i32
    %c0_i32_1 = arith.constant 0 : i32
    %c0_i32_2 = arith.constant 0 : i32
    return %arg0, %c0_i32, %c0_i32_0, %c0_i32_1 : i32, i32, i32, i32
  }
  func.func @transform_3(%arg0: i32, %arg1: i32) -> (i32, i32) {
    %c0_i32 = arith.constant 0 : i32
    %c0_i32_0 = arith.constant 0 : i32
    %c0_i32_1 = arith.constant 0 : i32
    return %c0_i32, %c0_i32_0 : i32, i32
  }
  func.func @transform_4(%arg0: i32, %arg1: i32) -> (i32, i32) {
    %c0_i32 = arith.constant 0 : i32
    %c0_i32_0 = arith.constant 0 : i32
    %c0_i32_1 = arith.constant 0 : i32
    return %c0_i32, %c0_i32_0 : i32, i32
  }
  func.func @transform_5(%arg0: i32, %arg1: i32) -> (i32, i32) {
    %c0_i32 = arith.constant 0 : i32
    %c0_i32_0 = arith.constant 0 : i32
    %c0_i32_1 = arith.constant 0 : i32
    return %c0_i32, %c0_i32_0 : i32, i32
  }
  func.func @transform_6(%arg0: i32, %arg1: i32) -> (i32, i32) {
    %c0_i32 = arith.constant 0 : i32
    %c0_i32_0 = arith.constant 0 : i32
    %c0_i32_1 = arith.constant 0 : i32
    return %c0_i32, %c0_i32_0 : i32, i32
  }
  func.func @transform_7(%arg0: i32, %arg1: i32) -> (i32, i32) {
    %c0_i32 = arith.constant 0 : i32
    %c0_i32_0 = arith.constant 0 : i32
    %c0_i32_1 = arith.constant 0 : i32
    return %c0_i32, %c0_i32_0 : i32, i32
  }
  func.func @transform_8(%arg0: i32, %arg1: i32) -> (i32, i32) {
    %c0_i32 = arith.constant 0 : i32
    %c0_i32_0 = arith.constant 0 : i32
    %c0_i32_1 = arith.constant 0 : i32
    return %c0_i32, %c0_i32_0 : i32, i32
  }
  func.func @transform_9(%arg0: i32, %arg1: i32) -> (i32, i32, i32) {
    %c0_i32 = arith.constant 0 : i32
    %c0_i32_0 = arith.constant 0 : i32
    %c0_i32_1 = arith.constant 0 : i32
    %c0_i32_2 = arith.constant 0 : i32
    return %c0_i32, %c0_i32_0, %c0_i32_1 : i32, i32, i32
  }
  func.func @transform_10(%arg0: i32, %arg1: i32) -> (i32, i32) {
    %c0_i32 = arith.constant 0 : i32
    %c0_i32_0 = arith.constant 0 : i32
    %c0_i32_1 = arith.constant 0 : i32
    return %c0_i32, %c0_i32_0 : i32, i32
  }
  func.func @transform_11(%arg0: i32, %arg1: i32) -> (i32, i32) {
    %c0_i32 = arith.constant 0 : i32
    %c0_i32_0 = arith.constant 0 : i32
    %c0_i32_1 = arith.constant 0 : i32
    return %c0_i32, %c0_i32_0 : i32, i32
  }
  func.func @transform_12(%arg0: i32, %arg1: i32) -> (i32, i32) {
    %c0_i32 = arith.constant 0 : i32
    %c0_i32_0 = arith.constant 0 : i32
    %c0_i32_1 = arith.constant 0 : i32
    return %c0_i32, %c0_i32_0 : i32, i32
  }
  func.func @transform_13(%arg0: i32, %arg1: i32) -> (i32, i32) {
    %c0_i32 = arith.constant 0 : i32
    %c0_i32_0 = arith.constant 0 : i32
    %c0_i32_1 = arith.constant 0 : i32
    return %c0_i32, %c0_i32_0 : i32, i32
  }
  func.func @transform_14(%arg0: i32, %arg1: i32) -> (i32, i32) {
    %c0_i32 = arith.constant 0 : i32
    %c0_i32_0 = arith.constant 0 : i32
    %c0_i32_1 = arith.constant 0 : i32
    return %c0_i32, %c0_i32_0 : i32, i32
  }
  func.func @transform_15(%arg0: i32, %arg1: i32) -> (i32, i32) {
    %c0_i32 = arith.constant 0 : i32
    %c0_i32_0 = arith.constant 0 : i32
    %c0_i32_1 = arith.constant 0 : i32
    return %c0_i32, %c0_i32_0 : i32, i32
  }
  func.func @transform_16(%arg0: i32, %arg1: i32) -> (i32, i32) {
    %c0_i32 = arith.constant 0 : i32
    %c0_i32_0 = arith.constant 0 : i32
    %c0_i32_1 = arith.constant 0 : i32
    return %c0_i32, %c0_i32_0 : i32, i32
  }
  func.func @transform_17(%arg0: i32, %arg1: i32) -> (i32, i32) {
    %c0_i32 = arith.constant 0 : i32
    %c0_i32_0 = arith.constant 0 : i32
    %c0_i32_1 = arith.constant 0 : i32
    return %c0_i32, %c0_i32_0 : i32, i32
  }
  func.func @transform_18(%arg0: i32, %arg1: i32) -> (i32, i32) {
    %c0_i32 = arith.constant 0 : i32
    %c0_i32_0 = arith.constant 0 : i32
    %c0_i32_1 = arith.constant 0 : i32
    return %c0_i32, %c0_i32_0 : i32, i32
  }
  func.func @transform_19(%arg0: i32, %arg1: i32) -> (i32, i32, i32) {
    %c0_i32 = arith.constant 0 : i32
    %c0_i32_0 = arith.constant 0 : i32
    return %arg0, %arg1, %c0_i32 : i32, i32, i32
  }
  func.func @transform_20(%arg0: i32, %arg1: i32) -> (i32, i32, i32, i32) {
    %c0_i32 = arith.constant 0 : i32
    %c0_i32_0 = arith.constant 0 : i32
    %c0_i32_1 = arith.constant 0 : i32
    return %arg0, %c0_i32, %arg1, %c0_i32_0 : i32, i32, i32, i32
  }
}

module attributes {stable_mosaic.version = 11 : i64} {
  func.func @_encoder_layer_kernel(%arg0: i32, %arg1: i32, %arg2: memref<1x8x32xf32, #tpu.memory_space<vmem>>, %arg3: memref<1x8x32xf32, #tpu.memory_space<vmem>>, %arg4: memref<1x1x1x8xf32, #tpu.memory_space<vmem>>, %arg5: memref<32x32xbf16, #tpu.memory_space<vmem>>, %arg6: memref<1x32xf32, #tpu.memory_space<vmem>>, %arg7: memref<32x32xbf16, #tpu.memory_space<vmem>>, %arg8: memref<1x32xf32, #tpu.memory_space<vmem>>, %arg9: memref<32x32xbf16, #tpu.memory_space<vmem>>, %arg10: memref<1x32xf32, #tpu.memory_space<vmem>>, %arg11: memref<4x8x32xbf16, #tpu.memory_space<vmem>>, %arg12: memref<1x32xf32, #tpu.memory_space<vmem>>, %arg13: memref<1x32xf32, #tpu.memory_space<vmem>>, %arg14: memref<1x32xf32, #tpu.memory_space<vmem>>, %arg15: memref<32x64xbf16, #tpu.memory_space<vmem>>, %arg16: memref<1x64xf32, #tpu.memory_space<vmem>>, %arg17: memref<64x32xbf16, #tpu.memory_space<vmem>>, %arg18: memref<1x32xf32, #tpu.memory_space<vmem>>, %arg19: memref<1x32xf32, #tpu.memory_space<vmem>>, %arg20: memref<1x32xf32, #tpu.memory_space<vmem>>, %arg21: memref<1x8x32xf32, #tpu.memory_space<vmem>>, %arg22: memref<1x4x8x8xbf16, #tpu.memory_space<vmem>>, %arg23: memref<4x8x8xbf16, #tpu.memory_space<vmem>>, %arg24: memref<4x8x8xbf16, #tpu.memory_space<vmem>>) attributes {dimension_semantics = [#tpu.dimension_semantics<parallel>, #tpu.dimension_semantics<arbitrary>], iteration_bounds = array<i64: 2, 1>, scalar_prefetch = 0 : i64, scratch_operands = 2 : i64, tpu.core_type = #tpu.core_type<tc>, window_params = [{transform_indices = @transform_0, window_bounds = array<i64: 1, 8, 32>}, {transform_indices = @transform_1, window_bounds = array<i64: 1, 8, 32>}, {transform_indices = @transform_2, window_bounds = array<i64: 1, 1, 1, 8>}, {pipeline_mode = #tpu.pipeline_mode<synchronous>, transform_indices = @transform_3, window_bounds = array<i64: 32, 32>}, {pipeline_mode = #tpu.pipeline_mode<synchronous>, transform_indices = @transform_4, window_bounds = array<i64: 1, 32>}, {pipeline_mode = #tpu.pipeline_mode<synchronous>, transform_indices = @transform_5, window_bounds = array<i64: 32, 32>}, {pipeline_mode = #tpu.pipeline_mode<synchronous>, transform_indices = @transform_6, window_bounds = array<i64: 1, 32>}, {pipeline_mode = #tpu.pipeline_mode<synchronous>, transform_indices = @transform_7, window_bounds = array<i64: 32, 32>}, {pipeline_mode = #tpu.pipeline_mode<synchronous>, transform_indices = @transform_8, window_bounds = array<i64: 1, 32>}, {pipeline_mode = #tpu.pipeline_mode<synchronous>, transform_indices = @transform_9, window_bounds = array<i64: 4, 8, 32>}, {pipeline_mode = #tpu.pipeline_mode<synchronous>, transform_indices = @transform_10, window_bounds = array<i64: 1, 32>}, {pipeline_mode = #tpu.pipeline_mode<synchronous>, transform_indices = @transform_11, window_bounds = array<i64: 1, 32>}, {pipeline_mode = #tpu.pipeline_mode<synchronous>, transform_indices = @transform_12, window_bounds = array<i64: 1, 32>}, {pipeline_mode = #tpu.pipeline_mode<synchronous>, transform_indices = @transform_13, window_bounds = array<i64: 32, 64>}, {pipeline_mode = #tpu.pipeline_mode<synchronous>, transform_indices = @transform_14, window_bounds = array<i64: 1, 64>}, {pipeline_mode = #tpu.pipeline_mode<synchronous>, transform_indices = @transform_15, window_bounds = array<i64: 64, 32>}, {pipeline_mode = #tpu.pipeline_mode<synchronous>, transform_indices = @transform_16, window_bounds = array<i64: 1, 32>}, {pipeline_mode = #tpu.pipeline_mode<synchronous>, transform_indices = @transform_17, window_bounds = array<i64: 1, 32>}, {pipeline_mode = #tpu.pipeline_mode<synchronous>, transform_indices = @transform_18, window_bounds = array<i64: 1, 32>}, {transform_indices = @transform_19, window_bounds = array<i64: 1, 8, 32>}, {transform_indices = @transform_20, window_bounds = array<i64: 1, 4, 8, 8>}]} {
    %c0 = arith.constant 0 : index
    %c0_0 = arith.constant 0 : index
    %c0_1 = arith.constant 0 : index
    %0 = vector.load %arg2[%c0, %c0_0, %c0_1] : memref<1x8x32xf32, #tpu.memory_space<vmem>>, vector<1x8x32xf32>
    %1 = vector.shape_cast %0 : vector<1x8x32xf32> to vector<8x32xf32>
    %c0_i32 = arith.constant 0 : i32
    %2 = arith.cmpi eq, %arg1, %c0_i32 : i32
    %3 = arith.extui %2 : i1 to i32
    %c0_i32_2 = arith.constant 0 : i32
    %4 = arith.cmpi ne, %3, %c0_i32_2 : i32
    scf.if %4 {
      %c0_68 = arith.constant 0 : index
      %c0_69 = arith.constant 0 : index
      %c0_70 = arith.constant 0 : index
      %117 = vector.load %arg3[%c0_68, %c0_69, %c0_70] : memref<1x8x32xf32, #tpu.memory_space<vmem>>, vector<1x8x32xf32>
      %118 = vector.shape_cast %117 : vector<1x8x32xf32> to vector<8x32xf32>
      %119 = arith.truncf %118 : vector<8x32xf32> to vector<8x32xbf16>
      %c0_71 = arith.constant 0 : index
      %c0_72 = arith.constant 0 : index
      %120 = vector.load %arg7[%c0_71, %c0_72] : memref<32x32xbf16, #tpu.memory_space<vmem>>, vector<32x32xbf16>
      %cst_73 = arith.constant dense<0.000000e+00> : vector<8x32xf32>
      %121 = tpu.matmul %119, %120, %cst_73 {dimension_numbers = #tpu.dot_dimension_numbers<[1], [0], [0], [1], [0, 0, 1, 1], [], []>} : vector<8x32xbf16>, vector<32x32xbf16>, vector<8x32xf32> -> vector<8x32xf32>
      %c0_74 = arith.constant 0 : index
      %c0_75 = arith.constant 0 : index
      %122 = vector.load %arg8[%c0_74, %c0_75] : memref<1x32xf32, #tpu.memory_space<vmem>>, vector<1x32xf32>
      %123 = vector.broadcast %122 : vector<1x32xf32> to vector<8x32xf32>
      %124 = arith.addf %121, %123 : vector<8x32xf32>
      %c0_76 = arith.constant 0 : index
      %c0_77 = arith.constant 0 : index
      %125 = vector.load %arg9[%c0_76, %c0_77] : memref<32x32xbf16, #tpu.memory_space<vmem>>, vector<32x32xbf16>
      %cst_78 = arith.constant dense<0.000000e+00> : vector<8x32xf32>
      %126 = tpu.matmul %119, %125, %cst_78 {dimension_numbers = #tpu.dot_dimension_numbers<[1], [0], [0], [1], [0, 0, 1, 1], [], []>} : vector<8x32xbf16>, vector<32x32xbf16>, vector<8x32xf32> -> vector<8x32xf32>
      %c0_79 = arith.constant 0 : index
      %c0_80 = arith.constant 0 : index
      %127 = vector.load %arg10[%c0_79, %c0_80] : memref<1x32xf32, #tpu.memory_space<vmem>>, vector<1x32xf32>
      %128 = vector.broadcast %127 : vector<1x32xf32> to vector<8x32xf32>
      %129 = arith.addf %126, %128 : vector<8x32xf32>
      %130 = vector.shape_cast %124 : vector<8x32xf32> to vector<8x4x8xf32>
      %131 = tpu.transpose %130, [1, 0, 2] : vector<8x4x8xf32> -> vector<4x8x8xf32>
      %132 = arith.truncf %131 : vector<4x8x8xf32> to vector<4x8x8xbf16>
      %c0_81 = arith.constant 0 : index
      %c0_82 = arith.constant 0 : index
      %c0_83 = arith.constant 0 : index
      %133 = vector.load %arg23[%c0_81, %c0_82, %c0_83] : memref<4x8x8xbf16, #tpu.memory_space<vmem>>, vector<4x8x8xbf16>
      tpu.vector_store %arg23[%c0_81, %c0_82, %c0_83], %132 {strides = array<i32>} : memref<4x8x8xbf16, #tpu.memory_space<vmem>>, vector<4x8x8xbf16>,
      %134 = vector.shape_cast %129 : vector<8x32xf32> to vector<8x4x8xf32>
      %135 = tpu.transpose %134, [1, 0, 2] : vector<8x4x8xf32> -> vector<4x8x8xf32>
      %136 = arith.truncf %135 : vector<4x8x8xf32> to vector<4x8x8xbf16>
      %c0_84 = arith.constant 0 : index
      %c0_85 = arith.constant 0 : index
      %c0_86 = arith.constant 0 : index
      %137 = vector.load %arg24[%c0_84, %c0_85, %c0_86] : memref<4x8x8xbf16, #tpu.memory_space<vmem>>, vector<4x8x8xbf16>
      tpu.vector_store %arg24[%c0_84, %c0_85, %c0_86], %136 {strides = array<i32>} : memref<4x8x8xbf16, #tpu.memory_space<vmem>>, vector<4x8x8xbf16>,
    } else {
    }
    %5 = arith.truncf %1 : vector<8x32xf32> to vector<8x32xbf16>
    %c0_3 = arith.constant 0 : index
    %c0_4 = arith.constant 0 : index
    %6 = vector.load %arg5[%c0_3, %c0_4] : memref<32x32xbf16, #tpu.memory_space<vmem>>, vector<32x32xbf16>
    %cst = arith.constant dense<0.000000e+00> : vector<8x32xf32>
    %7 = tpu.matmul %5, %6, %cst {dimension_numbers = #tpu.dot_dimension_numbers<[1], [0], [0], [1], [0, 0, 1, 1], [], []>} : vector<8x32xbf16>, vector<32x32xbf16>, vector<8x32xf32> -> vector<8x32xf32>
    %c0_5 = arith.constant 0 : index
    %c0_6 = arith.constant 0 : index
    %8 = vector.load %arg6[%c0_5, %c0_6] : memref<1x32xf32, #tpu.memory_space<vmem>>, vector<1x32xf32>
    %9 = vector.broadcast %8 : vector<1x32xf32> to vector<8x32xf32>
    %10 = arith.addf %7, %9 : vector<8x32xf32>
    %cst_7 = arith.constant 0.353553385 : f32
    %11 = vector.broadcast %cst_7 : f32 to vector<8x32xf32>
    %12 = arith.mulf %10, %11 : vector<8x32xf32>
    %13 = vector.shape_cast %12 : vector<8x32xf32> to vector<8x4x8xf32>
    %14 = tpu.transpose %13, [1, 0, 2] : vector<8x4x8xf32> -> vector<4x8x8xf32>
    %15 = arith.truncf %14 : vector<4x8x8xf32> to vector<4x8x8xbf16>
    %c0_8 = arith.constant 0 : index
    %c0_9 = arith.constant 0 : index
    %c0_10 = arith.constant 0 : index
    %16 = vector.load %arg23[%c0_8, %c0_9, %c0_10] : memref<4x8x8xbf16, #tpu.memory_space<vmem>>, vector<4x8x8xbf16>
    "tpu.trace_start"() <{level = 10 : i32, message = "hqd,hkd->hqk"}> : () -> ()
    %cst_11 = arith.constant dense<0.000000e+00> : vector<4x8x8xf32>
    %17 = tpu.matmul %15, %16, %cst_11 {dimension_numbers = #tpu.dot_dimension_numbers<[2], [2], [1], [1], [0, 0, 0, 1, 1, 1], [0], [0]>} : vector<4x8x8xbf16>, vector<4x8x8xbf16>, vector<4x8x8xf32> -> vector<4x8x8xf32>
    "tpu.trace_stop"() : () -> ()
    %c0_12 = arith.constant 0 : index
    %c0_13 = arith.constant 0 : index
    %c0_14 = arith.constant 0 : index
    %c0_15 = arith.constant 0 : index
    %18 = vector.load %arg4[%c0_12, %c0_13, %c0_14, %c0_15] : memref<1x1x1x8xf32, #tpu.memory_space<vmem>>, vector<1x1x1x8xf32>
    %19 = vector.shape_cast %18 : vector<1x1x1x8xf32> to vector<1x1x8xf32>
    %cst_16 = arith.constant 0.000000e+00 : f32
    %20 = vector.broadcast %cst_16 : f32 to vector<1x1x8xf32>
    %21 = arith.cmpf ogt, %19, %20 : vector<1x1x8xf32>
    %cst_17 = arith.constant 0.000000e+00 : f32
    %cst_18 = arith.constant -1.000000e+09 : f32
    %22 = vector.broadcast %cst_17 : f32 to vector<1x1x8xf32>
    %23 = vector.broadcast %cst_18 : f32 to vector<1x1x8xf32>
    %24 = arith.select %21, %22, %23 : vector<1x1x8xi1>, vector<1x1x8xf32>
    %25 = vector.broadcast %24 : vector<1x1x8xf32> to vector<4x8x8xf32>
    %26 = arith.addf %17, %25 : vector<4x8x8xf32>
    %cst_19 = arith.constant dense<0xFF800000> : vector<4x8xf32>
    %27 = vector.multi_reduction <maximumf>, %26, %cst_19 [2] : vector<4x8x8xf32> to vector<4x8xf32>
    %28 = vector.shape_cast %27 : vector<4x8xf32> to vector<4x8x1xf32>
    %29 = vector.broadcast %28 : vector<4x8x1xf32> to vector<4x8x8xf32>
    %30 = arith.subf %26, %29 : vector<4x8x8xf32>
    %31 = math.exp %30 : vector<4x8x8xf32>
    %cst_20 = arith.constant dense<0.000000e+00> : vector<4x8xf32>
    %32 = vector.multi_reduction <add>, %31, %cst_20 [2] : vector<4x8x8xf32> to vector<4x8xf32>
    %33 = vector.shape_cast %32 : vector<4x8xf32> to vector<4x8x1xf32>
    %34 = vector.broadcast %33 : vector<4x8x1xf32> to vector<4x8x8xf32>
    %35 = arith.divf %31, %34 : vector<4x8x8xf32>
    %36 = arith.truncf %35 : vector<4x8x8xf32> to vector<4x8x8xbf16>
    %c0_21 = arith.constant 0 : index
    %c0_22 = arith.constant 0 : index
    %c0_23 = arith.constant 0 : index
    %c0_24 = arith.constant 0 : index
    %37 = vector.load %arg22[%c0_21, %c0_22, %c0_23, %c0_24] : memref<1x4x8x8xbf16, #tpu.memory_space<vmem>>, vector<1x4x8x8xbf16>
    %38 = vector.shape_cast %37 : vector<1x4x8x8xbf16> to vector<4x8x8xbf16>
    %39 = vector.shape_cast %36 : vector<4x8x8xbf16> to vector<1x4x8x8xbf16>
    tpu.vector_store %arg22[%c0_21, %c0_22, %c0_23, %c0_24], %39 {strides = array<i32>} : memref<1x4x8x8xbf16, #tpu.memory_space<vmem>>, vector<1x4x8x8xbf16>,
    %40 = arith.truncf %35 : vector<4x8x8xf32> to vector<4x8x8xbf16>
    %c0_25 = arith.constant 0 : index
    %c0_26 = arith.constant 0 : index
    %c0_27 = arith.constant 0 : index
    %41 = vector.load %arg24[%c0_25, %c0_26, %c0_27] : memref<4x8x8xbf16, #tpu.memory_space<vmem>>, vector<4x8x8xbf16>
    "tpu.trace_start"() <{level = 10 : i32, message = "hqk,hkd->hqd"}> : () -> ()
    %cst_28 = arith.constant dense<0.000000e+00> : vector<4x8x8xf32>
    %42 = tpu.matmul %40, %41, %cst_28 {dimension_numbers = #tpu.dot_dimension_numbers<[2], [1], [1], [2], [0, 0, 0, 1, 1, 2], [0], [0]>} : vector<4x8x8xbf16>, vector<4x8x8xbf16>, vector<4x8x8xf32> -> vector<4x8x8xf32>
    "tpu.trace_stop"() : () -> ()
    %43 = arith.truncf %42 : vector<4x8x8xf32> to vector<4x8x8xbf16>
    %c0_29 = arith.constant 0 : index
    %c0_30 = arith.constant 0 : index
    %c0_31 = arith.constant 0 : index
    %44 = vector.load %arg11[%c0_29, %c0_30, %c0_31] : memref<4x8x32xbf16, #tpu.memory_space<vmem>>, vector<4x8x32xbf16>
    %cst_32 = arith.constant dense<0.000000e+00> : vector<4x8x32xf32>
    %45 = tpu.matmul %43, %44, %cst_32 {dimension_numbers = #tpu.dot_dimension_numbers<[2], [1], [1], [2], [0, 0, 0, 1, 1, 2], [0], [0]>} : vector<4x8x8xbf16>, vector<4x8x32xbf16>, vector<4x8x32xf32> -> vector<4x8x32xf32>
    %cst_33 = arith.constant dense<0.000000e+00> : vector<8x32xf32>
    %46 = vector.multi_reduction <add>, %45, %cst_33 [0] : vector<4x8x32xf32> to vector<8x32xf32>
    %c0_34 = arith.constant 0 : index
    %c0_35 = arith.constant 0 : index
    %47 = vector.load %arg12[%c0_34, %c0_35] : memref<1x32xf32, #tpu.memory_space<vmem>>, vector<1x32xf32>
    %48 = vector.broadcast %47 : vector<1x32xf32> to vector<8x32xf32>
    %49 = arith.addf %46, %48 : vector<8x32xf32>
    %50 = arith.addf %49, %1 : vector<8x32xf32>
    %cst_36 = arith.constant dense<0.000000e+00> : vector<8xf32>
    %51 = vector.multi_reduction <add>, %50, %cst_36 [1] : vector<8x32xf32> to vector<8xf32>
    %52 = vector.shape_cast %51 : vector<8xf32> to vector<8x1xf32>
    %cst_37 = arith.constant 3.200000e+01 : f32
    %53 = vector.broadcast %cst_37 : f32 to vector<8x1xf32>
    %54 = arith.divf %52, %53 : vector<8x1xf32>
    %55 = vector.broadcast %54 : vector<8x1xf32> to vector<8x32xf32>
    %56 = arith.subf %50, %55 : vector<8x32xf32>
    %57 = arith.mulf %56, %56 : vector<8x32xf32>
    %cst_38 = arith.constant dense<0.000000e+00> : vector<8xf32>
    %58 = vector.multi_reduction <add>, %57, %cst_38 [1] : vector<8x32xf32> to vector<8xf32>
    %59 = vector.shape_cast %58 : vector<8xf32> to vector<8x1xf32>
    %cst_39 = arith.constant 3.200000e+01 : f32
    %60 = vector.broadcast %cst_39 : f32 to vector<8x1xf32>
    %61 = arith.divf %59, %60 : vector<8x1xf32>
    %62 = vector.broadcast %54 : vector<8x1xf32> to vector<8x32xf32>
    %63 = arith.subf %50, %62 : vector<8x32xf32>
    %cst_40 = arith.constant 9.99999974E-6 : f32
    %64 = vector.broadcast %cst_40 : f32 to vector<8x1xf32>
    %65 = arith.addf %61, %64 : vector<8x1xf32>
    %66 = math.rsqrt %65 : vector<8x1xf32>
    %67 = vector.broadcast %66 : vector<8x1xf32> to vector<8x32xf32>
    %68 = arith.mulf %63, %67 : vector<8x32xf32>
    %c0_41 = arith.constant 0 : index
    %c0_42 = arith.constant 0 : index
    %69 = vector.load %arg13[%c0_41, %c0_42] : memref<1x32xf32, #tpu.memory_space<vmem>>, vector<1x32xf32>
    %70 = vector.broadcast %69 : vector<1x32xf32> to vector<8x32xf32>
    %71 = arith.mulf %68, %70 : vector<8x32xf32>
    %c0_43 = arith.constant 0 : index
    %c0_44 = arith.constant 0 : index
    %72 = vector.load %arg14[%c0_43, %c0_44] : memref<1x32xf32, #tpu.memory_space<vmem>>, vector<1x32xf32>
    %73 = vector.broadcast %72 : vector<1x32xf32> to vector<8x32xf32>
    %74 = arith.addf %71, %73 : vector<8x32xf32>
    %75 = arith.truncf %74 : vector<8x32xf32> to vector<8x32xbf16>
    %c0_45 = arith.constant 0 : index
    %c0_46 = arith.constant 0 : index
    %76 = vector.load %arg15[%c0_45, %c0_46] : memref<32x64xbf16, #tpu.memory_space<vmem>>, vector<32x64xbf16>
    %cst_47 = arith.constant dense<0.000000e+00> : vector<8x64xf32>
    %77 = tpu.matmul %75, %76, %cst_47 {dimension_numbers = #tpu.dot_dimension_numbers<[1], [0], [0], [1], [0, 0, 1, 1], [], []>} : vector<8x32xbf16>, vector<32x64xbf16>, vector<8x64xf32> -> vector<8x64xf32>
    %c0_48 = arith.constant 0 : index
    %c0_49 = arith.constant 0 : index
    %78 = vector.load %arg16[%c0_48, %c0_49] : memref<1x64xf32, #tpu.memory_space<vmem>>, vector<1x64xf32>
    %79 = vector.broadcast %78 : vector<1x64xf32> to vector<8x64xf32>
    %80 = arith.addf %77, %79 : vector<8x64xf32>
    %cst_50 = arith.constant 0.000000e+00 : f32
    %81 = vector.broadcast %cst_50 : f32 to vector<8x64xf32>
    %82 = arith.maximumf %80, %81 : vector<8x64xf32>
    %83 = arith.truncf %82 : vector<8x64xf32> to vector<8x64xbf16>
    %c0_51 = arith.constant 0 : index
    %c0_52 = arith.constant 0 : index
    %84 = vector.load %arg17[%c0_51, %c0_52] : memref<64x32xbf16, #tpu.memory_space<vmem>>, vector<64x32xbf16>
    %cst_53 = arith.constant dense<0.000000e+00> : vector<8x32xf32>
    %85 = tpu.matmul %83, %84, %cst_53 {dimension_numbers = #tpu.dot_dimension_numbers<[1], [0], [0], [1], [0, 0, 1, 1], [], []>} : vector<8x64xbf16>, vector<64x32xbf16>, vector<8x32xf32> -> vector<8x32xf32>
    %c0_54 = arith.constant 0 : index
    %c0_55 = arith.constant 0 : index
    %86 = vector.load %arg18[%c0_54, %c0_55] : memref<1x32xf32, #tpu.memory_space<vmem>>, vector<1x32xf32>
    %87 = vector.broadcast %86 : vector<1x32xf32> to vector<8x32xf32>
    %88 = arith.addf %85, %87 : vector<8x32xf32>
    %89 = arith.addf %88, %74 : vector<8x32xf32>
    %cst_56 = arith.constant dense<0.000000e+00> : vector<8xf32>
    %90 = vector.multi_reduction <add>, %89, %cst_56 [1] : vector<8x32xf32> to vector<8xf32>
    %91 = vector.shape_cast %90 : vector<8xf32> to vector<8x1xf32>
    %cst_57 = arith.constant 3.200000e+01 : f32
    %92 = vector.broadcast %cst_57 : f32 to vector<8x1xf32>
    %93 = arith.divf %91, %92 : vector<8x1xf32>
    %94 = vector.broadcast %93 : vector<8x1xf32> to vector<8x32xf32>
    %95 = arith.subf %89, %94 : vector<8x32xf32>
    %96 = arith.mulf %95, %95 : vector<8x32xf32>
    %cst_58 = arith.constant dense<0.000000e+00> : vector<8xf32>
    %97 = vector.multi_reduction <add>, %96, %cst_58 [1] : vector<8x32xf32> to vector<8xf32>
    %98 = vector.shape_cast %97 : vector<8xf32> to vector<8x1xf32>
    %cst_59 = arith.constant 3.200000e+01 : f32
    %99 = vector.broadcast %cst_59 : f32 to vector<8x1xf32>
    %100 = arith.divf %98, %99 : vector<8x1xf32>
    %101 = vector.broadcast %93 : vector<8x1xf32> to vector<8x32xf32>
    %102 = arith.subf %89, %101 : vector<8x32xf32>
    %cst_60 = arith.constant 9.99999974E-6 : f32
    %103 = vector.broadcast %cst_60 : f32 to vector<8x1xf32>
    %104 = arith.addf %100, %103 : vector<8x1xf32>
    %105 = math.rsqrt %104 : vector<8x1xf32>
    %106 = vector.broadcast %105 : vector<8x1xf32> to vector<8x32xf32>
    %107 = arith.mulf %102, %106 : vector<8x32xf32>
    %c0_61 = arith.constant 0 : index
    %c0_62 = arith.constant 0 : index
    %108 = vector.load %arg19[%c0_61, %c0_62] : memref<1x32xf32, #tpu.memory_space<vmem>>, vector<1x32xf32>
    %109 = vector.broadcast %108 : vector<1x32xf32> to vector<8x32xf32>
    %110 = arith.mulf %107, %109 : vector<8x32xf32>
    %c0_63 = arith.constant 0 : index
    %c0_64 = arith.constant 0 : index
    %111 = vector.load %arg20[%c0_63, %c0_64] : memref<1x32xf32, #tpu.memory_space<vmem>>, vector<1x32xf32>
    %112 = vector.broadcast %111 : vector<1x32xf32> to vector<8x32xf32>
    %113 = arith.addf %110, %112 : vector<8x32xf32>
    %c0_65 = arith.constant 0 : index
    %c0_66 = arith.constant 0 : index
    %c0_67 = arith.constant 0 : index
    %114 = vector.load %arg21[%c0_65, %c0_66, %c0_67] : memref<1x8x32xf32, #tpu.memory_space<vmem>>, vector<1x8x32xf32>
    %115 = vector.shape_cast %114 : vector<1x8x32xf32> to vector<8x32xf32>
    %116 = vector.shape_cast %113 : vector<8x32xf32> to vector<1x8x32xf32>
    tpu.vector_store %arg21[%c0_65, %c0_66, %c0_67], %116 {strides = array<i32>} : memref<1x8x32xf32, #tpu.memory_space<vmem>>, vector<1x8x32xf32>,
    return
  }
  func.func @transform_0(%arg0: i32, %arg1: i32) -> (i32, i32, i32) {
    %c0_i32 = arith.constant 0 : i32
    %c0_i32_0 = arith.constant 0 : i32
    return %arg0, %arg1, %c0_i32 : i32, i32, i32
  }
  func.func @transform_1(%arg0: i32, %arg1: i32) -> (i32, i32, i32) {
    %c0_i32 = arith.constant 0 : i32
    %c0_i32_0 = arith.constant 0 : i32
    %c0_i32_1 = arith.constant 0 : i32
    return %arg0, %c0_i32, %c0_i32_0 : i32, i32, i32
  }
  func.func @transform_2(%arg0: i32, %arg1: i32) -> (i32, i32, i32, i32) {
    %c0_i32 = arith.constant 0 : i32
    %c0_i32_0 = arith.constant 0 : i32
    %c0_i32_1 = arith.constant 0 : i32
    %c0_i32_2 = arith.constant 0 : i32
    return %arg0, %c0_i32, %c0_i32_0, %c0_i32_1 : i32, i32, i32, i32
  }
  func.func @transform_3(%arg0: i32, %arg1: i32) -> (i32, i32) {
    %c0_i32 = arith.constant 0 : i32
    %c0_i32_0 = arith.constant 0 : i32
    %c0_i32_1 = arith.constant 0 : i32
    return %c0_i32, %c0_i32_0 : i32, i32
  }
  func.func @transform_4(%arg0: i32, %arg1: i32) -> (i32, i32) {
    %c0_i32 = arith.constant 0 : i32
    %c0_i32_0 = arith.constant 0 : i32
    %c0_i32_1 = arith.constant 0 : i32
    return %c0_i32, %c0_i32_0 : i32, i32
  }
  func.func @transform_5(%arg0: i32, %arg1: i32) -> (i32, i32) {
    %c0_i32 = arith.constant 0 : i32
    %c0_i32_0 = arith.constant 0 : i32
    %c0_i32_1 = arith.constant 0 : i32
    return %c0_i32, %c0_i32_0 : i32, i32
  }
  func.func @transform_6(%arg0: i32, %arg1: i32) -> (i32, i32) {
    %c0_i32 = arith.constant 0 : i32
    %c0_i32_0 = arith.constant 0 : i32
    %c0_i32_1 = arith.constant 0 : i32
    return %c0_i32, %c0_i32_0 : i32, i32
  }
  func.func @transform_7(%arg0: i32, %arg1: i32) -> (i32, i32) {
    %c0_i32 = arith.constant 0 : i32
    %c0_i32_0 = arith.constant 0 : i32
    %c0_i32_1 = arith.constant 0 : i32
    return %c0_i32, %c0_i32_0 : i32, i32
  }
  func.func @transform_8(%arg0: i32, %arg1: i32) -> (i32, i32) {
    %c0_i32 = arith.constant 0 : i32
    %c0_i32_0 = arith.constant 0 : i32
    %c0_i32_1 = arith.constant 0 : i32
    return %c0_i32, %c0_i32_0 : i32, i32
  }
  func.func @transform_9(%arg0: i32, %arg1: i32) -> (i32, i32, i32) {
    %c0_i32 = arith.constant 0 : i32
    %c0_i32_0 = arith.constant 0 : i32
    %c0_i32_1 = arith.constant 0 : i32
    %c0_i32_2 = arith.constant 0 : i32
    return %c0_i32, %c0_i32_0, %c0_i32_1 : i32, i32, i32
  }
  func.func @transform_10(%arg0: i32, %arg1: i32) -> (i32, i32) {
    %c0_i32 = arith.constant 0 : i32
    %c0_i32_0 = arith.constant 0 : i32
    %c0_i32_1 = arith.constant 0 : i32
    return %c0_i32, %c0_i32_0 : i32, i32
  }
  func.func @transform_11(%arg0: i32, %arg1: i32) -> (i32, i32) {
    %c0_i32 = arith.constant 0 : i32
    %c0_i32_0 = arith.constant 0 : i32
    %c0_i32_1 = arith.constant 0 : i32
    return %c0_i32, %c0_i32_0 : i32, i32
  }
  func.func @transform_12(%arg0: i32, %arg1: i32) -> (i32, i32) {
    %c0_i32 = arith.constant 0 : i32
    %c0_i32_0 = arith.constant 0 : i32
    %c0_i32_1 = arith.constant 0 : i32
    return %c0_i32, %c0_i32_0 : i32, i32
  }
  func.func @transform_13(%arg0: i32, %arg1: i32) -> (i32, i32) {
    %c0_i32 = arith.constant 0 : i32
    %c0_i32_0 = arith.constant 0 : i32
    %c0_i32_1 = arith.constant 0 : i32
    return %c0_i32, %c0_i32_0 : i32, i32
  }
  func.func @transform_14(%arg0: i32, %arg1: i32) -> (i32, i32) {
    %c0_i32 = arith.constant 0 : i32
    %c0_i32_0 = arith.constant 0 : i32
    %c0_i32_1 = arith.constant 0 : i32
    return %c0_i32, %c0_i32_0 : i32, i32
  }
  func.func @transform_15(%arg0: i32, %arg1: i32) -> (i32, i32) {
    %c0_i32 = arith.constant 0 : i32
    %c0_i32_0 = arith.constant 0 : i32
    %c0_i32_1 = arith.constant 0 : i32
    return %c0_i32, %c0_i32_0 : i32, i32
  }
  func.func @transform_16(%arg0: i32, %arg1: i32) -> (i32, i32) {
    %c0_i32 = arith.constant 0 : i32
    %c0_i32_0 = arith.constant 0 : i32
    %c0_i32_1 = arith.constant 0 : i32
    return %c0_i32, %c0_i32_0 : i32, i32
  }
  func.func @transform_17(%arg0: i32, %arg1: i32) -> (i32, i32) {
    %c0_i32 = arith.constant 0 : i32
    %c0_i32_0 = arith.constant 0 : i32
    %c0_i32_1 = arith.constant 0 : i32
    return %c0_i32, %c0_i32_0 : i32, i32
  }
  func.func @transform_18(%arg0: i32, %arg1: i32) -> (i32, i32) {
    %c0_i32 = arith.constant 0 : i32
    %c0_i32_0 = arith.constant 0 : i32
    %c0_i32_1 = arith.constant 0 : i32
    return %c0_i32, %c0_i32_0 : i32, i32
  }
  func.func @transform_19(%arg0: i32, %arg1: i32) -> (i32, i32, i32) {
    %c0_i32 = arith.constant 0 : i32
    %c0_i32_0 = arith.constant 0 : i32
    return %arg0, %arg1, %c0_i32 : i32, i32, i32
  }
  func.func @transform_20(%arg0: i32, %arg1: i32) -> (i32, i32, i32, i32) {
    %c0_i32 = arith.constant 0 : i32
    %c0_i32_0 = arith.constant 0 : i32
    %c0_i32_1 = arith.constant 0 : i32
    return %arg0, %c0_i32, %arg1, %c0_i32_0 : i32, i32, i32, i32
  }
}

</mosaic_0001>

<bundles_post_ra>
// kernel: tpu_custom_call.1
= control target key start
LH: loop header
LB: loop body
LE: loop exit
PB: predicated region body
PF: predicated region fallthrough
CT: control target
= control target key end

     0   :  { %s4136_s0 = inlined_call_operand.vmem [shape: f32[2,8,32], index: 0, kind: input, shape index: {}]   ;;  %s4137_s1 = inlined_call_operand.vmem [shape: f32[2,8,32], index: 1, kind: input, shape index: {}]   ;;  %s4138_s2 = inlined_call_operand.hbm [shape: f32[2,1,1,8], index: 2, kind: input, shape index: {}]   ;;  %s4139_s3 = inlined_call_operand.vmem [shape: bf16[32,32], index: 3, kind: input, shape index: {}]   ;;  %s4140_s4 = inlined_call_operand.vmem [shape: f32[1,32], index: 4, kind: input, shape index: {}]   ;;  %s4141_s5 = inlined_call_operand.hbm [shape: bf16[32,32], index: 5, kind: input, shape index: {}]   ;;  %s4142_s6 = inlined_call_operand.hbm [shape: f32[1,32], index: 6, kind: input, shape index: {}]   ;;  %s4143_s7 = inlined_call_operand.hbm [shape: bf16[32,32], index: 7, kind: input, shape index: {}]   ;;  %s4144_s8 = inlined_call_operand.hbm [shape: f32[1,32], index: 8, kind: input, shape index: {}]   ;;  %s4145_s9 = inlined_call_operand.vmem [shape: bf16[4,8,32], index: 9, kind: input, shape index: {}]   ;;  %s4146_s10 = inlined_call_operand.hbm [shape: f32[1,32], index: 10, kind: input, shape index: {}]   ;;  %s4147_s11 = inlined_call_operand.hbm [shape: f32[1,32], index: 11, kind: input, shape index: {}]   ;;  %s4148_s12 = inlined_call_operand.hbm [shape: f32[1,32], index: 12, kind: input, shape index: {}]   ;;  %s4149_s13 = inlined_call_operand.vmem [shape: bf16[32,64], index: 13, kind: input, shape index: {}]   ;;  %s4150_s14 = inlined_call_operand.vmem [shape: f32[1,64], index: 14, kind: input, shape index: {}]   ;;  %s4151_s15 = inlined_call_operand.vmem [shape: bf16[64,32], index: 15, kind: input, shape index: {}]   ;;  %s4152_s16 = inlined_call_operand.vmem [shape: f32[1,32], index: 16, kind: input, shape index: {}]   ;;  %s4153_s17 = inlined_call_operand.vmem [shape: f32[1,32], index: 17, kind: input, shape index: {}]   ;;  %s4154_s18 = inlined_call_operand.vmem [shape: f32[1,32], index: 18, kind: input, shape index: {}]   ;;  %s4155_s19 = inlined_call_operand.hbm [shape: f32[2,8,32], index: 19, kind: output, shape index: {0}]   ;;  %s4156_s20 = inlined_call_operand.hbm [shape: bf16[2,4,8,8], index: 20, kind: output, shape index: {1}]  }
   0x1   :  { %4171 = sst [smem:[#allocation28_spill]] %s4136_s0 }
   0x2   :  { %4172 = sst [smem:[#allocation29_spill]] %s4137_s1 }
   0x3   :  { %4173 = sst [smem:[#allocation30_spill]] %s4138_s2 }
   0x4   :  { %4174 = sst [smem:[#allocation31_spill]] %s4139_s3 }
   0x5   :  { %4175 = sst [smem:[#allocation32_spill]] %s4140_s4 }
   0x6   :  { %4176 = sst [smem:[#allocation33_spill]] %s4141_s5 }
   0x7   :  { %4177 = sst [smem:[#allocation34_spill]] %s4142_s6 }
   0x8   :  { %4178 = sst [smem:[#allocation35_spill]] %s4143_s7 }
   0x9   :  { %4179 = sst [smem:[#allocation36_spill]] %s4144_s8 }
   0xa   :  { %4180 = sst [smem:[#allocation37_spill]] %s4145_s9 }
   0xb   :  { %4181 = sst [smem:[#allocation38_spill]] %s4146_s10 }
   0xc   :  { %4182 = sst [smem:[#allocation39_spill]] %s4149_s13 }
   0xd   :  { %4183 = sst [smem:[#allocation40_spill]] %s4150_s14 }
   0xe   :  { %4184 = sst [smem:[#allocation41_spill]] %s4151_s15 }
   0xf   :  { %4185 = sst [smem:[#allocation42_spill]] %s4152_s16 }
  0x10   :  { %4186 = sst [smem:[#allocation43_spill]] %s4153_s17 }
  0x11   :  { %4187 = sst [smem:[#allocation44_spill]] %s4154_s18 }
  0x12   :  { %4188 = sst [smem:[#allocation45_spill]] %s4155_s19 }
  0x13   :  { %4189 = sst [smem:[#allocation46_spill]] %s4156_s20 }
  0x14   :  { %26 = vsyncpa [#allocation5], 0 }
  0x15   :  { %28 = vsyncpa [#allocation5 + $0x1], 0 }
  0x16   :  { %29 = vsyncpa [#allocation8], 0 }
  0x17   :  { %30 = vsyncpa [#allocation11], 0 }
  0x18   :  { %31 = vsyncpa [#allocation14], 0 }
  0x19   :  { %32 = vsyncpa [#allocation17], 0 }
  0x1a   :  { %33 = vsyncpa [#allocation6], 0 }
  0x1b   :  { %35 = vsyncpa [#allocation6 + $0x1], 0 }
  0x1c   :  { %36 = vsyncpa [#allocation20], 0 }
  0x1d   :  { %38 = vsyncpa [#allocation20 + $0x1], 0  ;;  %s3475_s1 = smov 0   ;;  %s3477_s22 = smov 0  }
  0x1e   :  { %s3479_s23 = smov 0   ;;  %s3481_s24 = smov 0  }
  0x1f   :  { %s3483_s2 = smov 0   ;;  %s3485_s25 = smov 0  }
  0x20 LB: > { %s4159_s3 = sadd.s32 4294967295, %s3346_s25   ;;  %p2576_p0 = scmp.ge.s32.totalorder %s3346_s25, 1  ;;  %s3346_s25 = sphi %s3485_s25, %s44_s25   ;;  %s3342_s2 = sphi %s3483_s2, %s4231_s2   ;;  %s3338_s24 = sphi %s3481_s24, %s4230_s24   ;;  %s3334_s23 = sphi %s3479_s23, %s4229_s23   ;;  %s3330_s22 = sphi %s3477_s22, %s4228_s22   ;;  %s3326_s1 = sphi %s3475_s1, %s4227_s1  }
  0x21   : > { %p3509_p1 = scmp.eq.s32.totalorder %s4159_s3, 0  ;;  %p533_p2 = scmp.lt.s32.totalorder %s3346_s25, 3 }
  0x22   : > { %s3348_s28 = smov [#allocation7]   ;;  %s3349_s30 = smov [#allocation10]  }
  0x23   : > { %s4190_s26 = scalar_select %p3509_p1, 1, 0 }
  0x24   : > { %p3514_p3 = pnand %p2576_p0, %p533_p2  ;;  %s551_s4 = sshll.u32 %s3348_s28, 4  ;;  %s3518_s4 = int_to_ptr.vmem [resolvable:$true] %s551_s4 }
  0x25   : > { %s575_s0 = sshll.u32 %s3349_s30, 4  ;;  %s3350_s21 = smov [#allocation13]   ;;  %s3529_s0 = int_to_ptr.vmem [resolvable:$true] %s575_s0 }
  0x26   : > { %s4191_s27 = scalar_select %p3514_p3, 1, 0 }
  0x27   : > { %p2842_p4 = pneg %p3514_p3  ;;  %s3531_s3 = sshll.u32 %s3350_s21, 4  ;;  %s604_s3 = int_to_ptr.vmem [resolvable:$true] %s3531_s3 }
  0x28   : > { %s4193_s5 = sld [smem:[#allocation33_spill]] }
  0x29   : > { %p3525_p6 = pnand %p2842_p4, %p3509_p1 }
  0x2b   : > { %p3541_p8 = pneg %p3525_p6 }
  0x2e   : > { %s2990_s18 = scalar_lea.hbm %s4193_s5, 256 }
  0x2f   : > { %p2991_p7 = scmp.ne.s32.totalorder %s4193_s5, %s2990_s18  ;;  %p2997_p11 = scmp.lt.u32.totalorder %s2990_s18, %s4193_s5 }
  0x31   : > { %p2993_p9 = pnand %p3541_p8, %p2991_p7 }
  0x33   : > { %p2994_p10 = pneg %p2993_p9 }
  0x35   : > { %p2999_p12 = pnand %p2997_p11, %p2994_p10 }
  0x37   : > { %3002 = shalt.err (!%p2999_p12)
}
  0x38   : > { %s3003_s17 = scalar_lea.vmem %s3518_s4, 256  ;;  %p3011_p4 = scmp.lt.s32.totalorder %s3518_s4, %s3518_s4 }
  0x39   : > { %p3004_p13 = scmp.ne.s32.totalorder %s3518_s4, %s3003_s17  ;;  %p3012_p5 = scmp.lt.s32.totalorder %s3003_s17, %s3003_s17 }
  0x3b   : > { %p3006_p0 = pnand %p3004_p13, %p3541_p8  ;;  %p3013_p7 = por %p3012_p5, %p3011_p4 }
  0x3d   : > { %p3007_p2 = pneg %p3006_p0 }
  0x3f   : > { %p3014_p9 = pnand %p3013_p7, %p3007_p2 }
  0x41   : > { %3017 = shalt.err (!%p3014_p9)
}
  0x42   : > { %s3351_s19 = smov 64   ;;  %s3352_s18 = smov 4  }
  0x43   : > { %2845 = dma.hbm_to_vmem [thread:$0]  (!%p3525_p6), %s4193_s5, 256, %s3518_s4, [#allocation8], %s3351_s19, %s3351_s19, %s3352_s18  }
  0x44   : > { %s4195_s7 = sld [smem:[#allocation35_spill]] }
  0x4a   : > { %s3018_s14 = scalar_lea.hbm %s4195_s7, 256 }
  0x4b   : > { %p3019_p5 = scmp.ne.s32.totalorder %s4195_s7, %s3018_s14  ;;  %p3025_p12 = scmp.lt.u32.totalorder %s3018_s14, %s4195_s7 }
  0x4d   : > { %p3021_p10 = pnand %p3019_p5, %p3541_p8 }
  0x4f   : > { %p3022_p11 = pneg %p3021_p10 }
  0x51   : > { %p3027_p13 = pnand %p3025_p12, %p3022_p11 }
  0x53   : > { %3030 = shalt.err (!%p3027_p13)
}
  0x54   : > { %s3031_s4 = scalar_lea.vmem %s3529_s0, 256  ;;  %p3039_p7 = scmp.lt.s32.totalorder %s3529_s0, %s3529_s0 }
  0x55   : > { %p3032_p0 = scmp.ne.s32.totalorder %s3529_s0, %s3031_s4  ;;  %p3040_p9 = scmp.lt.s32.totalorder %s3031_s4, %s3031_s4 }
  0x57   : > { %p3034_p2 = pnand %p3032_p0, %p3541_p8  ;;  %p3041_p5 = por %p3040_p9, %p3039_p7 }
  0x59   : > { %p3035_p4 = pneg %p3034_p2 }
  0x5b   : > { %p3042_p10 = pnand %p3041_p5, %p3035_p4 }
  0x5d   : > { %3045 = shalt.err (!%p3042_p10)
}
  0x5e   : > { %2851 = dma.hbm_to_vmem [thread:$0]  (!%p3525_p6), %s4195_s7, 256, %s3529_s0, [#allocation11], %s3351_s19, %s3351_s19, %s3352_s18  }
  0x5f   : > { %s4196_s10 = sld [smem:[#allocation38_spill]] }
  0x65   : > { %s3046_s20 = scalar_lea.hbm %s4196_s10, 16 }
  0x66   : > { %p3047_p11 = scmp.ne.s32.totalorder %s4196_s10, %s3046_s20  ;;  %p3053_p0 = scmp.lt.u32.totalorder %s3046_s20, %s4196_s10 }
  0x68   : > { %p3049_p12 = pnand %p3047_p11, %p3541_p8 }
  0x6a   : > { %p3050_p13 = pneg %p3049_p12 }
  0x6c   : > { %p3055_p2 = pnand %p3053_p0, %p3050_p13 }
  0x6e   : > { %3058 = shalt.err (!%p3055_p2)
}
  0x6f   : > { %s3059_s4 = scalar_lea.vmem %s604_s3, 16  ;;  %s3066_s0 = scalar_lea.vmem %s604_s3, 32 }
  0x70   : > { %p3060_p4 = scmp.ne.s32.totalorder %s604_s3, %s3059_s4  ;;  %p3067_p5 = scmp.lt.s32.totalorder %s604_s3, %s604_s3 }
  0x71   : > { %p3068_p10 = scmp.lt.s32.totalorder %s3066_s0, %s3059_s4 }
  0x72   : > { %p3062_p7 = pnand %p3060_p4, %p3541_p8 }
  0x73   : > { %p3069_p3 = por %p3068_p10, %p3067_p5 }
  0x74   : > { %p3063_p9 = pneg %p3062_p7 }
  0x76   : > { %p3070_p1 = pnand %p3069_p3, %p3063_p9 }
  0x78   : > { %3073 = shalt.err (!%p3070_p1)
}
  0x79   : > { %2857 = dma.hbm_to_vmem [thread:$0]  (!%p3525_p6), %s4196_s10, 16, %s604_s3, [#allocation14]  }
  0x7a   : > { %s3353_s9 = smov [#allocation9]   ;;  %s3354_s14 = smov [#allocation12]  }
  0x7b   : > { %s565_s13 = sshll.u32 %s3353_s9, 4  ;;  %s589_s15 = sshll.u32 %s3354_s14, 4  ;;  %s566_s13 = int_to_ptr.vmem [resolvable:$true] %s565_s13  ;;  %s590_s15 = int_to_ptr.vmem [resolvable:$true] %s589_s15 }
  0x7c   : > { %s4197_s6 = sld [smem:[#allocation34_spill]] }
  0x82   : > { %s3074_s30 = scalar_lea.hbm %s4197_s6, 16 }
  0x83   : > { %p3075_p1 = scmp.ne.s32.totalorder %s4197_s6, %s3074_s30  ;;  %p3081_p12 = scmp.lt.u32.totalorder %s3074_s30, %s4197_s6 }
  0x85   : > { %p3077_p3 = pnand %p3075_p1, %p3541_p8 }
  0x87   : > { %p3078_p11 = pneg %p3077_p3 }
  0x89   : > { %p3083_p13 = pnand %p3081_p12, %p3078_p11 }
  0x8b   : > { %3086 = shalt.err (!%p3083_p13)
}
  0x8c   : > { %s3087_s3 = scalar_lea.vmem %s566_s13, 16  ;;  %s3094_s19 = scalar_lea.vmem %s566_s13, 32 }
  0x8d   : > { %p3088_p0 = scmp.ne.s32.totalorder %s566_s13, %s3087_s3  ;;  %p3095_p7 = scmp.lt.s32.totalorder %s566_s13, %s566_s13 }
  0x8e   : > { %p3096_p9 = scmp.lt.s32.totalorder %s3094_s19, %s3087_s3 }
  0x8f   : > { %p3090_p2 = pnand %p3088_p0, %p3541_p8 }
  0x90   : > { %p3097_p5 = por %p3096_p9, %p3095_p7 }
  0x91   : > { %p3091_p4 = pneg %p3090_p2 }
  0x93   : > { %p3098_p10 = pnand %p3097_p5, %p3091_p4 }
  0x95   : > { %3101 = shalt.err (!%p3098_p10)
}
  0x96   : > { %2848 = dma.hbm_to_vmem [thread:$0]  (!%p3525_p6), %s4197_s6, 16, %s566_s13, [#allocation8]  }
  0x97   : > { %s4198_s8 = sld [smem:[#allocation36_spill]] }
  0x9d   : > { %s3102_s28 = scalar_lea.hbm %s4198_s8, 16 }
  0x9e   : > { %p3103_p1 = scmp.ne.s32.totalorder %s4198_s8, %s3102_s28  ;;  %p3109_p12 = scmp.lt.u32.totalorder %s3102_s28, %s4198_s8 }
  0xa0   : > { %p3105_p3 = pnand %p3103_p1, %p3541_p8 }
  0xa2   : > { %p3106_p11 = pneg %p3105_p3 }
  0xa4   : > { %p3111_p13 = pnand %p3109_p12, %p3106_p11 }
  0xa6   : > { %3114 = shalt.err (!%p3111_p13)
}
  0xa7   : > { %s3115_s0 = scalar_lea.vmem %s590_s15, 16  ;;  %s3122_s13 = scalar_lea.vmem %s590_s15, 32 }
  0xa8   : > { %p3116_p0 = scmp.ne.s32.totalorder %s590_s15, %s3115_s0  ;;  %p3123_p7 = scmp.lt.s32.totalorder %s590_s15, %s590_s15 }
  0xa9   : > { %p3124_p9 = scmp.lt.s32.totalorder %s3122_s13, %s3115_s0 }
  0xaa   : > { %p3118_p2 = pnand %p3116_p0, %p3541_p8 }
  0xab   : > { %p3125_p5 = por %p3124_p9, %p3123_p7 }
  0xac   : > { %p3119_p4 = pneg %p3118_p2 }
  0xae   : > { %p3126_p10 = pnand %p3125_p5, %p3119_p4 }
  0xb0   : > { %3129 = shalt.err (!%p3126_p10)
}
  0xb1   : > { %2854 = dma.hbm_to_vmem [thread:$0]  (!%p3525_p6), %s4198_s8, 16, %s590_s15, [#allocation11]  }
  0xb2   : > { %s3355_s18 = smov [#allocation15]   ;;  %s3356_s14 = smov [#allocation16]  }
  0xb3   : > { %s614_s9 = sshll.u32 %s3355_s18, 4  ;;  %s625_s20 = sshll.u32 %s3356_s14, 4  ;;  %s615_s9 = int_to_ptr.vmem [resolvable:$true] %s614_s9  ;;  %s626_s20 = int_to_ptr.vmem [resolvable:$true] %s625_s20 }
  0xb4   : > { %s3130_s21 = scalar_lea.hbm %s4147_s11, 16 }
  0xb5   : > { %p3131_p1 = scmp.ne.s32.totalorder %s4147_s11, %s3130_s21  ;;  %p3137_p12 = scmp.lt.u32.totalorder %s3130_s21, %s4147_s11 }
  0xb7   : > { %p3133_p3 = pnand %p3131_p1, %p3541_p8 }
  0xb9   : > { %p3134_p11 = pneg %p3133_p3 }
  0xbb   : > { %p3139_p13 = pnand %p3137_p12, %p3134_p11 }
  0xbd   : > { %3142 = shalt.err (!%p3139_p13)
}
  0xbe   : > { %s3143_s15 = scalar_lea.vmem %s615_s9, 16  ;;  %s3150_s3 = scalar_lea.vmem %s615_s9, 32 }
  0xbf   : > { %p3144_p0 = scmp.ne.s32.totalorder %s615_s9, %s3143_s15  ;;  %p3151_p7 = scmp.lt.s32.totalorder %s615_s9, %s615_s9 }
  0xc0   : > { %p3152_p9 = scmp.lt.s32.totalorder %s3150_s3, %s3143_s15 }
  0xc1   : > { %p3146_p2 = pnand %p3144_p0, %p3541_p8 }
  0xc2   : > { %p3153_p5 = por %p3152_p9, %p3151_p7 }
  0xc3   : > { %p3147_p4 = pneg %p3146_p2 }
  0xc5   : > { %p3154_p10 = pnand %p3153_p5, %p3147_p4 }
  0xc7   : > { %3157 = shalt.err (!%p3154_p10)
}
  0xc8   : > { %2860 = dma.hbm_to_vmem [thread:$0]  (!%p3525_p6), %s4147_s11, 16, %s615_s9, [#allocation14]  }
  0xc9   : > { %s3158_s30 = scalar_lea.hbm %s4148_s12, 16 }
  0xca   : > { %p3159_p1 = scmp.ne.s32.totalorder %s4148_s12, %s3158_s30  ;;  %p3165_p12 = scmp.lt.u32.totalorder %s3158_s30, %s4148_s12 }
  0xcc   : > { %p3161_p3 = pnand %p3159_p1, %p3541_p8 }
  0xce   : > { %p3162_p11 = pneg %p3161_p3 }
  0xd0   : > { %p3167_p13 = pnand %p3165_p12, %p3162_p11 }
  0xd2   : > { %3170 = shalt.err (!%p3167_p13)
}
  0xd3   : > { %s3171_s13 = scalar_lea.vmem %s626_s20, 16  ;;  %s3178_s9 = scalar_lea.vmem %s626_s20, 32 }
  0xd4   : > { %p3172_p0 = scmp.ne.s32.totalorder %s626_s20, %s3171_s13  ;;  %p3179_p7 = scmp.lt.s32.totalorder %s626_s20, %s626_s20 }
  0xd5   : > { %p3180_p9 = scmp.lt.s32.totalorder %s3178_s9, %s3171_s13 }
  0xd6   : > { %p3174_p2 = pnand %p3172_p0, %p3541_p8 }
  0xd7   : > { %p3181_p5 = por %p3180_p9, %p3179_p7 }
  0xd8   : > { %p3175_p4 = pneg %p3174_p2 }
  0xda   : > { %p3182_p10 = pnand %p3181_p5, %p3175_p4 }
  0xdc   : > { %3185 = shalt.err (!%p3182_p10)
}
  0xdd   : > { %2863 = dma.hbm_to_vmem [thread:$0]  (!%p3525_p6), %s4148_s12, 16, %s626_s20, [#allocation17]  }
  0xde   : > { %s2575_s16 = sadd.s32 4294967294, %s3346_s25   ;;  %s56_s19 = sadd.s32 1, %s3342_s2 }
  0xdf   : > { %s117_s29 = sadd.s32 1, %s3334_s23  ;;  %p58_p8 = scmp.ge.s32.totalorder %s56_s19, 2 }
  0xe0   : > { %p124_p1 = scmp.ne.s32.totalorder %s3334_s23, %s3330_s22  ;;  %p125_p3 = scmp.eq.s32.totalorder %s3346_s25, 0 }
  0xe1   : > { %p130_p11 = scmp.ne.s32.totalorder %s3330_s22, %s3326_s1  ;;  %s4233_s19 = smov (%p58_p8, %s56_s19), 0 }
  0xe2   : > { %p3686_p12 = por %p125_p3, %p124_p1  ;;  %p4200_p13 = scmp.ne.s32.totalorder %s4190_s26, 0 }
  0xe3   : > { %s114_s14 = ssub.s32 %s3342_s2, %s4233_s19  ;;  %s4202_s28 = sadd.s32 4294967295, %s3346_s25  }
  0xe4   : > { %p3692_p6 = por %p4200_p13, %p130_p11  ;;  %p492_p0 = scmp.eq.s32.totalorder %s4202_s28, 1 }
  0xe5   : > { %p115_p2 = scmp.eq.s32.totalorder %s114_s14, 0  ;;  %p498_p4 = scmp.eq.s32.totalorder %s2575_s16, 1 }
  0xe6   : > { %p3700_p7 = por %p492_p0, %p124_p1  ;;  %p2882_p9 = scmp.lt.s32.totalorder %s3346_s25, 2 }
  0xe7   : > { %s3706_s21 = scalar_select %p115_p2, %s3334_s23, %s117_s29  }
  0xe8   : > { %s4203_s30 = scalar_select %p3700_p7, 1, 0 }
  0xe9   : > { %p3708_p5 = por %p498_p4, %p130_p11  ;;  %s671_s4 = sand.u32 1, %s3334_s23  }
  0xea   : > { %s2585_s0 = sshll.u32 %s3342_s2, 4  ;;  %s674_s13 = scalar_lea.vmem [#allocation4], %s671_s4 }
  0xeb   : > { %s4204_s17 = scalar_select %p3708_p5, 1, 0 }
  0xec   : > { %s681_s9 = sshll.u32 %s674_s13, 4  ;;  %s4205_s28 = sld [smem:[#allocation30_spill]]  ;;  %s3719_s9 = int_to_ptr.vmem [resolvable:$true] %s681_s9 }
  0xed   : > { %p3723_p10 = pnand %p2882_p9, %p3686_p12  ;;  %s672_s29 = scalar_lea.sflag [#allocation5], %s671_s4 }
  0xef   : > { %p3188_p1 = pneg %p3723_p10 }
  0xf2   : > { %s3717_s14 = scalar_lea.hbm %s4205_s28, %s2585_s0  ;;  %s3191_s3 = scalar_lea.hbm %s4205_s28, 32 }
  0xf3   : > { %s3186_s13 = scalar_lea.hbm %s3717_s14, 16  ;;  %p3192_p12 = scmp.lt.u32.totalorder %s3717_s14, %s4205_s28 }
  0xf4   : > { %p3187_p8 = scmp.ne.s32.totalorder %s3717_s14, %s3186_s13  ;;  %p3193_p13 = scmp.lt.u32.totalorder %s3191_s3, %s3186_s13 }
  0xf5   : > { %p3195_p2 = scmp.lt.u32.totalorder %s3186_s13, %s3717_s14 }
  0xf6   : > { %p3189_p3 = pnand %p3188_p1, %p3187_p8  ;;  %p3194_p0 = por %p3193_p13, %p3192_p12 }
  0xf8   : > { %p3190_p11 = pneg %p3189_p3  ;;  %p3196_p4 = por %p3195_p2, %p3194_p0 }
  0xfa   : > { %p3197_p9 = pnand %p3196_p4, %p3190_p11 }
  0xfc   : > { %3200 = shalt.err (!%p3197_p9)
}
  0xfd   : > { %s3201_s4 = scalar_lea.vmem %s3719_s9, 16  ;;  %s3357_s0 = smov [#allocation4]  }
  0xfe   : > { %p3202_p8 = scmp.ne.s32.totalorder %s3719_s9, %s3201_s4  ;;  %s3206_s15 = sshll.u32 %s3357_s0, 4  ;;  %s3207_s15 = int_to_ptr.vmem [resolvable:$false] %s3206_s15 }
  0xff   : > { %s3208_s5 = scalar_lea.vmem %s3207_s15, 32  ;;  %p3209_p7 = scmp.lt.s32.totalorder %s3719_s9, %s3207_s15 }
 0x100   : > { %p3204_p3 = pnand %p3202_p8, %p3188_p1  ;;  %p3210_p12 = scmp.lt.s32.totalorder %s3208_s5, %s3201_s4 }
 0x102   : > { %p3205_p5 = pneg %p3204_p3  ;;  %p3211_p13 = por %p3210_p12, %p3209_p7 }
 0x104   : > { %p3212_p0 = pnand %p3211_p13, %p3205_p5 }
 0x106   : > { %3215 = shalt.err (!%p3212_p0)
}
 0x107   : > { %2867 = dma.hbm_to_vmem [thread:$0]  (!%p3723_p10), %s3717_s14, 16, %s3719_s9, %s672_s29  }
 0x108   : > { %p4207_p11 = scmp.ne.s32.totalorder %s4191_s27, 0 }
 0x109   : > { %s3755_s13 = sand.u32 (!%p4207_p11), 1, %s3330_s22  }
 0x10a   : > { %690 = sbr.rel (%p4207_p11) target bundleno = 2715 (0xa9b), region = 96  ;;  %s693_s3 = scalar_lea.sflag (!%p4207_p11), [#allocation5], %s3755_s13 }
 0x111   : > { %3297 = dma.done.wait (%p3692_p6), %s693_s3, 16  }
 0x112   : > { %3299 = vsyncadd (%p3692_p6), %s693_s3, 4294967280  ;;  %p4208_p7 = scmp.ne.s32.totalorder %s4190_s26, 0 }
 0x114   : > { %3301 = dma.done.wait (%p4208_p7), [#allocation8], 272  }
 0x115   : > { %3303 = vsyncadd (%p4208_p7), [#allocation8], 4294967024 }
 0x116   : > { %3305 = dma.done.wait (%p4208_p7), [#allocation11], 272  }
 0x117   : > { %3307 = vsyncadd (%p4208_p7), [#allocation11], 4294967024 }
 0x118   : > { %3309 = dma.done.wait (%p4208_p7), [#allocation14], 32  }
 0x119   : > { %3311 = vsyncadd (%p4208_p7), [#allocation14], 4294967264 }
 0x11a   : > { %3313 = dma.done.wait (%p4208_p7), [#allocation17], 16  }
 0x11b   : > { %3315 = vsyncadd (%p4208_p7), [#allocation17], 4294967280  ;;  %p795_p6 = scmp.lt.s32.totalorder %s3338_s24, 1  ;;  %v3358_v0 = vmov 0.0   ;;  %vm3359_vm0 = vmmov 0   ;;  %v2958_v1 = vld [vmem:[#allocation7] sm:$0xff]   ;;  %v959_v26 = vlaneseq }
 0x11c   : > { %2692 = vmatprep.subr.bf16.mxu1 %v3358_v0  ;;  %2708 = vmatprep.subr.bf16.mxu0 %v3358_v0  ;;  %s4209_s14 = sld [smem:[#allocation31_spill]]  ;;  %s4210_s4 = sld [smem:[#allocation29_spill]]  ;;  %v2960_v3 = vld [vmem:[#allocation7 + $0x8] sm:$0xff]   ;;  %vm837_vm1 = vcmask 261120   ;;  %v2598_v9 = vld [vmem:[#allocation9] ss:$0 sm:$0xff] }
 0x11d   : > { %2696 = vmatprep.mubr.msk.bf16.mxu1 %vm3359_vm0, %v3358_v0  ;;  %s796_s27 = scalar_select %p795_p6, %s3338_s24, 1  ;;  %2712 = vmatprep.mubr.msk.bf16.mxu0 %vm3359_vm0, %v3358_v0  ;;  %v2962_v22 = vld [vmem:[#allocation10] sm:$0xff]   ;;  %v2963_v23 = vld [vmem:[#allocation10 + $0x8] sm:$0xff]   ;;  %v3363_v24 = vmov 1983009808   ;;  %v3827_v30 = vshrl.u32 %v959_v26, 7 }
 0x11e   : > { %s4211_s3 = sld [smem:[#allocation28_spill]]  ;;  %2693 = vmatpush3.bf16.msra.mxu1 %v2958_v1  ;;  %s3360_s26 = smov 104   ;;  %v957_v25 = vunpack.c.l.s4 %v3363_v24  ;;  %v3364_v27 = vmov 1934713408   ;;  %vm1094_vm2 = vcmask 60416   ;;  %vm1485_vm3 = vcmask 64512  }
 0x11f   : > { %s2596_s20 = sshll.u32 %s796_s27, 3  ;;  %2694 = vmatprep.subr.bf16.mxu1 %v3358_v0  ;;  %s3361_s9 = smov 120   ;;  %v989_v28 = vunpack.c.l.s4 %v3364_v27  ;;  %vm1730_vm5 = vcmask 1043456   ;;  %vm2258_vm6 = vcmask 523264  }
 0x120   : > { %s3362_s16 = smov 112   ;;  %v958_v29 = vunpack.c.0.s8 %v957_v25  ;;  %s4213_s29 = scalar_lea.vmem [#allocation4], %s3755_s13 }
 0x121   : > { %v990_v33 = vunpack.c.0.s8 %v989_v28  ;;  %s4217_s6 = sld [smem:[#allocation40_spill]]  ;;  %s4219_s27 = sld [smem:[#allocation46_spill]] }
 0x122   : > { %v2959_v2 = vld [vmem:[%s4209_s14] sm:$0xff]   ;;  %s805_s0 = scalar_lea.vmem %s4210_s4, %s2596_s20  ;;  %v2961_v4 = vld [vmem:[%s4209_s14 + $0x8] sm:$0xff]   ;;  %2695 = vmatpush3.bf16.msra.mxu1 %v2960_v3  ;;  %v3830_v34 = vsub.s32 %v958_v29, %v3827_v30  ;;  %s2595_s4 = sshll.u32 %s3755_s13, 4 }
 0x123   : > { %2709 = vmatpush3.bf16.msra.mxu0 %v2959_v2  ;;  %v812_v5 = vld [vmem:[%s805_s0] sm:$0xff]  ;;  %2700 = vmatprep.subr.bf16.mxu1 %v3358_v0  ;;  %v3833_v41 = vsub.s32 %v990_v33, %v3827_v30  ;;  %s3944_s0 = scalar_lea.vmem [#allocation19], %s2595_s4  ;;  %s4215_s4 = sld [smem:[#allocation39_spill]] }
 0x124   : > { %s801_s18 = scalar_lea.vmem %s4211_s3, %s2596_s20  ;;  %2710 = vmatprep.subr.bf16.mxu0 %v3358_v0  ;;  %v813_v7 = vpack.c.bf16 %v812_v5, %v812_v5  ;;  %s4212_s20 = sld [smem:[#allocation32_spill]] }
 0x125   : > { %v3801_v6 = vld [vmem:[%s801_s18] sm:$0xff]  ;;  %s4214_s3 = sld [smem:[#allocation37_spill]]  ;;  %s4216_s18 = sld [smem:[#allocation41_spill]] }
 0x126   : > { %v1253_v8 = vpack.c.bf16 %v3801_v6, %v3801_v6  ;;  %2697 = vmatmul.mubr.msk.bf16.vlgmr.msra.gmra.mrb[0].mxu1 %vm837_vm1, %v813_v7  ;;  %p4220_p10 = scmp.ne.s32.totalorder %s4203_s30, 0 }
 0x127   : > { %2711 = vmatpush3.bf16.msra.mxu0 %v2961_v4  ;;  %2704 = vmatprep.mubr.msk.bf16.mxu1 %vm3359_vm0, %v3358_v0 }
 0x128   : > { %2722 = vmatprep.subr.bf16.mxu0 %v3358_v0  ;;  %2701 = vmatpush3.bf16.msra.mxu1 %v2962_v22 }
 0x129   : > { %2702 = vmatprep.subr.bf16.mxu1 %v3358_v0 }
 0x12a   : > { %2713 = vmatmul.mubr.msk.bf16.vlgmr.msra.gmra.mrb[0].mxu0 %vm837_vm1, %v1253_v8  ;;  %v2610_v10 = vld [vmem:[%s4212_s20] ss:$0 sm:$0xff] }
 0x12b   : > { %2724 = vmatprep.mubr.msk.bf16.mxu0 %vm3359_vm0, %v3358_v0 }
 0x12c   : > { %2703 = vmatpush3.bf16.msra.mxu1 %v2963_v23 }
 0x12d   : > { %2716 = vmatprep.subr.bf16.mxu1 %v3358_v0 }
 0x12f   : > { %2705 = vmatmul.mubr.msk.bf16.vlgmr.msra.gmra.mrb[4].mxu1 %vm837_vm1, %v813_v7 }
 0x130   : > { %2718 = vmatprep.mubr.msk.bf16.mxu1 %vm3359_vm0, %v3358_v0 }
 0x1f9   : > { %v875_v11 = vpop.f32.mrb[0].mxu1 }
 0x1fa   : > { %v876_v12 = vadd.f32 %v2598_v9, %v875_v11  ;;  %v2698_v13 = vpop.f32.mrb[1].mxu1 }
 0x1fb   : > { %v878_v15 = vpop.f32.mrb[2].mxu1 }
 0x1fc   : > { %951 = vrot.lane.b32.xlu1 %v876_v12, %s3360_s26  ;;  %945 = vrot.lane.b32.xlu0 %v876_v12, %s3361_s9  ;;  %v2699_v18 = vpop.f32.mrb[3].mxu1 }
 0x1fd   : > { %v1315_v14 = vpop.f32.mrb[0].mxu0 }
 0x1fe   : > { %v1316_v16 = vadd.f32 %v2610_v10, %v1315_v14  ;;  %v2714_v17 = vpop.f32.mrb[1].mxu0 }
 0x1ff   : > { %v1318_v19 = vpop.f32.mrb[2].mxu0 }
 0x200   : > { %v1321_v20 = vmul.f32 0.35355338, %v1316_v16  ;;  %v2715_v21 = vpop.f32.mrb[3].mxu0  ;;  %948 = vrot.lane.b32.xlu0 %v876_v12, %s3362_s16 }
 0x202   : > { %1323 = vrot.lane.b32.xlu1 %v1321_v20, %s3361_s9 }
 0x204   : > { %1326 = vrot.lane.b32.xlu0 %v1321_v20, %s3362_s16 }
 0x206   : > { %1329 = vrot.lane.b32.xlu1 %v1321_v20, %s3360_s26 }
 0x26e   : > { %v952_v31 = vpop.permute.xlu1 %951  ;;  %v946_v32 = vpop.permute.xlu0 %945 }
 0x26f   : > { %v970_v35 = vcombine.low %v946_v32, %v952_v31  ;;  %v971_v36 = vcombine.high %v946_v32, %v952_v31 }
 0x271   : > { %v978_v42 = vrot.slane %v970_v35, %v3830_v34  ;;  %v985_v43 = vrot.slane %v971_v36, %v3830_v34 }
 0x272   : > { %v949_v37 = vpop.permute.xlu0 %948 }
 0x273   : > { %v954_v39 = vcombine.low %v876_v12, %v949_v37  ;;  %v955_v40 = vcombine.high %v876_v12, %v949_v37 }
 0x274   : > { %v1324_v38 = vpop.permute.xlu1 %1323 }
 0x275   : > { %v962_v44 = vrot.slane %v954_v39, %v3830_v34  ;;  %v969_v45 = vrot.slane %v955_v40, %v3830_v34 }
 0x276   : > { %v1327_v46 = vpop.permute.xlu0 %1326 }
 0x277   : > { %v986_v48 = vcombine.low %v962_v44, %v978_v42  ;;  %v987_v49 = vcombine.high %v962_v44, %v978_v42  ;;  %v1002_v50 = vcombine.low %v969_v45, %v985_v43  ;;  %v1003_v51 = vcombine.high %v969_v45, %v985_v43 }
 0x278   : > { %v1330_v47 = vpop.permute.xlu1 %1329  ;;  %v1332_v52 = vcombine.low %v1321_v20, %v1327_v46  ;;  %v1333_v53 = vcombine.high %v1321_v20, %v1327_v46 }
 0x279   : > { %v1348_v54 = vcombine.low %v1324_v38, %v1330_v47  ;;  %v1349_v55 = vcombine.high %v1324_v38, %v1330_v47  ;;  %v994_v56 = vrot.slane %v986_v48, %v3833_v41  ;;  %v1001_v57 = vrot.slane %v987_v49, %v3833_v41 }
 0x27a   : > { %v1010_v58 = vrot.slane %v1002_v50, %v3833_v41  ;;  %v1017_v59 = vrot.slane %v1003_v51, %v3833_v41  ;;  %v1340_v60 = vrot.slane %v1332_v52, %v3830_v34  ;;  %v1347_v61 = vrot.slane %v1333_v53, %v3830_v34 }
 0x27b   : > { %v1356_v62 = vrot.slane %v1348_v54, %v3830_v34  ;;  %v1363_v63 = vrot.slane %v1349_v55, %v3830_v34  ;;  %v1022_v1 = vcombine.low %v994_v56, %v1001_v57  ;;  %v2606_v2 = vcombine.high %v994_v56, %v1001_v57 }
 0x27c   : > { %v1038_v3 = vcombine.low %v1010_v58, %v1017_v59  ;;  %v2607_v4 = vcombine.high %v1010_v58, %v1017_v59 }
 0x27d   : > { %v1364_v5 = vcombine.low %v1340_v60, %v1356_v62  ;;  %v1365_v7 = vcombine.high %v1340_v60, %v1356_v62  ;;  %v1380_v8 = vcombine.low %v1347_v61, %v1363_v63  ;;  %v1381_v9 = vcombine.high %v1347_v61, %v1363_v63 }
 0x27e   : > { %v1029_v10 = vrot.slane %v1022_v1, %v3830_v34  ;;  %v1037_v11 = vrot.slane %v2606_v2, %v3830_v34  ;;  %v1045_v12 = vrot.slane %v1038_v3, %v3830_v34  ;;  %v1053_v13 = vrot.slane %v2607_v4, %v3830_v34 }
 0x27f   : > { %v1372_v14 = vrot.slane %v1364_v5, %v3833_v41  ;;  %v1379_v15 = vrot.slane %v1365_v7, %v3833_v41  ;;  %v1388_v16 = vrot.slane %v1380_v8, %v3833_v41  ;;  %v1395_v17 = vrot.slane %v1381_v9, %v3833_v41  ;;  %v938_v7 = vpop.f32.mrb[4].mxu1 }
 0x280   : > { %v1054_v18 = vcombine.low %v1029_v10, %v1037_v11  ;;  %v1055_v19 = vcombine.high %v1029_v10, %v1037_v11  ;;  %v1070_v20 = vcombine.low %v1045_v12, %v1053_v13  ;;  %v1071_v21 = vcombine.high %v1045_v12, %v1053_v13  ;;  %v2706_v8 = vpop.f32.mrb[5].mxu1  ;;  %v1476_v11 = vld [vmem:[%s4213_s29] sm:$0x1]  ;;  %s2367_s29 = sshll.u32 %s3944_s0, 4  ;;  %s4049_s29 = int_to_ptr.vmem [resolvable:$true] %s2367_s29 }
 0x281   : > { %v1400_v22 = vcombine.low %v1372_v14, %v1379_v15  ;;  %v2614_v23 = vcombine.high %v1372_v14, %v1379_v15  ;;  %v1416_v24 = vcombine.low %v1388_v16, %v1395_v17  ;;  %v2615_v25 = vcombine.high %v1388_v16, %v1395_v17  ;;  %v941_v9 = vpop.f32.mrb[6].mxu1 }
 0x282   : > { %v1062_v26 = vrot.slane %v1054_v18, %v3833_v41  ;;  %v1069_v27 = vrot.slane %v1055_v19, %v3833_v41  ;;  %v1078_v28 = vrot.slane %v1070_v20, %v3833_v41  ;;  %v1085_v29 = vrot.slane %v1071_v21, %v3833_v41  ;;  %v2707_v10 = vpop.f32.mrb[7].mxu1 }
 0x283   : > { %v1407_v36 = vrot.slane %v1400_v22, %v3830_v34  ;;  %v1415_v37 = vrot.slane %v2614_v23, %v3830_v34  ;;  %v1423_v38 = vrot.slane %v1416_v24, %v3830_v34  ;;  %v1431_v39 = vrot.slane %v2615_v25, %v3830_v34 }
 0x284   : > { %v1086_v31 = vcombine.low %v1062_v26, %v1078_v28  ;;  %v1087_v32 = vcombine.high %v1062_v26, %v1078_v28  ;;  %v1088_v33 = vcombine.low %v1069_v27, %v1085_v29  ;;  %v1089_v35 = vcombine.high %v1069_v27, %v1085_v29 }
 0x285   : > { %v1432_v45 = vcombine.low %v1407_v36, %v1415_v37  ;;  %v1448_v46 = vcombine.low %v1423_v38, %v1431_v39  ;;  %v1433_v53 = vcombine.high %v1407_v36, %v1415_v37  ;;  %v1449_v54 = vcombine.high %v1423_v38, %v1431_v39 }
 0x286   : > { %v1090_v40 = vpack.c.bf16 %v1086_v31, %v1086_v31  ;;  %v1091_v42 = vpack.c.bf16 %v1087_v32, %v1087_v32  ;;  %v1092_v43 = vpack.c.bf16 %v1088_v33, %v1088_v33  ;;  %v1093_v44 = vpack.c.bf16 %v1089_v35, %v1089_v35 }
 0x287   : > { %v1440_v47 = vrot.slane %v1432_v45, %v3833_v41  ;;  %v1456_v48 = vrot.slane %v1448_v46, %v3833_v41  ;;  %v1447_v61 = vrot.slane %v1433_v53, %v3833_v41  ;;  %v1463_v62 = vrot.slane %v1449_v54, %v3833_v41 }
 0x288   : > { %1095 = vst.msk [vmem:[#allocation2] sm:$0xf] %vm1094_vm2, %v1090_v40  ;;  %1096 = vst.msk [vmem:[#allocation2 + $0x4] sm:$0xf] %vm1094_vm2, %v1091_v42  ;;  %vm1477_vm4 = vcmp.gt.f32.partialorder %v1476_v11, 0.0  ;;  %v1482_v12 = vsub.s32 0, %v3827_v30 }
 0x289   : > { %1097 = vst.msk [vmem:[#allocation2 + $0x8] sm:$0xf] %vm1094_vm2, %v1092_v43  ;;  %1098 = vst.msk [vmem:[#allocation2 + $0xc] sm:$0xf] %vm1094_vm2, %v1093_v44  ;;  %v1464_v55 = vcombine.low %v1440_v47, %v1456_v48  ;;  %v1465_v56 = vcombine.high %v1440_v47, %v1456_v48  ;;  %v1466_v2 = vcombine.low %v1447_v61, %v1463_v62  ;;  %v3365_v13 = vmov -1e+09  }
 0x28a   : > { %v1467_v3 = vcombine.high %v1447_v61, %v1463_v62  ;;  %v1478_v14 = vsel %vm1477_vm4, 0.0, %v3365_v13  ;;  %v2602_v42 = vld [vmem:[#allocation12] ss:$0 sm:$0xff] }
 0x28b   : > { %v1468_v59 = vpack.c.bf16 %v1464_v55, %v1464_v55  ;;  %v1469_v60 = vpack.c.bf16 %v1465_v56, %v1465_v56  ;;  %v1470_v4 = vpack.c.bf16 %v1466_v2, %v1466_v2  ;;  %v1483_v15 = vrot.slane %v1478_v14, %v1482_v12 }
 0x28c   : > { %v1471_v5 = vpack.c.bf16 %v1467_v3, %v1467_v3  ;;  %v939_v43 = vadd.f32 %v2602_v42, %v938_v7 }
 0x28f   : > { %v1472_v49 = vld [vmem:[#allocation2] sm:$0xf]  ;;  %v1473_v50 = vld [vmem:[#allocation2 + $0x4] sm:$0xf] }
 0x290   : > { %v1490_v51 = vsel %vm1485_vm3, %v1472_v49, 0  ;;  %v1536_v52 = vsel %vm1485_vm3, %v1473_v50, 0  ;;  %v1474_v57 = vld [vmem:[#allocation2 + $0x8] sm:$0xf]  ;;  %v1475_v58 = vld [vmem:[#allocation2 + $0xc] sm:$0xf] }
 0x291   : > { %2717 = vmatpush3.bf16.xpose.msra.mxu1 %v1490_v51  ;;  %2723 = vmatpush3.bf16.xpose.msra.mxu0 %v1536_v52  ;;  %v1582_v63 = vsel %vm1485_vm3, %v1474_v57, 0  ;;  %v1628_v1 = vsel %vm1485_vm3, %v1475_v58, 0 }
 0x292   : > { %2728 = vmatprep.subr.bf16.mxu1 %v3358_v0  ;;  %2734 = vmatprep.subr.bf16.mxu0 %v3358_v0 }
 0x298   : > { %2719 = vmatmul.mubr.msk.bf16.vlgmr.msra.gmra.mrb[8].mxu1 %vm1485_vm3, %v1468_v59  ;;  %2725 = vmatmul.mubr.msk.bf16.vlgmr.msra.gmra.mrb[4].mxu0 %vm1485_vm3, %v1469_v60 }
 0x299   : > { %2729 = vmatpush3.bf16.xpose.msra.mxu1 %v1582_v63  ;;  %2735 = vmatpush3.bf16.xpose.msra.mxu0 %v1628_v1 }
 0x29a   : > { %2730 = vmatprep.mubr.msk.bf16.mxu1 %vm3359_vm0, %v3358_v0  ;;  %2736 = vmatprep.mubr.msk.bf16.mxu0 %vm3359_vm0, %v3358_v0 }
 0x29b   : > { %2740 = vmatprep.subr.bf16.mxu1 %v3358_v0  ;;  %2746 = vmatprep.subr.bf16.mxu0 %v3358_v0 }
 0x2a0   : > { %2731 = vmatmul.mubr.msk.bf16.vlgmr.msra.gmra.mrb[12].mxu1 %vm1485_vm3, %v1470_v4  ;;  %2737 = vmatmul.mubr.msk.bf16.vlgmr.msra.gmra.mrb[8].mxu0 %vm1485_vm3, %v1471_v5 }
 0x2a1   : > { %2742 = vmatprep.mubr.msk.bf16.mxu1 %vm3359_vm0, %v3358_v0  ;;  %2748 = vmatprep.mubr.msk.bf16.mxu0 %vm3359_vm0, %v3358_v0 }
 0x36b   : > { %v1526_v16 = vpop.f32.mrb[8].mxu1  ;;  %v1572_v17 = vpop.f32.mrb[4].mxu0 }
 0x36c   : > { %v1527_v18 = vadd.f32 %v1526_v16, %v1483_v15  ;;  %v1573_v19 = vadd.f32 %v1572_v17, %v1483_v15  ;;  %v2720_v20 = vpop.f32.mrb[9].mxu1  ;;  %v2726_v21 = vpop.f32.mrb[5].mxu0 }
 0x36d   : > { %v1529_v22 = vpop.f32.mrb[10].mxu1  ;;  %v1575_v23 = vpop.f32.mrb[6].mxu0 }
 0x36e   : > { %v2721_v24 = vpop.f32.mrb[11].mxu1  ;;  %v2727_v25 = vpop.f32.mrb[7].mxu0  ;;  %v1670_v26 = vsel %vm1485_vm3, %v1527_v18, -inf  ;;  %v1673_v27 = vsel %vm1485_vm3, %v1573_v19, -inf }
 0x36f   : > { %1671 = vmax.xlane.f32.xlu0 %v1670_v26  ;;  %1674 = vmax.xlane.f32.xlu1 %v1673_v27 }
 0x373   : > { %v1618_v30 = vpop.f32.mrb[12].mxu1  ;;  %v1664_v28 = vpop.f32.mrb[8].mxu0 }
 0x374   : > { %v1619_v29 = vadd.f32 %v1618_v30, %v1483_v15  ;;  %v2732_v31 = vpop.f32.mrb[13].mxu1  ;;  %v2738_v32 = vpop.f32.mrb[9].mxu0  ;;  %v1665_v36 = vadd.f32 %v1664_v28, %v1483_v15 }
 0x375   : > { %v1621_v33 = vpop.f32.mrb[14].mxu1  ;;  %v1667_v35 = vpop.f32.mrb[10].mxu0 }
 0x376   : > { %v2733_v37 = vpop.f32.mrb[15].mxu1  ;;  %v2739_v38 = vpop.f32.mrb[11].mxu0  ;;  %v1676_v39 = vsel %vm1485_vm3, %v1619_v29, -inf  ;;  %v1679_v40 = vsel %vm1485_vm3, %v1665_v36, -inf }
 0x377   : > { %1677 = vmax.xlane.f32.xlu0 %v1676_v39 }
 0x37b   : > { %1680 = vmax.xlane.f32.xlu0 %v1679_v40 }
 0x380   : > { %1100 = vrot.lane.b32.xlu1 %v939_v43, %s3361_s9  ;;  %s4218_s9 = sld [smem:[#allocation42_spill]] }
 0x384   : > { %1106 = vrot.lane.b32.xlu1 %v939_v43, %s3360_s26  ;;  %s3216_s26 = scalar_lea.vmem %s4049_s29, 256 }
 0x385   : > { %p3217_p5 = scmp.ne.s32.totalorder %s4049_s29, %s3216_s26 }
 0x387   : > { %p3218_p1 = pnand %p3217_p5, %p4220_p10 }
 0x389   : > { %p3219_p2 = pneg %p3218_p1 }
 0x391   : > { %1103 = vrot.lane.b32.xlu0 %v939_v43, %s3362_s16  ;;  %s2650_s16 = sshll.u32 %s3338_s24, 8 }
 0x3fc   : > { %v1672_v44 = vpop.xlane.xlu0 %1671  ;;  %v1675_v45 = vpop.xlane.xlu1 %1674 }
 0x3fd   : > { %v1682_v46 = vsub.f32 %v1527_v18, %v1672_v44  ;;  %v1683_v47 = vsub.f32 %v1573_v19, %v1675_v45 }
 0x3ff   : > { %v1686_v48 = vmul.f32 1.442695, %v1682_v46  ;;  %v1688_v49 = vmul.f32 1.442695, %v1683_v47 }
 0x400   : > { %v1101_v50 = vpop.permute.xlu1 %1100 }
 0x401   : > { %2970 = vpow2.f32 %v1686_v48 }
 0x402   : > { %2972 = vpow2.f32 %v1688_v49 }
 0x404   : > { %v1678_v51 = vpop.xlane.xlu0 %1677  ;;  %v1107_v54 = vpop.permute.xlu1 %1106 }
 0x405   : > { %v1684_v52 = vsub.f32 %v1619_v29, %v1678_v51  ;;  %v1125_v58 = vcombine.low %v1101_v50, %v1107_v54  ;;  %v1126_v59 = vcombine.high %v1101_v50, %v1107_v54 }
 0x407   : > { %v1690_v53 = vmul.f32 1.442695, %v1684_v52  ;;  %v1133_v4 = vrot.slane %v1125_v58, %v3830_v34  ;;  %v1140_v5 = vrot.slane %v1126_v59, %v3830_v34 }
 0x408   : > { %v1681_v55 = vpop.xlane.xlu0 %1680 }
 0x409   : > { %2974 = vpow2.f32 %v1690_v53  ;;  %v1685_v56 = vsub.f32 %v1665_v36, %v1681_v55 }
 0x40b   : > { %v3901_v57 = vpop.eup %2970  ;;  %v1692_v60 = vmul.f32 1.442695, %v1685_v56 }
 0x40c   : > { %v3903_v61 = vpop.eup %2972  ;;  %v1104_v62 = vpop.permute.xlu0 %1103  ;;  %v1694_v63 = vsel %vm1485_vm3, %v3901_v57, 0.0 }
 0x40d   : > { %2976 = vpow2.f32 %v1692_v60  ;;  %v1109_v1 = vcombine.low %v939_v43, %v1104_v62  ;;  %v1110_v2 = vcombine.high %v939_v43, %v1104_v62  ;;  %1695 = vadd.xlane.f32.xlu1 %v1694_v63  ;;  %v1697_v3 = vsel %vm1485_vm3, %v3903_v61, 0.0 }
 0x40e   : > { %1698 = vadd.xlane.f32.xlu0 %v1697_v3 }
 0x40f   : > { %v1117_v7 = vrot.slane %v1109_v1, %v3830_v34  ;;  %v1124_v8 = vrot.slane %v1110_v2, %v3830_v34  ;;  %v1916_v1 = vld [vmem:[%s4214_s3] sm:$0xf] }
 0x411   : > { %v1141_v9 = vcombine.low %v1117_v7, %v1133_v4  ;;  %v1142_v10 = vcombine.high %v1117_v7, %v1133_v4  ;;  %v1157_v11 = vcombine.low %v1124_v8, %v1140_v5  ;;  %v1158_v12 = vcombine.high %v1124_v8, %v1140_v5 }
 0x412   : > { %v1924_v4 = vsel %vm1730_vm5, %v1916_v1, 0 }
 0x413   : > { %v3913_v13 = vpop.eup %2974  ;;  %v1149_v14 = vrot.slane %v1141_v9, %v3833_v41  ;;  %v1156_v15 = vrot.slane %v1142_v10, %v3833_v41  ;;  %v1165_v16 = vrot.slane %v1157_v11, %v3833_v41  ;;  %v1172_v17 = vrot.slane %v1158_v12, %v3833_v41  ;;  %v1917_v9 = vld [vmem:[%s4214_s3 + $0x4] sm:$0xf]  ;;  %v1918_v11 = vld [vmem:[%s4214_s3 + $0x8] sm:$0xf]  ;;  %v1919_v12 = vld [vmem:[%s4214_s3 + $0xc] sm:$0xf] }
 0x414   : > { %v1700_v18 = vsel %vm1485_vm3, %v3913_v13, 0.0  ;;  %v1970_v10 = vsel %vm1730_vm5, %v1917_v9, 0 }
 0x415   : > { %v1177_v19 = vcombine.low %v1149_v14, %v1156_v15  ;;  %v2608_v20 = vcombine.high %v1149_v14, %v1156_v15  ;;  %v1193_v21 = vcombine.low %v1165_v16, %v1172_v17  ;;  %v2609_v22 = vcombine.high %v1165_v16, %v1172_v17  ;;  %1701 = vadd.xlane.f32.xlu0 %v1700_v18 }
 0x416   : > { %v2016_v17 = vsel %vm1730_vm5, %v1918_v11, 0 }
 0x417   : > { %v3921_v23 = vpop.eup %2976  ;;  %v1184_v24 = vrot.slane %v1177_v19, %v3830_v34  ;;  %v1192_v25 = vrot.slane %v2608_v20, %v3830_v34  ;;  %v1200_v26 = vrot.slane %v1193_v21, %v3830_v34  ;;  %v1208_v27 = vrot.slane %v2609_v22, %v3830_v34 }
 0x418   : > { %v1703_v30 = vsel %vm1485_vm3, %v3921_v23, 0.0  ;;  %v2062_v21 = vsel %vm1730_vm5, %v1919_v12, 0  ;;  %v2629_v12 = vld [vmem:[#allocation15] ss:$0 sm:$0xff] }
 0x419   : > { %v1209_v28 = vcombine.low %v1184_v24, %v1192_v25  ;;  %v1210_v29 = vcombine.high %v1184_v24, %v1192_v25  ;;  %v1225_v31 = vcombine.low %v1200_v26, %v1208_v27  ;;  %v1226_v32 = vcombine.high %v1200_v26, %v1208_v27  ;;  %1704 = vadd.xlane.f32.xlu1 %v1703_v30 }
 0x41b   : > { %v1217_v33 = vrot.slane %v1209_v28, %v3833_v41  ;;  %v1224_v35 = vrot.slane %v1210_v29, %v3833_v41  ;;  %v1233_v36 = vrot.slane %v1225_v31, %v3833_v41  ;;  %v1240_v37 = vrot.slane %v1226_v32, %v3833_v41 }
 0x41d   : > { %v1241_v38 = vcombine.low %v1217_v33, %v1233_v36  ;;  %v1242_v39 = vcombine.high %v1217_v33, %v1233_v36  ;;  %v1243_v40 = vcombine.low %v1224_v35, %v1240_v37  ;;  %v1244_v34 = vcombine.high %v1224_v35, %v1240_v37 }
 0x41f   : > { %v1245_v42 = vpack.c.bf16 %v1241_v38, %v1241_v38  ;;  %v1246_v43 = vpack.c.bf16 %v1242_v39, %v1242_v39  ;;  %v1247_v44 = vpack.c.bf16 %v1243_v40, %v1243_v40  ;;  %v1248_v45 = vpack.c.bf16 %v1244_v34, %v1244_v34 }
 0x421   : > { %1249 = vst.msk [vmem:[#allocation3] sm:$0xf] %vm1094_vm2, %v1245_v42  ;;  %1250 = vst.msk [vmem:[#allocation3 + $0x4] sm:$0xf] %vm1094_vm2, %v1246_v43 }
 0x422   : > { %1251 = vst.msk [vmem:[#allocation3 + $0x8] sm:$0xf] %vm1094_vm2, %v1247_v44  ;;  %1252 = vst.msk [vmem:[#allocation3 + $0xc] sm:$0xf] %vm1094_vm2, %v1248_v45 }
 0x428   : > { %v1723_v46 = vld [vmem:[#allocation3] sm:$0xf]  ;;  %v1724_v41 = vld [vmem:[#allocation3 + $0x4] sm:$0xf] }
 0x429   : > { %v1732_v47 = vsel %vm1730_vm5, %v1723_v46, 0  ;;  %v1778_v48 = vsel %vm1730_vm5, %v1724_v41, 0  ;;  %v1725_v58 = vld [vmem:[#allocation3 + $0x8] sm:$0xf]  ;;  %v1726_v60 = vld [vmem:[#allocation3 + $0xc] sm:$0xf] }
 0x42a   : > { %2741 = vmatpush3.bf16.msra.mxu1 %v1732_v47  ;;  %2747 = vmatpush3.bf16.msra.mxu0 %v1778_v48  ;;  %v1824_v63 = vsel %vm1730_vm5, %v1725_v58, 0 }
 0x42b   : > { %2752 = vmatprep.subr.bf16.mxu1 %v3358_v0  ;;  %2758 = vmatprep.subr.bf16.mxu0 %v3358_v0 }
 0x49a   : > { %v1696_v49 = vpop.xlane.xlu1 %1695 }
 0x49b   : > { %2978 = vrcp.f32 %v1696_v49  ;;  %v1699_v50 = vpop.xlane.xlu0 %1698 }
 0x49c   : > { %2980 = vrcp.f32 %v1699_v50 }
 0x4a2   : > { %v1702_v51 = vpop.xlane.xlu0 %1701 }
 0x4a3   : > { %2982 = vrcp.f32 %v1702_v51 }
 0x4a5   : > { %v2979_v52 = vpop.eup %2978 }
 0x4a6   : > { %v2981_v53 = vpop.eup %2980  ;;  %v1707_v54 = vmul.f32 %v2979_v52, %v3901_v57  ;;  %v1705_v55 = vpop.xlane.xlu1 %1704  ;;  %v1870_v57 = vsel %vm1730_vm5, %v1726_v60, 0 }
 0x4a7   : > { %v1709_v56 = vmul.f32 %v2981_v53, %v3903_v61  ;;  %2984 = vrcp.f32 %v1705_v55 }
 0x4a8   : > { %v1714_v59 = vpack.c.bf16 %v1707_v54, %v1707_v54  ;;  %v2628_v54 = vld [vmem:[#allocation13] ss:$0 sm:$0xff] }
 0x4a9   : > { %v1715_v62 = vpack.c.bf16 %v1709_v56, %v1709_v56 }
 0x4aa   : > { %1719 = vst.msk [vmem:[%s3944_s0] sm:$0xf] %vm1094_vm2, %v1714_v59  ;;  %2743 = vmatmul.mubr.msk.bf16.vlgmr.msra.gmra.mrb[16].mxu1 %vm1485_vm3, %v1714_v59 }
 0x4ab   : > { %1720 = vst.msk [vmem:[%s3944_s0 + $0x4] sm:$0xf] %vm1094_vm2, %v1715_v62  ;;  %2749 = vmatmul.mubr.msk.bf16.vlgmr.msra.gmra.mrb[12].mxu0 %vm1485_vm3, %v1715_v62  ;;  %2753 = vmatpush3.bf16.msra.mxu1 %v1824_v63 }
 0x4ac   : > { %2759 = vmatpush3.bf16.msra.mxu0 %v1870_v57  ;;  %2754 = vmatprep.mubr.msk.bf16.mxu1 %vm3359_vm0, %v3358_v0 }
 0x4ad   : > { %v2983_v61 = vpop.eup %2982  ;;  %2760 = vmatprep.mubr.msk.bf16.mxu0 %vm3359_vm0, %v3358_v0  ;;  %2764 = vmatprep.subr.bf16.mxu1 %v3358_v0 }
 0x4ae   : > { %v1711_v2 = vmul.f32 %v2983_v61, %v3913_v13  ;;  %2770 = vmatprep.subr.bf16.mxu0 %v3358_v0 }
 0x4b0   : > { %v1716_v3 = vpack.c.bf16 %v1711_v2, %v1711_v2 }
 0x4b1   : > { %v2985_v5 = vpop.eup %2984 }
 0x4b2   : > { %v1713_v7 = vmul.f32 %v2985_v5, %v3921_v23  ;;  %1721 = vst.msk [vmem:[%s3944_s0 + $0x8] sm:$0xf] %vm1094_vm2, %v1716_v3  ;;  %2755 = vmatmul.mubr.msk.bf16.vlgmr.msra.gmra.mrb[20].mxu1 %vm1485_vm3, %v1716_v3  ;;  %v2965_v5 = vld [vmem:[%s4215_s4 + $0x8] sm:$0xff]  }
 0x4b3   : > { %2765 = vmatpush3.bf16.msra.mxu1 %v1924_v4  ;;  %2766 = vmatprep.mubr.msk.bf16.mxu1 %vm3359_vm0, %v3358_v0  ;;  %v2964_v4 = vld [vmem:[%s4215_s4] sm:$0xff]  }
 0x4b4   : > { %v1717_v8 = vpack.c.bf16 %v1713_v7, %v1713_v7  ;;  %2776 = vmatprep.subr.bf16.mxu1 %v3358_v0  ;;  %v2967_v7 = vld [vmem:[%s4216_s18 + $0x8] sm:$0xff]  }
 0x4b6   : > { %1722 = vst.msk [vmem:[%s3944_s0 + $0xc] sm:$0xf] %vm1094_vm2, %v1717_v8  ;;  %2761 = vmatmul.mubr.msk.bf16.vlgmr.msra.gmra.mrb[16].mxu0 %vm1485_vm3, %v1717_v8 }
 0x4b7   : > { %2772 = vmatprep.mubr.msk.bf16.mxu0 %vm3359_vm0, %v3358_v0  ;;  %2771 = vmatpush3.bf16.msra.mxu0 %v1970_v10 }
 0x4b8   : > { %2782 = vmatprep.subr.bf16.mxu0 %v3358_v0 }
 0x57d   : > { %v1768_v13 = vpop.f32.mrb[16].mxu1 }
 0x57e   : > { %v1912_v14 = vpack.c.bf16 %v1768_v13, %v1768_v13  ;;  %v1814_v15 = vpop.f32.mrb[12].mxu0  ;;  %v2744_v16 = vpop.f32.mrb[17].mxu1 }
 0x57f   : > { %v1913_v18 = vpack.c.bf16 %v1814_v15, %v1814_v15  ;;  %v2750_v19 = vpop.f32.mrb[13].mxu0  ;;  %v1771_v20 = vpop.f32.mrb[18].mxu1 }
 0x580   : > { %v1817_v22 = vpop.f32.mrb[14].mxu0  ;;  %v2745_v23 = vpop.f32.mrb[19].mxu1  ;;  %2767 = vmatmul.mubr.msk.bf16.vlgmr.msra.gmra.mrb[24].mxu1 %vm1485_vm3, %v1912_v14  ;;  %v2630_v14 = vld [vmem:[#allocation16] ss:$0 sm:$0xff]  ;;  %v2969_v19 = vld [vmem:[%s4216_s18 + $0x18] sm:$0xff]  }
 0x581   : > { %v2751_v24 = vpop.f32.mrb[15].mxu0  ;;  %2773 = vmatmul.mubr.msk.bf16.vlgmr.msra.gmra.mrb[20].mxu0 %vm1485_vm3, %v1913_v18  ;;  %2777 = vmatpush3.bf16.msra.mxu1 %v2016_v17  ;;  %v2968_v18 = vld [vmem:[%s4216_s18 + $0x10] sm:$0xff]   ;;  %v2631_v20 = vld [vmem:[%s4217_s6] ss:$0 sm:$0xff]  ;;  %s4047_s6 = scalar_lea.hbm %s4219_s27, %s2650_s16 }
 0x582   : > { %2783 = vmatpush3.bf16.msra.mxu0 %v2062_v21  ;;  %2778 = vmatprep.mubr.msk.bf16.mxu1 %vm3359_vm0, %v3358_v0 }
 0x583   : > { %2784 = vmatprep.mubr.msk.bf16.mxu0 %vm3359_vm0, %v3358_v0  ;;  %2788 = vmatprep.subr.bf16.mxu1 %v3358_v0 }
 0x584   : > { %2796 = vmatprep.subr.bf16.mxu0 %v3358_v0 }
 0x585   : > { %v1860_v25 = vpop.f32.mrb[20].mxu1 }
 0x586   : > { %v1914_v26 = vpack.c.bf16 %v1860_v25, %v1860_v25  ;;  %v2756_v27 = vpop.f32.mrb[21].mxu1 }
 0x587   : > { %v1863_v30 = vpop.f32.mrb[22].mxu1 }
 0x588   : > { %v2757_v28 = vpop.f32.mrb[23].mxu1  ;;  %2779 = vmatmul.mubr.msk.bf16.vlgmr.msra.gmra.mrb[28].mxu1 %vm1485_vm3, %v1914_v26 }
 0x589   : > { %v1906_v29 = vpop.f32.mrb[16].mxu0  ;;  %2792 = vmatprep.mubr.msk.bf16.mxu1 %vm3359_vm0, %v3358_v0  ;;  %2789 = vmatpush3.bf16.msra.mxu1 %v2964_v4 }
 0x58a   : > { %v1915_v31 = vpack.c.bf16 %v1906_v29, %v1906_v29  ;;  %v2762_v32 = vpop.f32.mrb[17].mxu0  ;;  %2790 = vmatprep.subr.bf16.mxu1 %v3358_v0 }
 0x58b   : > { %v1909_v33 = vpop.f32.mrb[18].mxu0 }
 0x58c   : > { %v2763_v35 = vpop.f32.mrb[19].mxu0  ;;  %2785 = vmatmul.mubr.msk.bf16.vlgmr.msra.gmra.mrb[24].mxu0 %vm1485_vm3, %v1915_v31 }
 0x58d   : > { %2804 = vmatprep.mubr.msk.bf16.mxu0 %vm3359_vm0, %v3358_v0  ;;  %2791 = vmatpush3.bf16.msra.mxu1 %v2965_v5 }
 0x653   : > { %v1960_v36 = vpop.f32.mrb[24].mxu1 }
 0x654   : > { %v2104_v37 = vsel %vm837_vm1, %v1960_v36, 0.0  ;;  %v2006_v38 = vpop.f32.mrb[20].mxu0  ;;  %v2768_v39 = vpop.f32.mrb[25].mxu1 }
 0x655   : > { %v2105_v40 = vsel %vm837_vm1, %v2006_v38, 0.0  ;;  %v2774_v34 = vpop.f32.mrb[21].mxu0  ;;  %v1963_v42 = vpop.f32.mrb[26].mxu1 }
 0x656   : > { %v2106_v43 = vadd.f32 %v2105_v40, %v2104_v37  ;;  %v2009_v44 = vpop.f32.mrb[22].mxu0  ;;  %v2769_v45 = vpop.f32.mrb[27].mxu1 }
 0x657   : > { %v2775_v46 = vpop.f32.mrb[23].mxu0 }
 0x65b   : > { %v2052_v41 = vpop.f32.mrb[28].mxu1 }
 0x65c   : > { %v2107_v47 = vsel %vm837_vm1, %v2052_v41, 0.0  ;;  %v2780_v48 = vpop.f32.mrb[29].mxu1 }
 0x65d   : > { %v2108_v49 = vadd.f32 %v2107_v47, %v2106_v43  ;;  %v2055_v50 = vpop.f32.mrb[30].mxu1 }
 0x65e   : > { %v2781_v51 = vpop.f32.mrb[31].mxu1 }
 0x65f   : > { %v2098_v52 = vpop.f32.mrb[24].mxu0 }
 0x660   : > { %v2109_v53 = vsel %vm837_vm1, %v2098_v52, 0.0  ;;  %v2786_v55 = vpop.f32.mrb[25].mxu0 }
 0x661   : > { %v2110_v56 = vadd.f32 %v2109_v53, %v2108_v49  ;;  %v2101_v58 = vpop.f32.mrb[26].mxu0 }
 0x662   : > { %v2787_v59 = vpop.f32.mrb[27].mxu0 }
 0x663   : > { %v2118_v60 = vadd.f32 %v2628_v54, %v2110_v56 }
 0x665   : > { %v2119_v62 = vadd.f32 %v2118_v60, %v3801_v6  ;;  %v2966_v6 = vld [vmem:[%s4216_s18] sm:$0xff]  }
 0x666   : > { %2797 = vmatpush3.bf16.msra.mxu0 %v2966_v6 }
 0x667   : > { %v2120_v63 = vsel %vm837_vm1, %v2119_v62, 0.0  ;;  %2798 = vmatprep.subr.bf16.mxu0 %v3358_v0 }
 0x668   : > { %2121 = vadd.xlane.f32.xlu0 %v2120_v63 }
 0x66a   : > { %2799 = vmatpush3.bf16.msra.mxu0 %v2967_v7 }
 0x66b   : > { %2800 = vmatprep.subr.bf16.mxu0 %v3358_v0 }
 0x66e   : > { %2801 = vmatpush3.bf16.msra.mxu0 %v2968_v18 }
 0x66f   : > { %2802 = vmatprep.subr.bf16.mxu0 %v3358_v0  ;;  %v2635_v0 = vld [vmem:[%s4218_s9] ss:$0 sm:$0xff]  ;;  %s3366_s9 = smov [#allocation19]  }
 0x670   : > { %s3220_s3 = sshll.u32 %s3366_s9, 4  ;;  %s3221_s3 = int_to_ptr.vmem [resolvable:$false] %s3220_s3 }
 0x671   : > { %s3222_s0 = scalar_lea.vmem %s3221_s3, 512  ;;  %p3223_p4 = scmp.lt.s32.totalorder %s4049_s29, %s3221_s3 }
 0x672   : > { %2803 = vmatpush3.bf16.msra.mxu0 %v2969_v19  ;;  %p3224_p9 = scmp.lt.s32.totalorder %s3222_s0, %s3216_s26 }
 0x674   : > { %p3225_p8 = por %p3224_p9, %p3223_p4 }
 0x676   : > { %p3226_p3 = pnand %p3225_p8, %p3219_p2 }
 0x6f5   : > { %v2122_v57 = vpop.xlane.xlu0 %2121 }
 0x6f6   : > { %v2124_v61 = vmul.f32 0.03125, %v2122_v57 }
 0x6f8   : > { %v2125_v1 = vsub.f32 %v2119_v62, %v2124_v61 }
 0x6fa   : > { %v2126_v2 = vmul.f32 %v2125_v1, %v2125_v1 }
 0x6fc   : > { %v2127_v3 = vsel %vm837_vm1, %v2126_v2, 0.0 }
 0x6fd   : > { %2128 = vadd.xlane.f32.xlu1 %v2127_v3 }
 0x78a   : > { %v2129_v8 = vpop.xlane.xlu1 %2128 }
 0x78b   : > { %v2130_v9 = vmul.f32 0.03125, %v2129_v8 }
 0x78d   : > { %v2131_v10 = vadd.f32 1e-05, %v2130_v9 }
 0x78f   : > { %2986 = vrsqrt.f32 %v2131_v10 }
 0x799   : > { %v2987_v11 = vpop.eup %2986 }
 0x79a   : > { %v2133_v13 = vmul.f32 %v2987_v11, %v2125_v1 }
 0x79c   : > { %v2141_v15 = vmul.f32 %v2629_v12, %v2133_v13 }
 0x79e   : > { %v2149_v16 = vadd.f32 %v2630_v14, %v2141_v15 }
 0x7a0   : > { %v2150_v17 = vpack.c.bf16 %v2149_v16, %v2149_v16 }
 0x7a2   : > { %2793 = vmatmul.mubr.msk.bf16.vlgmr.msra.gmra.mrb[32].mxu1 %vm837_vm1, %v2150_v17 }
 0x875   : > { %v2211_v21 = vpop.f32.mrb[32].mxu1 }
 0x876   : > { %v2212_v22 = vadd.f32 %v2631_v20, %v2211_v21  ;;  %v2794_v23 = vpop.f32.mrb[33].mxu1 }
 0x877   : > { %v2214_v24 = vpop.f32.mrb[34].mxu1 }
 0x878   : > { %v2217_v25 = vmax.f32 %v2212_v22, 0.0  ;;  %v2795_v26 = vpop.f32.mrb[35].mxu1 }
 0x87a   : > { %v2218_v27 = vpack.c.bf16 %v2217_v25, %v2217_v25 }
 0x87c   : > { %2805 = vmatmul.mubr.msk.bf16.vlgmr.msra.gmra.mrb[28].mxu0 %vm2258_vm6, %v2218_v27 }
 0x94f   : > { %v2296_v30 = vpop.f32.mrb[28].mxu0 }
 0x950   : > { %v2297_v28 = vadd.f32 %v2635_v0, %v2296_v30  ;;  %v2806_v29 = vpop.f32.mrb[29].mxu0 }
 0x951   : > { %v2299_v31 = vpop.f32.mrb[30].mxu0 }
 0x952   : > { %v2807_v32 = vpop.f32.mrb[31].mxu0  ;;  %v2302_v33 = vadd.f32 %v2297_v28, %v2149_v16 }
 0x954   : > { %v2303_v35 = vsel %vm837_vm1, %v2302_v33, 0.0 }
 0x955   : > { %2304 = vadd.xlane.f32.xlu0 %v2303_v35 }
 0x9e2   : > { %v2305_v36 = vpop.xlane.xlu0 %2304 }
 0x9e3   : > { %v2306_v37 = vmul.f32 0.03125, %v2305_v36 }
 0x9e5   : > { %v2307_v38 = vsub.f32 %v2302_v33, %v2306_v37 }
 0x9e7   : > { %v2308_v39 = vmul.f32 %v2307_v38, %v2307_v38 }
 0x9e9   : > { %v2309_v40 = vsel %vm837_vm1, %v2308_v39, 0.0 }
 0x9ea   : > { %2310 = vadd.xlane.f32.xlu1 %v2309_v40 }
 0x9eb   : > { %3229 = shalt.err (!%p3226_p3)
}
 0x9ec   : > { %s3230_s16 = scalar_lea.hbm %s4047_s6, 256  ;;  %s3234_s9 = scalar_lea.hbm %s4219_s27, 512 }
 0x9ed   : > { %p3231_p12 = scmp.ne.s32.totalorder %s4047_s6, %s3230_s16  ;;  %p3235_p11 = scmp.lt.u32.totalorder %s4047_s6, %s4219_s27 }
 0x9ee   : > { %p3236_p7 = scmp.lt.u32.totalorder %s3234_s9, %s3230_s16  ;;  %p3238_p5 = scmp.lt.u32.totalorder %s3230_s16, %s4047_s6 }
 0x9ef   : > { %p3232_p13 = pnand %p3231_p12, %p4220_p10 }
 0x9f0   : > { %p3237_p6 = por %p3236_p7, %p3235_p11 }
 0x9f1   : > { %p3233_p0 = pneg %p3232_p13 }
 0x9f2   : > { %p3239_p1 = por %p3238_p5, %p3237_p6 }
 0x9f4   : > { %p3240_p2 = pnand %p3239_p1, %p3233_p0 }
 0x9f6   : > { %3243 = shalt.err (!%p3240_p2)
}
 0x9f7   : > { %s3367_s26 = smov 64   ;;  %s3368_s0 = smov 4  }
 0x9f8   : > { %s4221_s15 = scalar_lea.sflag [#allocation20], %s3755_s13  ;;  %s2594_s20 = sshll.u32 %s3755_s13, 3 }
 0x9f9   : > { %2839 = dma.vmem_to_hbm [thread:$0]  (%p4220_p10), %s4049_s29, 256, %s4047_s6, %s4221_s15, %s3367_s26, %s3367_s26, %s3368_s0  }
 0x9fa   : > { %s4222_s9 = sld [smem:[#allocation43_spill]]  ;;  %s4223_s7 = sld [smem:[#allocation44_spill]] }
 0x9fb   : > { %s2645_s8 = sshll.u32 %s3338_s24, 7  ;;  %s787_s10 = scalar_lea.vmem [#allocation18], %s2594_s20 }
 0x9fc   : > { %s2353_s29 = sshll.u32 %s787_s10, 4  ;;  %s4224_s0 = sld [smem:[#allocation45_spill]]  ;;  %s4088_s29 = int_to_ptr.vmem [resolvable:$true] %s2353_s29 }
 0x9fd   : > { %s2334_s16 = scalar_lea.sflag [#allocation6], %s3755_s13  ;;  %s3244_s4 = scalar_lea.vmem %s4088_s29, 128 }
 0x9fe   : > { %p3245_p4 = scmp.ne.s32.totalorder %s4088_s29, %s3244_s4 }
 0xa00   : > { %v2641_v45 = vld [vmem:[%s4222_s9] ss:$0 sm:$0xff]  ;;  %p3246_p9 = pnand %p3245_p4, %p4220_p10 }
 0xa01   : > { %v2642_v41 = vld [vmem:[%s4223_s7] ss:$0 sm:$0xff]  ;;  %s3369_s7 = smov [#allocation18]  }
 0xa02   : > { %s4086_s15 = scalar_lea.hbm %s4224_s0, %s2645_s8  ;;  %p3247_p8 = pneg %p3246_p9 }
 0xa03   : > { %s3248_s24 = sshll.u32 %s3369_s7, 4  ;;  %s3249_s24 = int_to_ptr.vmem [resolvable:$false] %s3248_s24 }
 0xa04   : > { %s3250_s20 = scalar_lea.vmem %s3249_s24, 256  ;;  %p3251_p3 = scmp.lt.s32.totalorder %s4088_s29, %s3249_s24 }
 0xa05   : > { %p3252_p12 = scmp.lt.s32.totalorder %s3250_s20, %s3244_s4 }
 0xa07   : > { %p3253_p13 = por %p3252_p12, %p3251_p3 }
 0xa09   : > { %p3254_p0 = pnand %p3253_p13, %p3247_p8 }
 0xa77   : > { %v2311_v34 = vpop.xlane.xlu1 %2310 }
 0xa78   : > { %v2312_v42 = vmul.f32 0.03125, %v2311_v34 }
 0xa7a   : > { %v2313_v43 = vadd.f32 1e-05, %v2312_v42 }
 0xa7c   : > { %2988 = vrsqrt.f32 %v2313_v43 }
 0xa86   : > { %v2989_v44 = vpop.eup %2988 }
 0xa87   : > { %v2315_v46 = vmul.f32 %v2989_v44, %v2307_v38 }
 0xa89   : > { %v2323_v47 = vmul.f32 %v2641_v45, %v2315_v46 }
 0xa8b   : > { %v2331_v48 = vadd.f32 %v2642_v41, %v2323_v47 }
 0xa8d   : > { %2332 = vst.msk [vmem:[%s787_s10] sm:$0xff] %vm837_vm1, %v2331_v48 }
 0xa8e   : > { %3257 = shalt.err (!%p3254_p0)
}
 0xa8f   : > { %s3258_s8 = scalar_lea.hbm %s4086_s15, 128  ;;  %s3262_s5 = scalar_lea.hbm %s4224_s0, 256 }
 0xa90   : > { %p3259_p11 = scmp.ne.s32.totalorder %s4086_s15, %s3258_s8  ;;  %p3263_p5 = scmp.lt.u32.totalorder %s4086_s15, %s4224_s0 }
 0xa91   : > { %p3264_p1 = scmp.lt.u32.totalorder %s3262_s5, %s3258_s8  ;;  %p3266_p4 = scmp.lt.u32.totalorder %s3258_s8, %s4086_s15 }
 0xa92   : > { %p3260_p7 = pnand %p3259_p11, %p4220_p10 }
 0xa93   : > { %p3265_p2 = por %p3264_p1, %p3263_p5 }
 0xa94   : > { %p3261_p6 = pneg %p3260_p7 }
 0xa95   : > { %p3267_p9 = por %p3266_p4, %p3265_p2 }
 0xa97   : > { %p3268_p8 = pnand %p3267_p9, %p3261_p6 }
 0xa99   : > { %3271 = shalt.err (!%p3268_p8)
}
 0xa9a   : > { %2838 = dma.vmem_to_hbm [thread:$0]  (%p4220_p10), %s4088_s29, 128, %s4086_s15, %s2334_s16  }
 0xa9b PF: > { %s2382_s6 = sand.u32 1, %s3326_s1   ;;  %p4225_p3 = scmp.ne.s32.totalorder %s4204_s17, 0 }
 0xa9c   : > { %p4226_p12 = scmp.ge.s32.totalorder %s3346_s25, 2  ;;  %s2383_s26 = scalar_lea.sflag [#allocation6], %s2382_s6 }
 0xa9e   : > { %p2869_p13 = pnand %p4226_p12, %p4225_p3 }
 0xaa0   : > { %3317 = dma.done.wait (!%p2869_p13), %s2383_s26, 128  }
 0xaa1   : > { %3319 = vsyncadd (!%p2869_p13), %s2383_s26, 4294967168  ;;  %s2392_s4 = scalar_lea.sflag [#allocation20], %s2382_s6 }
 0xaa2   : > { %3321 = dma.done.wait (!%p2869_p13), %s2392_s4, 256  }
 0xaa3   : > { %3323 = vsyncadd (!%p2869_p13), %s2392_s4, 4294967040  ;;  %s44_s25 = sadd.s32 1, %s3346_s25   ;;  %s4227_s1 = smov %s3330_s22 }
 0xaa4   : > { %p41_p0 = scmp.ge.s32.totalorder %s44_s25, 4   ;;  %s4228_s22 = smov %s3334_s23 }
 0xaa5   : > { %s4229_s23 = smov %s3706_s21  ;;  %s4230_s24 = smov %s3342_s2 }
 0xaa6   : > { %s4231_s2 = smov %s4233_s19  ;;  %43 = sbr.rel (!%p41_p0) target bundleno = 32 (0x20), region = 196 }
 0xaad   :  { %2397 = vsyncpa [#allocation5], 1 }
 0xaae   :  { %2399 = vsyncpa [#allocation5 + $0x1], 1 }
 0xaaf   :  { %2400 = vsyncpa [#allocation8], 1 }
 0xab0   :  { %2401 = vsyncpa [#allocation11], 1 }
 0xab1   :  { %2402 = vsyncpa [#allocation14], 1 }
 0xab2   :  { %2403 = vsyncpa [#allocation17], 1 }
 0xab3   :  { %2404 = vsyncpa [#allocation6], 1 }
 0xab4   :  { %2406 = vsyncpa [#allocation6 + $0x1], 1 }
 0xab5   :  { %2407 = vsyncpa [#allocation20], 1 }
 0xab6   :  { %2409 = vsyncpa [#allocation20 + $0x1], 1 }

// kernel: tpu_custom_call.1
= control target key start
LH: loop header
LB: loop body
LE: loop exit
PB: predicated region body
PF: predicated region fallthrough
CT: control target
= control target key end

     0   :  { %s4136_s0 = inlined_call_operand.vmem [shape: f32[2,8,32], index: 0, kind: input, shape index: {}]   ;;  %s4137_s1 = inlined_call_operand.vmem [shape: f32[2,8,32], index: 1, kind: input, shape index: {}]   ;;  %s4138_s2 = inlined_call_operand.hbm [shape: f32[2,1,1,8], index: 2, kind: input, shape index: {}]   ;;  %s4139_s3 = inlined_call_operand.vmem [shape: bf16[32,32], index: 3, kind: input, shape index: {}]   ;;  %s4140_s4 = inlined_call_operand.vmem [shape: f32[1,32], index: 4, kind: input, shape index: {}]   ;;  %s4141_s5 = inlined_call_operand.hbm [shape: bf16[32,32], index: 5, kind: input, shape index: {}]   ;;  %s4142_s6 = inlined_call_operand.hbm [shape: f32[1,32], index: 6, kind: input, shape index: {}]   ;;  %s4143_s7 = inlined_call_operand.hbm [shape: bf16[32,32], index: 7, kind: input, shape index: {}]   ;;  %s4144_s8 = inlined_call_operand.hbm [shape: f32[1,32], index: 8, kind: input, shape index: {}]   ;;  %s4145_s9 = inlined_call_operand.vmem [shape: bf16[4,8,32], index: 9, kind: input, shape index: {}]   ;;  %s4146_s10 = inlined_call_operand.hbm [shape: f32[1,32], index: 10, kind: input, shape index: {}]   ;;  %s4147_s11 = inlined_call_operand.hbm [shape: f32[1,32], index: 11, kind: input, shape index: {}]   ;;  %s4148_s12 = inlined_call_operand.hbm [shape: f32[1,32], index: 12, kind: input, shape index: {}]   ;;  %s4149_s13 = inlined_call_operand.vmem [shape: bf16[32,64], index: 13, kind: input, shape index: {}]   ;;  %s4150_s14 = inlined_call_operand.vmem [shape: f32[1,64], index: 14, kind: input, shape index: {}]   ;;  %s4151_s15 = inlined_call_operand.vmem [shape: bf16[64,32], index: 15, kind: input, shape index: {}]   ;;  %s4152_s16 = inlined_call_operand.vmem [shape: f32[1,32], index: 16, kind: input, shape index: {}]   ;;  %s4153_s17 = inlined_call_operand.vmem [shape: f32[1,32], index: 17, kind: input, shape index: {}]   ;;  %s4154_s18 = inlined_call_operand.vmem [shape: f32[1,32], index: 18, kind: input, shape index: {}]   ;;  %s4155_s19 = inlined_call_operand.hbm [shape: f32[2,8,32], index: 19, kind: output, shape index: {0}]   ;;  %s4156_s20 = inlined_call_operand.hbm [shape: bf16[2,4,8,8], index: 20, kind: output, shape index: {1}]  }
   0x1   :  { %4171 = sst [smem:[#allocation28_spill]] %s4136_s0 }
   0x2   :  { %4172 = sst [smem:[#allocation29_spill]] %s4137_s1 }
   0x3   :  { %4173 = sst [smem:[#allocation30_spill]] %s4138_s2 }
   0x4   :  { %4174 = sst [smem:[#allocation31_spill]] %s4139_s3 }
   0x5   :  { %4175 = sst [smem:[#allocation32_spill]] %s4140_s4 }
   0x6   :  { %4176 = sst [smem:[#allocation33_spill]] %s4141_s5 }
   0x7   :  { %4177 = sst [smem:[#allocation34_spill]] %s4142_s6 }
   0x8   :  { %4178 = sst [smem:[#allocation35_spill]] %s4143_s7 }
   0x9   :  { %4179 = sst [smem:[#allocation36_spill]] %s4144_s8 }
   0xa   :  { %4180 = sst [smem:[#allocation37_spill]] %s4145_s9 }
   0xb   :  { %4181 = sst [smem:[#allocation38_spill]] %s4146_s10 }
   0xc   :  { %4182 = sst [smem:[#allocation39_spill]] %s4149_s13 }
   0xd   :  { %4183 = sst [smem:[#allocation40_spill]] %s4150_s14 }
   0xe   :  { %4184 = sst [smem:[#allocation41_spill]] %s4151_s15 }
   0xf   :  { %4185 = sst [smem:[#allocation42_spill]] %s4152_s16 }
  0x10   :  { %4186 = sst [smem:[#allocation43_spill]] %s4153_s17 }
  0x11   :  { %4187 = sst [smem:[#allocation44_spill]] %s4154_s18 }
  0x12   :  { %4188 = sst [smem:[#allocation45_spill]] %s4155_s19 }
  0x13   :  { %4189 = sst [smem:[#allocation46_spill]] %s4156_s20 }
  0x14   :  { %26 = vsyncpa [#allocation5], 0 }
  0x15   :  { %28 = vsyncpa [#allocation5 + $0x1], 0 }
  0x16   :  { %29 = vsyncpa [#allocation8], 0 }
  0x17   :  { %30 = vsyncpa [#allocation11], 0 }
  0x18   :  { %31 = vsyncpa [#allocation14], 0 }
  0x19   :  { %32 = vsyncpa [#allocation17], 0 }
  0x1a   :  { %33 = vsyncpa [#allocation6], 0 }
  0x1b   :  { %35 = vsyncpa [#allocation6 + $0x1], 0 }
  0x1c   :  { %36 = vsyncpa [#allocation20], 0 }
  0x1d   :  { %38 = vsyncpa [#allocation20 + $0x1], 0  ;;  %s3475_s1 = smov 0   ;;  %s3477_s22 = smov 0  }
  0x1e   :  { %s3479_s23 = smov 0   ;;  %s3481_s24 = smov 0  }
  0x1f   :  { %s3483_s2 = smov 0   ;;  %s3485_s25 = smov 0  }
  0x20 LB: > { %s4159_s3 = sadd.s32 4294967295, %s3346_s25   ;;  %p2576_p0 = scmp.ge.s32.totalorder %s3346_s25, 1  ;;  %s3346_s25 = sphi %s3485_s25, %s44_s25   ;;  %s3342_s2 = sphi %s3483_s2, %s4231_s2   ;;  %s3338_s24 = sphi %s3481_s24, %s4230_s24   ;;  %s3334_s23 = sphi %s3479_s23, %s4229_s23   ;;  %s3330_s22 = sphi %s3477_s22, %s4228_s22   ;;  %s3326_s1 = sphi %s3475_s1, %s4227_s1  }
  0x21   : > { %p3509_p1 = scmp.eq.s32.totalorder %s4159_s3, 0  ;;  %p533_p2 = scmp.lt.s32.totalorder %s3346_s25, 3 }
  0x22   : > { %s3348_s28 = smov [#allocation7]   ;;  %s3349_s30 = smov [#allocation10]  }
  0x23   : > { %s4190_s26 = scalar_select %p3509_p1, 1, 0 }
  0x24   : > { %p3514_p3 = pnand %p2576_p0, %p533_p2  ;;  %s551_s4 = sshll.u32 %s3348_s28, 4  ;;  %s3518_s4 = int_to_ptr.vmem [resolvable:$true] %s551_s4 }
  0x25   : > { %s575_s0 = sshll.u32 %s3349_s30, 4  ;;  %s3350_s21 = smov [#allocation13]   ;;  %s3529_s0 = int_to_ptr.vmem [resolvable:$true] %s575_s0 }
  0x26   : > { %s4191_s27 = scalar_select %p3514_p3, 1, 0 }
  0x27   : > { %p2842_p4 = pneg %p3514_p3  ;;  %s3531_s3 = sshll.u32 %s3350_s21, 4  ;;  %s604_s3 = int_to_ptr.vmem [resolvable:$true] %s3531_s3 }
  0x28   : > { %s4193_s5 = sld [smem:[#allocation33_spill]] }
  0x29   : > { %p3525_p6 = pnand %p2842_p4, %p3509_p1 }
  0x2b   : > { %p3541_p8 = pneg %p3525_p6 }
  0x2e   : > { %s2990_s18 = scalar_lea.hbm %s4193_s5, 256 }
  0x2f   : > { %p2991_p7 = scmp.ne.s32.totalorder %s4193_s5, %s2990_s18  ;;  %p2997_p11 = scmp.lt.u32.totalorder %s2990_s18, %s4193_s5 }
  0x31   : > { %p2993_p9 = pnand %p3541_p8, %p2991_p7 }
  0x33   : > { %p2994_p10 = pneg %p2993_p9 }
  0x35   : > { %p2999_p12 = pnand %p2997_p11, %p2994_p10 }
  0x37   : > { %3002 = shalt.err (!%p2999_p12)
}
  0x38   : > { %s3003_s17 = scalar_lea.vmem %s3518_s4, 256  ;;  %p3011_p4 = scmp.lt.s32.totalorder %s3518_s4, %s3518_s4 }
  0x39   : > { %p3004_p13 = scmp.ne.s32.totalorder %s3518_s4, %s3003_s17  ;;  %p3012_p5 = scmp.lt.s32.totalorder %s3003_s17, %s3003_s17 }
  0x3b   : > { %p3006_p0 = pnand %p3004_p13, %p3541_p8  ;;  %p3013_p7 = por %p3012_p5, %p3011_p4 }
  0x3d   : > { %p3007_p2 = pneg %p3006_p0 }
  0x3f   : > { %p3014_p9 = pnand %p3013_p7, %p3007_p2 }
  0x41   : > { %3017 = shalt.err (!%p3014_p9)
}
  0x42   : > { %s3351_s19 = smov 64   ;;  %s3352_s18 = smov 4  }
  0x43   : > { %2845 = dma.hbm_to_vmem [thread:$0]  (!%p3525_p6), %s4193_s5, 256, %s3518_s4, [#allocation8], %s3351_s19, %s3351_s19, %s3352_s18  }
  0x44   : > { %s4195_s7 = sld [smem:[#allocation35_spill]] }
  0x4a   : > { %s3018_s14 = scalar_lea.hbm %s4195_s7, 256 }
  0x4b   : > { %p3019_p5 = scmp.ne.s32.totalorder %s4195_s7, %s3018_s14  ;;  %p3025_p12 = scmp.lt.u32.totalorder %s3018_s14, %s4195_s7 }
  0x4d   : > { %p3021_p10 = pnand %p3019_p5, %p3541_p8 }
  0x4f   : > { %p3022_p11 = pneg %p3021_p10 }
  0x51   : > { %p3027_p13 = pnand %p3025_p12, %p3022_p11 }
  0x53   : > { %3030 = shalt.err (!%p3027_p13)
}
  0x54   : > { %s3031_s4 = scalar_lea.vmem %s3529_s0, 256  ;;  %p3039_p7 = scmp.lt.s32.totalorder %s3529_s0, %s3529_s0 }
  0x55   : > { %p3032_p0 = scmp.ne.s32.totalorder %s3529_s0, %s3031_s4  ;;  %p3040_p9 = scmp.lt.s32.totalorder %s3031_s4, %s3031_s4 }
  0x57   : > { %p3034_p2 = pnand %p3032_p0, %p3541_p8  ;;  %p3041_p5 = por %p3040_p9, %p3039_p7 }
  0x59   : > { %p3035_p4 = pneg %p3034_p2 }
  0x5b   : > { %p3042_p10 = pnand %p3041_p5, %p3035_p4 }
  0x5d   : > { %3045 = shalt.err (!%p3042_p10)
}
  0x5e   : > { %2851 = dma.hbm_to_vmem [thread:$0]  (!%p3525_p6), %s4195_s7, 256, %s3529_s0, [#allocation11], %s3351_s19, %s3351_s19, %s3352_s18  }
  0x5f   : > { %s4196_s10 = sld [smem:[#allocation38_spill]] }
  0x65   : > { %s3046_s20 = scalar_lea.hbm %s4196_s10, 16 }
  0x66   : > { %p3047_p11 = scmp.ne.s32.totalorder %s4196_s10, %s3046_s20  ;;  %p3053_p0 = scmp.lt.u32.totalorder %s3046_s20, %s4196_s10 }
  0x68   : > { %p3049_p12 = pnand %p3047_p11, %p3541_p8 }
  0x6a   : > { %p3050_p13 = pneg %p3049_p12 }
  0x6c   : > { %p3055_p2 = pnand %p3053_p0, %p3050_p13 }
  0x6e   : > { %3058 = shalt.err (!%p3055_p2)
}
  0x6f   : > { %s3059_s4 = scalar_lea.vmem %s604_s3, 16  ;;  %s3066_s0 = scalar_lea.vmem %s604_s3, 32 }
  0x70   : > { %p3060_p4 = scmp.ne.s32.totalorder %s604_s3, %s3059_s4  ;;  %p3067_p5 = scmp.lt.s32.totalorder %s604_s3, %s604_s3 }
  0x71   : > { %p3068_p10 = scmp.lt.s32.totalorder %s3066_s0, %s3059_s4 }
  0x72   : > { %p3062_p7 = pnand %p3060_p4, %p3541_p8 }
  0x73   : > { %p3069_p3 = por %p3068_p10, %p3067_p5 }
  0x74   : > { %p3063_p9 = pneg %p3062_p7 }
  0x76   : > { %p3070_p1 = pnand %p3069_p3, %p3063_p9 }
  0x78   : > { %3073 = shalt.err (!%p3070_p1)
}
  0x79   : > { %2857 = dma.hbm_to_vmem [thread:$0]  (!%p3525_p6), %s4196_s10, 16, %s604_s3, [#allocation14]  }
  0x7a   : > { %s3353_s9 = smov [#allocation9]   ;;  %s3354_s14 = smov [#allocation12]  }
  0x7b   : > { %s565_s13 = sshll.u32 %s3353_s9, 4  ;;  %s589_s15 = sshll.u32 %s3354_s14, 4  ;;  %s566_s13 = int_to_ptr.vmem [resolvable:$true] %s565_s13  ;;  %s590_s15 = int_to_ptr.vmem [resolvable:$true] %s589_s15 }
  0x7c   : > { %s4197_s6 = sld [smem:[#allocation34_spill]] }
  0x82   : > { %s3074_s30 = scalar_lea.hbm %s4197_s6, 16 }
  0x83   : > { %p3075_p1 = scmp.ne.s32.totalorder %s4197_s6, %s3074_s30  ;;  %p3081_p12 = scmp.lt.u32.totalorder %s3074_s30, %s4197_s6 }
  0x85   : > { %p3077_p3 = pnand %p3075_p1, %p3541_p8 }
  0x87   : > { %p3078_p11 = pneg %p3077_p3 }
  0x89   : > { %p3083_p13 = pnand %p3081_p12, %p3078_p11 }
  0x8b   : > { %3086 = shalt.err (!%p3083_p13)
}
  0x8c   : > { %s3087_s3 = scalar_lea.vmem %s566_s13, 16  ;;  %s3094_s19 = scalar_lea.vmem %s566_s13, 32 }
  0x8d   : > { %p3088_p0 = scmp.ne.s32.totalorder %s566_s13, %s3087_s3  ;;  %p3095_p7 = scmp.lt.s32.totalorder %s566_s13, %s566_s13 }
  0x8e   : > { %p3096_p9 = scmp.lt.s32.totalorder %s3094_s19, %s3087_s3 }
  0x8f   : > { %p3090_p2 = pnand %p3088_p0, %p3541_p8 }
  0x90   : > { %p3097_p5 = por %p3096_p9, %p3095_p7 }
  0x91   : > { %p3091_p4 = pneg %p3090_p2 }
  0x93   : > { %p3098_p10 = pnand %p3097_p5, %p3091_p4 }
  0x95   : > { %3101 = shalt.err (!%p3098_p10)
}
  0x96   : > { %2848 = dma.hbm_to_vmem [thread:$0]  (!%p3525_p6), %s4197_s6, 16, %s566_s13, [#allocation8]  }
  0x97   : > { %s4198_s8 = sld [smem:[#allocation36_spill]] }
  0x9d   : > { %s3102_s28 = scalar_lea.hbm %s4198_s8, 16 }
  0x9e   : > { %p3103_p1 = scmp.ne.s32.totalorder %s4198_s8, %s3102_s28  ;;  %p3109_p12 = scmp.lt.u32.totalorder %s3102_s28, %s4198_s8 }
  0xa0   : > { %p3105_p3 = pnand %p3103_p1, %p3541_p8 }
  0xa2   : > { %p3106_p11 = pneg %p3105_p3 }
  0xa4   : > { %p3111_p13 = pnand %p3109_p12, %p3106_p11 }
  0xa6   : > { %3114 = shalt.err (!%p3111_p13)
}
  0xa7   : > { %s3115_s0 = scalar_lea.vmem %s590_s15, 16  ;;  %s3122_s13 = scalar_lea.vmem %s590_s15, 32 }
  0xa8   : > { %p3116_p0 = scmp.ne.s32.totalorder %s590_s15, %s3115_s0  ;;  %p3123_p7 = scmp.lt.s32.totalorder %s590_s15, %s590_s15 }
  0xa9   : > { %p3124_p9 = scmp.lt.s32.totalorder %s3122_s13, %s3115_s0 }
  0xaa   : > { %p3118_p2 = pnand %p3116_p0, %p3541_p8 }
  0xab   : > { %p3125_p5 = por %p3124_p9, %p3123_p7 }
  0xac   : > { %p3119_p4 = pneg %p3118_p2 }
  0xae   : > { %p3126_p10 = pnand %p3125_p5, %p3119_p4 }
  0xb0   : > { %3129 = shalt.err (!%p3126_p10)
}
  0xb1   : > { %2854 = dma.hbm_to_vmem [thread:$0]  (!%p3525_p6), %s4198_s8, 16, %s590_s15, [#allocation11]  }
  0xb2   : > { %s3355_s18 = smov [#allocation15]   ;;  %s3356_s14 = smov [#allocation16]  }
  0xb3   : > { %s614_s9 = sshll.u32 %s3355_s18, 4  ;;  %s625_s20 = sshll.u32 %s3356_s14, 4  ;;  %s615_s9 = int_to_ptr.vmem [resolvable:$true] %s614_s9  ;;  %s626_s20 = int_to_ptr.vmem [resolvable:$true] %s625_s20 }
  0xb4   : > { %s3130_s21 = scalar_lea.hbm %s4147_s11, 16 }
  0xb5   : > { %p3131_p1 = scmp.ne.s32.totalorder %s4147_s11, %s3130_s21  ;;  %p3137_p12 = scmp.lt.u32.totalorder %s3130_s21, %s4147_s11 }
  0xb7   : > { %p3133_p3 = pnand %p3131_p1, %p3541_p8 }
  0xb9   : > { %p3134_p11 = pneg %p3133_p3 }
  0xbb   : > { %p3139_p13 = pnand %p3137_p12, %p3134_p11 }
  0xbd   : > { %3142 = shalt.err (!%p3139_p13)
}
  0xbe   : > { %s3143_s15 = scalar_lea.vmem %s615_s9, 16  ;;  %s3150_s3 = scalar_lea.vmem %s615_s9, 32 }
  0xbf   : > { %p3144_p0 = scmp.ne.s32.totalorder %s615_s9, %s3143_s15  ;;  %p3151_p7 = scmp.lt.s32.totalorder %s615_s9, %s615_s9 }
  0xc0   : > { %p3152_p9 = scmp.lt.s32.totalorder %s3150_s3, %s3143_s15 }
  0xc1   : > { %p3146_p2 = pnand %p3144_p0, %p3541_p8 }
  0xc2   : > { %p3153_p5 = por %p3152_p9, %p3151_p7 }
  0xc3   : > { %p3147_p4 = pneg %p3146_p2 }
  0xc5   : > { %p3154_p10 = pnand %p3153_p5, %p3147_p4 }
  0xc7   : > { %3157 = shalt.err (!%p3154_p10)
}
  0xc8   : > { %2860 = dma.hbm_to_vmem [thread:$0]  (!%p3525_p6), %s4147_s11, 16, %s615_s9, [#allocation14]  }
  0xc9   : > { %s3158_s30 = scalar_lea.hbm %s4148_s12, 16 }
  0xca   : > { %p3159_p1 = scmp.ne.s32.totalorder %s4148_s12, %s3158_s30  ;;  %p3165_p12 = scmp.lt.u32.totalorder %s3158_s30, %s4148_s12 }
  0xcc   : > { %p3161_p3 = pnand %p3159_p1, %p3541_p8 }
  0xce   : > { %p3162_p11 = pneg %p3161_p3 }
  0xd0   : > { %p3167_p13 = pnand %p3165_p12, %p3162_p11 }
  0xd2   : > { %3170 = shalt.err (!%p3167_p13)
}
  0xd3   : > { %s3171_s13 = scalar_lea.vmem %s626_s20, 16  ;;  %s3178_s9 = scalar_lea.vmem %s626_s20, 32 }
  0xd4   : > { %p3172_p0 = scmp.ne.s32.totalorder %s626_s20, %s3171_s13  ;;  %p3179_p7 = scmp.lt.s32.totalorder %s626_s20, %s626_s20 }
  0xd5   : > { %p3180_p9 = scmp.lt.s32.totalorder %s3178_s9, %s3171_s13 }
  0xd6   : > { %p3174_p2 = pnand %p3172_p0, %p3541_p8 }
  0xd7   : > { %p3181_p5 = por %p3180_p9, %p3179_p7 }
  0xd8   : > { %p3175_p4 = pneg %p3174_p2 }
  0xda   : > { %p3182_p10 = pnand %p3181_p5, %p3175_p4 }
  0xdc   : > { %3185 = shalt.err (!%p3182_p10)
}
  0xdd   : > { %2863 = dma.hbm_to_vmem [thread:$0]  (!%p3525_p6), %s4148_s12, 16, %s626_s20, [#allocation17]  }
  0xde   : > { %s2575_s16 = sadd.s32 4294967294, %s3346_s25   ;;  %s56_s19 = sadd.s32 1, %s3342_s2 }
  0xdf   : > { %s117_s29 = sadd.s32 1, %s3334_s23  ;;  %p58_p8 = scmp.ge.s32.totalorder %s56_s19, 2 }
  0xe0   : > { %p124_p1 = scmp.ne.s32.totalorder %s3334_s23, %s3330_s22  ;;  %p125_p3 = scmp.eq.s32.totalorder %s3346_s25, 0 }
  0xe1   : > { %p130_p11 = scmp.ne.s32.totalorder %s3330_s22, %s3326_s1  ;;  %s4233_s19 = smov (%p58_p8, %s56_s19), 0 }
  0xe2   : > { %p3686_p12 = por %p125_p3, %p124_p1  ;;  %p4200_p13 = scmp.ne.s32.totalorder %s4190_s26, 0 }
  0xe3   : > { %s114_s14 = ssub.s32 %s3342_s2, %s4233_s19  ;;  %s4202_s28 = sadd.s32 4294967295, %s3346_s25  }
  0xe4   : > { %p3692_p6 = por %p4200_p13, %p130_p11  ;;  %p492_p0 = scmp.eq.s32.totalorder %s4202_s28, 1 }
  0xe5   : > { %p115_p2 = scmp.eq.s32.totalorder %s114_s14, 0  ;;  %p498_p4 = scmp.eq.s32.totalorder %s2575_s16, 1 }
  0xe6   : > { %p3700_p7 = por %p492_p0, %p124_p1  ;;  %p2882_p9 = scmp.lt.s32.totalorder %s3346_s25, 2 }
  0xe7   : > { %s3706_s21 = scalar_select %p115_p2, %s3334_s23, %s117_s29  }
  0xe8   : > { %s4203_s30 = scalar_select %p3700_p7, 1, 0 }
  0xe9   : > { %p3708_p5 = por %p498_p4, %p130_p11  ;;  %s671_s4 = sand.u32 1, %s3334_s23  }
  0xea   : > { %s2585_s0 = sshll.u32 %s3342_s2, 4  ;;  %s674_s13 = scalar_lea.vmem [#allocation4], %s671_s4 }
  0xeb   : > { %s4204_s17 = scalar_select %p3708_p5, 1, 0 }
  0xec   : > { %s681_s9 = sshll.u32 %s674_s13, 4  ;;  %s4205_s28 = sld [smem:[#allocation30_spill]]  ;;  %s3719_s9 = int_to_ptr.vmem [resolvable:$true] %s681_s9 }
  0xed   : > { %p3723_p10 = pnand %p2882_p9, %p3686_p12  ;;  %s672_s29 = scalar_lea.sflag [#allocation5], %s671_s4 }
  0xef   : > { %p3188_p1 = pneg %p3723_p10 }
  0xf2   : > { %s3717_s14 = scalar_lea.hbm %s4205_s28, %s2585_s0  ;;  %s3191_s3 = scalar_lea.hbm %s4205_s28, 32 }
  0xf3   : > { %s3186_s13 = scalar_lea.hbm %s3717_s14, 16  ;;  %p3192_p12 = scmp.lt.u32.totalorder %s3717_s14, %s4205_s28 }
  0xf4   : > { %p3187_p8 = scmp.ne.s32.totalorder %s3717_s14, %s3186_s13  ;;  %p3193_p13 = scmp.lt.u32.totalorder %s3191_s3, %s3186_s13 }
  0xf5   : > { %p3195_p2 = scmp.lt.u32.totalorder %s3186_s13, %s3717_s14 }
  0xf6   : > { %p3189_p3 = pnand %p3188_p1, %p3187_p8  ;;  %p3194_p0 = por %p3193_p13, %p3192_p12 }
  0xf8   : > { %p3190_p11 = pneg %p3189_p3  ;;  %p3196_p4 = por %p3195_p2, %p3194_p0 }
  0xfa   : > { %p3197_p9 = pnand %p3196_p4, %p3190_p11 }
  0xfc   : > { %3200 = shalt.err (!%p3197_p9)
}
  0xfd   : > { %s3201_s4 = scalar_lea.vmem %s3719_s9, 16  ;;  %s3357_s0 = smov [#allocation4]  }
  0xfe   : > { %p3202_p8 = scmp.ne.s32.totalorder %s3719_s9, %s3201_s4  ;;  %s3206_s15 = sshll.u32 %s3357_s0, 4  ;;  %s3207_s15 = int_to_ptr.vmem [resolvable:$false] %s3206_s15 }
  0xff   : > { %s3208_s5 = scalar_lea.vmem %s3207_s15, 32  ;;  %p3209_p7 = scmp.lt.s32.totalorder %s3719_s9, %s3207_s15 }
 0x100   : > { %p3204_p3 = pnand %p3202_p8, %p3188_p1  ;;  %p3210_p12 = scmp.lt.s32.totalorder %s3208_s5, %s3201_s4 }
 0x102   : > { %p3205_p5 = pneg %p3204_p3  ;;  %p3211_p13 = por %p3210_p12, %p3209_p7 }
 0x104   : > { %p3212_p0 = pnand %p3211_p13, %p3205_p5 }
 0x106   : > { %3215 = shalt.err (!%p3212_p0)
}
 0x107   : > { %2867 = dma.hbm_to_vmem [thread:$0]  (!%p3723_p10), %s3717_s14, 16, %s3719_s9, %s672_s29  }
 0x108   : > { %p4207_p11 = scmp.ne.s32.totalorder %s4191_s27, 0 }
 0x109   : > { %s3755_s13 = sand.u32 (!%p4207_p11), 1, %s3330_s22  }
 0x10a   : > { %690 = sbr.rel (%p4207_p11) target bundleno = 2715 (0xa9b), region = 96  ;;  %s693_s3 = scalar_lea.sflag (!%p4207_p11), [#allocation5], %s3755_s13 }
 0x111   : > { %3297 = dma.done.wait (%p3692_p6), %s693_s3, 16  }
 0x112   : > { %3299 = vsyncadd (%p3692_p6), %s693_s3, 4294967280  ;;  %p4208_p7 = scmp.ne.s32.totalorder %s4190_s26, 0 }
 0x114   : > { %3301 = dma.done.wait (%p4208_p7), [#allocation8], 272  }
 0x115   : > { %3303 = vsyncadd (%p4208_p7), [#allocation8], 4294967024 }
 0x116   : > { %3305 = dma.done.wait (%p4208_p7), [#allocation11], 272  }
 0x117   : > { %3307 = vsyncadd (%p4208_p7), [#allocation11], 4294967024 }
 0x118   : > { %3309 = dma.done.wait (%p4208_p7), [#allocation14], 32  }
 0x119   : > { %3311 = vsyncadd (%p4208_p7), [#allocation14], 4294967264 }
 0x11a   : > { %3313 = dma.done.wait (%p4208_p7), [#allocation17], 16  }
 0x11b   : > { %3315 = vsyncadd (%p4208_p7), [#allocation17], 4294967280  ;;  %p795_p6 = scmp.lt.s32.totalorder %s3338_s24, 1  ;;  %v3358_v0 = vmov 0.0   ;;  %vm3359_vm0 = vmmov 0   ;;  %v2958_v1 = vld [vmem:[#allocation7] sm:$0xff]   ;;  %v959_v26 = vlaneseq }
 0x11c   : > { %2692 = vmatprep.subr.bf16.mxu1 %v3358_v0  ;;  %2708 = vmatprep.subr.bf16.mxu0 %v3358_v0  ;;  %s4209_s14 = sld [smem:[#allocation31_spill]]  ;;  %s4210_s4 = sld [smem:[#allocation29_spill]]  ;;  %v2960_v3 = vld [vmem:[#allocation7 + $0x8] sm:$0xff]   ;;  %vm837_vm1 = vcmask 261120   ;;  %v2598_v9 = vld [vmem:[#allocation9] ss:$0 sm:$0xff] }
 0x11d   : > { %2696 = vmatprep.mubr.msk.bf16.mxu1 %vm3359_vm0, %v3358_v0  ;;  %s796_s27 = scalar_select %p795_p6, %s3338_s24, 1  ;;  %2712 = vmatprep.mubr.msk.bf16.mxu0 %vm3359_vm0, %v3358_v0  ;;  %v2962_v22 = vld [vmem:[#allocation10] sm:$0xff]   ;;  %v2963_v23 = vld [vmem:[#allocation10 + $0x8] sm:$0xff]   ;;  %v3363_v24 = vmov 1983009808   ;;  %v3827_v30 = vshrl.u32 %v959_v26, 7 }
 0x11e   : > { %s4211_s3 = sld [smem:[#allocation28_spill]]  ;;  %2693 = vmatpush3.bf16.msra.mxu1 %v2958_v1  ;;  %s3360_s26 = smov 104   ;;  %v957_v25 = vunpack.c.l.s4 %v3363_v24  ;;  %v3364_v27 = vmov 1934713408   ;;  %vm1094_vm2 = vcmask 60416   ;;  %vm1485_vm3 = vcmask 64512  }
 0x11f   : > { %s2596_s20 = sshll.u32 %s796_s27, 3  ;;  %2694 = vmatprep.subr.bf16.mxu1 %v3358_v0  ;;  %s3361_s9 = smov 120   ;;  %v989_v28 = vunpack.c.l.s4 %v3364_v27  ;;  %vm1730_vm5 = vcmask 1043456   ;;  %vm2258_vm6 = vcmask 523264  }
 0x120   : > { %s3362_s16 = smov 112   ;;  %v958_v29 = vunpack.c.0.s8 %v957_v25  ;;  %s4213_s29 = scalar_lea.vmem [#allocation4], %s3755_s13 }
 0x121   : > { %v990_v33 = vunpack.c.0.s8 %v989_v28  ;;  %s4217_s6 = sld [smem:[#allocation40_spill]]  ;;  %s4219_s27 = sld [smem:[#allocation46_spill]] }
 0x122   : > { %v2959_v2 = vld [vmem:[%s4209_s14] sm:$0xff]   ;;  %s805_s0 = scalar_lea.vmem %s4210_s4, %s2596_s20  ;;  %v2961_v4 = vld [vmem:[%s4209_s14 + $0x8] sm:$0xff]   ;;  %2695 = vmatpush3.bf16.msra.mxu1 %v2960_v3  ;;  %v3830_v34 = vsub.s32 %v958_v29, %v3827_v30  ;;  %s2595_s4 = sshll.u32 %s3755_s13, 4 }
 0x123   : > { %2709 = vmatpush3.bf16.msra.mxu0 %v2959_v2  ;;  %v812_v5 = vld [vmem:[%s805_s0] sm:$0xff]  ;;  %2700 = vmatprep.subr.bf16.mxu1 %v3358_v0  ;;  %v3833_v41 = vsub.s32 %v990_v33, %v3827_v30  ;;  %s3944_s0 = scalar_lea.vmem [#allocation19], %s2595_s4  ;;  %s4215_s4 = sld [smem:[#allocation39_spill]] }
 0x124   : > { %s801_s18 = scalar_lea.vmem %s4211_s3, %s2596_s20  ;;  %2710 = vmatprep.subr.bf16.mxu0 %v3358_v0  ;;  %v813_v7 = vpack.c.bf16 %v812_v5, %v812_v5  ;;  %s4212_s20 = sld [smem:[#allocation32_spill]] }
 0x125   : > { %v3801_v6 = vld [vmem:[%s801_s18] sm:$0xff]  ;;  %s4214_s3 = sld [smem:[#allocation37_spill]]  ;;  %s4216_s18 = sld [smem:[#allocation41_spill]] }
 0x126   : > { %v1253_v8 = vpack.c.bf16 %v3801_v6, %v3801_v6  ;;  %2697 = vmatmul.mubr.msk.bf16.vlgmr.msra.gmra.mrb[0].mxu1 %vm837_vm1, %v813_v7  ;;  %p4220_p10 = scmp.ne.s32.totalorder %s4203_s30, 0 }
 0x127   : > { %2711 = vmatpush3.bf16.msra.mxu0 %v2961_v4  ;;  %2704 = vmatprep.mubr.msk.bf16.mxu1 %vm3359_vm0, %v3358_v0 }
 0x128   : > { %2722 = vmatprep.subr.bf16.mxu0 %v3358_v0  ;;  %2701 = vmatpush3.bf16.msra.mxu1 %v2962_v22 }
 0x129   : > { %2702 = vmatprep.subr.bf16.mxu1 %v3358_v0 }
 0x12a   : > { %2713 = vmatmul.mubr.msk.bf16.vlgmr.msra.gmra.mrb[0].mxu0 %vm837_vm1, %v1253_v8  ;;  %v2610_v10 = vld [vmem:[%s4212_s20] ss:$0 sm:$0xff] }
 0x12b   : > { %2724 = vmatprep.mubr.msk.bf16.mxu0 %vm3359_vm0, %v3358_v0 }
 0x12c   : > { %2703 = vmatpush3.bf16.msra.mxu1 %v2963_v23 }
 0x12d   : > { %2716 = vmatprep.subr.bf16.mxu1 %v3358_v0 }
 0x12f   : > { %2705 = vmatmul.mubr.msk.bf16.vlgmr.msra.gmra.mrb[4].mxu1 %vm837_vm1, %v813_v7 }
 0x130   : > { %2718 = vmatprep.mubr.msk.bf16.mxu1 %vm3359_vm0, %v3358_v0 }
 0x1f9   : > { %v875_v11 = vpop.f32.mrb[0].mxu1 }
 0x1fa   : > { %v876_v12 = vadd.f32 %v2598_v9, %v875_v11  ;;  %v2698_v13 = vpop.f32.mrb[1].mxu1 }
 0x1fb   : > { %v878_v15 = vpop.f32.mrb[2].mxu1 }
 0x1fc   : > { %951 = vrot.lane.b32.xlu1 %v876_v12, %s3360_s26  ;;  %945 = vrot.lane.b32.xlu0 %v876_v12, %s3361_s9  ;;  %v2699_v18 = vpop.f32.mrb[3].mxu1 }
 0x1fd   : > { %v1315_v14 = vpop.f32.mrb[0].mxu0 }
 0x1fe   : > { %v1316_v16 = vadd.f32 %v2610_v10, %v1315_v14  ;;  %v2714_v17 = vpop.f32.mrb[1].mxu0 }
 0x1ff   : > { %v1318_v19 = vpop.f32.mrb[2].mxu0 }
 0x200   : > { %v1321_v20 = vmul.f32 0.35355338, %v1316_v16  ;;  %v2715_v21 = vpop.f32.mrb[3].mxu0  ;;  %948 = vrot.lane.b32.xlu0 %v876_v12, %s3362_s16 }
 0x202   : > { %1323 = vrot.lane.b32.xlu1 %v1321_v20, %s3361_s9 }
 0x204   : > { %1326 = vrot.lane.b32.xlu0 %v1321_v20, %s3362_s16 }
 0x206   : > { %1329 = vrot.lane.b32.xlu1 %v1321_v20, %s3360_s26 }
 0x26e   : > { %v952_v31 = vpop.permute.xlu1 %951  ;;  %v946_v32 = vpop.permute.xlu0 %945 }
 0x26f   : > { %v970_v35 = vcombine.low %v946_v32, %v952_v31  ;;  %v971_v36 = vcombine.high %v946_v32, %v952_v31 }
 0x271   : > { %v978_v42 = vrot.slane %v970_v35, %v3830_v34  ;;  %v985_v43 = vrot.slane %v971_v36, %v3830_v34 }
 0x272   : > { %v949_v37 = vpop.permute.xlu0 %948 }
 0x273   : > { %v954_v39 = vcombine.low %v876_v12, %v949_v37  ;;  %v955_v40 = vcombine.high %v876_v12, %v949_v37 }
 0x274   : > { %v1324_v38 = vpop.permute.xlu1 %1323 }
 0x275   : > { %v962_v44 = vrot.slane %v954_v39, %v3830_v34  ;;  %v969_v45 = vrot.slane %v955_v40, %v3830_v34 }
 0x276   : > { %v1327_v46 = vpop.permute.xlu0 %1326 }
 0x277   : > { %v986_v48 = vcombine.low %v962_v44, %v978_v42  ;;  %v987_v49 = vcombine.high %v962_v44, %v978_v42  ;;  %v1002_v50 = vcombine.low %v969_v45, %v985_v43  ;;  %v1003_v51 = vcombine.high %v969_v45, %v985_v43 }
 0x278   : > { %v1330_v47 = vpop.permute.xlu1 %1329  ;;  %v1332_v52 = vcombine.low %v1321_v20, %v1327_v46  ;;  %v1333_v53 = vcombine.high %v1321_v20, %v1327_v46 }
 0x279   : > { %v1348_v54 = vcombine.low %v1324_v38, %v1330_v47  ;;  %v1349_v55 = vcombine.high %v1324_v38, %v1330_v47  ;;  %v994_v56 = vrot.slane %v986_v48, %v3833_v41  ;;  %v1001_v57 = vrot.slane %v987_v49, %v3833_v41 }
 0x27a   : > { %v1010_v58 = vrot.slane %v1002_v50, %v3833_v41  ;;  %v1017_v59 = vrot.slane %v1003_v51, %v3833_v41  ;;  %v1340_v60 = vrot.slane %v1332_v52, %v3830_v34  ;;  %v1347_v61 = vrot.slane %v1333_v53, %v3830_v34 }
 0x27b   : > { %v1356_v62 = vrot.slane %v1348_v54, %v3830_v34  ;;  %v1363_v63 = vrot.slane %v1349_v55, %v3830_v34  ;;  %v1022_v1 = vcombine.low %v994_v56, %v1001_v57  ;;  %v2606_v2 = vcombine.high %v994_v56, %v1001_v57 }
 0x27c   : > { %v1038_v3 = vcombine.low %v1010_v58, %v1017_v59  ;;  %v2607_v4 = vcombine.high %v1010_v58, %v1017_v59 }
 0x27d   : > { %v1364_v5 = vcombine.low %v1340_v60, %v1356_v62  ;;  %v1365_v7 = vcombine.high %v1340_v60, %v1356_v62  ;;  %v1380_v8 = vcombine.low %v1347_v61, %v1363_v63  ;;  %v1381_v9 = vcombine.high %v1347_v61, %v1363_v63 }
 0x27e   : > { %v1029_v10 = vrot.slane %v1022_v1, %v3830_v34  ;;  %v1037_v11 = vrot.slane %v2606_v2, %v3830_v34  ;;  %v1045_v12 = vrot.slane %v1038_v3, %v3830_v34  ;;  %v1053_v13 = vrot.slane %v2607_v4, %v3830_v34 }
 0x27f   : > { %v1372_v14 = vrot.slane %v1364_v5, %v3833_v41  ;;  %v1379_v15 = vrot.slane %v1365_v7, %v3833_v41  ;;  %v1388_v16 = vrot.slane %v1380_v8, %v3833_v41  ;;  %v1395_v17 = vrot.slane %v1381_v9, %v3833_v41  ;;  %v938_v7 = vpop.f32.mrb[4].mxu1 }
 0x280   : > { %v1054_v18 = vcombine.low %v1029_v10, %v1037_v11  ;;  %v1055_v19 = vcombine.high %v1029_v10, %v1037_v11  ;;  %v1070_v20 = vcombine.low %v1045_v12, %v1053_v13  ;;  %v1071_v21 = vcombine.high %v1045_v12, %v1053_v13  ;;  %v2706_v8 = vpop.f32.mrb[5].mxu1  ;;  %v1476_v11 = vld [vmem:[%s4213_s29] sm:$0x1]  ;;  %s2367_s29 = sshll.u32 %s3944_s0, 4  ;;  %s4049_s29 = int_to_ptr.vmem [resolvable:$true] %s2367_s29 }
 0x281   : > { %v1400_v22 = vcombine.low %v1372_v14, %v1379_v15  ;;  %v2614_v23 = vcombine.high %v1372_v14, %v1379_v15  ;;  %v1416_v24 = vcombine.low %v1388_v16, %v1395_v17  ;;  %v2615_v25 = vcombine.high %v1388_v16, %v1395_v17  ;;  %v941_v9 = vpop.f32.mrb[6].mxu1 }
 0x282   : > { %v1062_v26 = vrot.slane %v1054_v18, %v3833_v41  ;;  %v1069_v27 = vrot.slane %v1055_v19, %v3833_v41  ;;  %v1078_v28 = vrot.slane %v1070_v20, %v3833_v41  ;;  %v1085_v29 = vrot.slane %v1071_v21, %v3833_v41  ;;  %v2707_v10 = vpop.f32.mrb[7].mxu1 }
 0x283   : > { %v1407_v36 = vrot.slane %v1400_v22, %v3830_v34  ;;  %v1415_v37 = vrot.slane %v2614_v23, %v3830_v34  ;;  %v1423_v38 = vrot.slane %v1416_v24, %v3830_v34  ;;  %v1431_v39 = vrot.slane %v2615_v25, %v3830_v34 }
 0x284   : > { %v1086_v31 = vcombine.low %v1062_v26, %v1078_v28  ;;  %v1087_v32 = vcombine.high %v1062_v26, %v1078_v28  ;;  %v1088_v33 = vcombine.low %v1069_v27, %v1085_v29  ;;  %v1089_v35 = vcombine.high %v1069_v27, %v1085_v29 }
 0x285   : > { %v1432_v45 = vcombine.low %v1407_v36, %v1415_v37  ;;  %v1448_v46 = vcombine.low %v1423_v38, %v1431_v39  ;;  %v1433_v53 = vcombine.high %v1407_v36, %v1415_v37  ;;  %v1449_v54 = vcombine.high %v1423_v38, %v1431_v39 }
 0x286   : > { %v1090_v40 = vpack.c.bf16 %v1086_v31, %v1086_v31  ;;  %v1091_v42 = vpack.c.bf16 %v1087_v32, %v1087_v32  ;;  %v1092_v43 = vpack.c.bf16 %v1088_v33, %v1088_v33  ;;  %v1093_v44 = vpack.c.bf16 %v1089_v35, %v1089_v35 }
 0x287   : > { %v1440_v47 = vrot.slane %v1432_v45, %v3833_v41  ;;  %v1456_v48 = vrot.slane %v1448_v46, %v3833_v41  ;;  %v1447_v61 = vrot.slane %v1433_v53, %v3833_v41  ;;  %v1463_v62 = vrot.slane %v1449_v54, %v3833_v41 }
 0x288   : > { %1095 = vst.msk [vmem:[#allocation2] sm:$0xf] %vm1094_vm2, %v1090_v40  ;;  %1096 = vst.msk [vmem:[#allocation2 + $0x4] sm:$0xf] %vm1094_vm2, %v1091_v42  ;;  %vm1477_vm4 = vcmp.gt.f32.partialorder %v1476_v11, 0.0  ;;  %v1482_v12 = vsub.s32 0, %v3827_v30 }
 0x289   : > { %1097 = vst.msk [vmem:[#allocation2 + $0x8] sm:$0xf] %vm1094_vm2, %v1092_v43  ;;  %1098 = vst.msk [vmem:[#allocation2 + $0xc] sm:$0xf] %vm1094_vm2, %v1093_v44  ;;  %v1464_v55 = vcombine.low %v1440_v47, %v1456_v48  ;;  %v1465_v56 = vcombine.high %v1440_v47, %v1456_v48  ;;  %v1466_v2 = vcombine.low %v1447_v61, %v1463_v62  ;;  %v3365_v13 = vmov -1e+09  }
 0x28a   : > { %v1467_v3 = vcombine.high %v1447_v61, %v1463_v62  ;;  %v1478_v14 = vsel %vm1477_vm4, 0.0, %v3365_v13  ;;  %v2602_v42 = vld [vmem:[#allocation12] ss:$0 sm:$0xff] }
 0x28b   : > { %v1468_v59 = vpack.c.bf16 %v1464_v55, %v1464_v55  ;;  %v1469_v60 = vpack.c.bf16 %v1465_v56, %v1465_v56  ;;  %v1470_v4 = vpack.c.bf16 %v1466_v2, %v1466_v2  ;;  %v1483_v15 = vrot.slane %v1478_v14, %v1482_v12 }
 0x28c   : > { %v1471_v5 = vpack.c.bf16 %v1467_v3, %v1467_v3  ;;  %v939_v43 = vadd.f32 %v2602_v42, %v938_v7 }
 0x28f   : > { %v1472_v49 = vld [vmem:[#allocation2] sm:$0xf]  ;;  %v1473_v50 = vld [vmem:[#allocation2 + $0x4] sm:$0xf] }
 0x290   : > { %v1490_v51 = vsel %vm1485_vm3, %v1472_v49, 0  ;;  %v1536_v52 = vsel %vm1485_vm3, %v1473_v50, 0  ;;  %v1474_v57 = vld [vmem:[#allocation2 + $0x8] sm:$0xf]  ;;  %v1475_v58 = vld [vmem:[#allocation2 + $0xc] sm:$0xf] }
 0x291   : > { %2717 = vmatpush3.bf16.xpose.msra.mxu1 %v1490_v51  ;;  %2723 = vmatpush3.bf16.xpose.msra.mxu0 %v1536_v52  ;;  %v1582_v63 = vsel %vm1485_vm3, %v1474_v57, 0  ;;  %v1628_v1 = vsel %vm1485_vm3, %v1475_v58, 0 }
 0x292   : > { %2728 = vmatprep.subr.bf16.mxu1 %v3358_v0  ;;  %2734 = vmatprep.subr.bf16.mxu0 %v3358_v0 }
 0x298   : > { %2719 = vmatmul.mubr.msk.bf16.vlgmr.msra.gmra.mrb[8].mxu1 %vm1485_vm3, %v1468_v59  ;;  %2725 = vmatmul.mubr.msk.bf16.vlgmr.msra.gmra.mrb[4].mxu0 %vm1485_vm3, %v1469_v60 }
 0x299   : > { %2729 = vmatpush3.bf16.xpose.msra.mxu1 %v1582_v63  ;;  %2735 = vmatpush3.bf16.xpose.msra.mxu0 %v1628_v1 }
 0x29a   : > { %2730 = vmatprep.mubr.msk.bf16.mxu1 %vm3359_vm0, %v3358_v0  ;;  %2736 = vmatprep.mubr.msk.bf16.mxu0 %vm3359_vm0, %v3358_v0 }
 0x29b   : > { %2740 = vmatprep.subr.bf16.mxu1 %v3358_v0  ;;  %2746 = vmatprep.subr.bf16.mxu0 %v3358_v0 }
 0x2a0   : > { %2731 = vmatmul.mubr.msk.bf16.vlgmr.msra.gmra.mrb[12].mxu1 %vm1485_vm3, %v1470_v4  ;;  %2737 = vmatmul.mubr.msk.bf16.vlgmr.msra.gmra.mrb[8].mxu0 %vm1485_vm3, %v1471_v5 }
 0x2a1   : > { %2742 = vmatprep.mubr.msk.bf16.mxu1 %vm3359_vm0, %v3358_v0  ;;  %2748 = vmatprep.mubr.msk.bf16.mxu0 %vm3359_vm0, %v3358_v0 }
 0x36b   : > { %v1526_v16 = vpop.f32.mrb[8].mxu1  ;;  %v1572_v17 = vpop.f32.mrb[4].mxu0 }
 0x36c   : > { %v1527_v18 = vadd.f32 %v1526_v16, %v1483_v15  ;;  %v1573_v19 = vadd.f32 %v1572_v17, %v1483_v15  ;;  %v2720_v20 = vpop.f32.mrb[9].mxu1  ;;  %v2726_v21 = vpop.f32.mrb[5].mxu0 }
 0x36d   : > { %v1529_v22 = vpop.f32.mrb[10].mxu1  ;;  %v1575_v23 = vpop.f32.mrb[6].mxu0 }
 0x36e   : > { %v2721_v24 = vpop.f32.mrb[11].mxu1  ;;  %v2727_v25 = vpop.f32.mrb[7].mxu0  ;;  %v1670_v26 = vsel %vm1485_vm3, %v1527_v18, -inf  ;;  %v1673_v27 = vsel %vm1485_vm3, %v1573_v19, -inf }
 0x36f   : > { %1671 = vmax.xlane.f32.xlu0 %v1670_v26  ;;  %1674 = vmax.xlane.f32.xlu1 %v1673_v27 }
 0x373   : > { %v1618_v30 = vpop.f32.mrb[12].mxu1  ;;  %v1664_v28 = vpop.f32.mrb[8].mxu0 }
 0x374   : > { %v1619_v29 = vadd.f32 %v1618_v30, %v1483_v15  ;;  %v2732_v31 = vpop.f32.mrb[13].mxu1  ;;  %v2738_v32 = vpop.f32.mrb[9].mxu0  ;;  %v1665_v36 = vadd.f32 %v1664_v28, %v1483_v15 }
 0x375   : > { %v1621_v33 = vpop.f32.mrb[14].mxu1  ;;  %v1667_v35 = vpop.f32.mrb[10].mxu0 }
 0x376   : > { %v2733_v37 = vpop.f32.mrb[15].mxu1  ;;  %v2739_v38 = vpop.f32.mrb[11].mxu0  ;;  %v1676_v39 = vsel %vm1485_vm3, %v1619_v29, -inf  ;;  %v1679_v40 = vsel %vm1485_vm3, %v1665_v36, -inf }
 0x377   : > { %1677 = vmax.xlane.f32.xlu0 %v1676_v39 }
 0x37b   : > { %1680 = vmax.xlane.f32.xlu0 %v1679_v40 }
 0x380   : > { %1100 = vrot.lane.b32.xlu1 %v939_v43, %s3361_s9  ;;  %s4218_s9 = sld [smem:[#allocation42_spill]] }
 0x384   : > { %1106 = vrot.lane.b32.xlu1 %v939_v43, %s3360_s26  ;;  %s3216_s26 = scalar_lea.vmem %s4049_s29, 256 }
 0x385   : > { %p3217_p5 = scmp.ne.s32.totalorder %s4049_s29, %s3216_s26 }
 0x387   : > { %p3218_p1 = pnand %p3217_p5, %p4220_p10 }
 0x389   : > { %p3219_p2 = pneg %p3218_p1 }
 0x391   : > { %1103 = vrot.lane.b32.xlu0 %v939_v43, %s3362_s16  ;;  %s2650_s16 = sshll.u32 %s3338_s24, 8 }
 0x3fc   : > { %v1672_v44 = vpop.xlane.xlu0 %1671  ;;  %v1675_v45 = vpop.xlane.xlu1 %1674 }
 0x3fd   : > { %v1682_v46 = vsub.f32 %v1527_v18, %v1672_v44  ;;  %v1683_v47 = vsub.f32 %v1573_v19, %v1675_v45 }
 0x3ff   : > { %v1686_v48 = vmul.f32 1.442695, %v1682_v46  ;;  %v1688_v49 = vmul.f32 1.442695, %v1683_v47 }
 0x400   : > { %v1101_v50 = vpop.permute.xlu1 %1100 }
 0x401   : > { %2970 = vpow2.f32 %v1686_v48 }
 0x402   : > { %2972 = vpow2.f32 %v1688_v49 }
 0x404   : > { %v1678_v51 = vpop.xlane.xlu0 %1677  ;;  %v1107_v54 = vpop.permute.xlu1 %1106 }
 0x405   : > { %v1684_v52 = vsub.f32 %v1619_v29, %v1678_v51  ;;  %v1125_v58 = vcombine.low %v1101_v50, %v1107_v54  ;;  %v1126_v59 = vcombine.high %v1101_v50, %v1107_v54 }
 0x407   : > { %v1690_v53 = vmul.f32 1.442695, %v1684_v52  ;;  %v1133_v4 = vrot.slane %v1125_v58, %v3830_v34  ;;  %v1140_v5 = vrot.slane %v1126_v59, %v3830_v34 }
 0x408   : > { %v1681_v55 = vpop.xlane.xlu0 %1680 }
 0x409   : > { %2974 = vpow2.f32 %v1690_v53  ;;  %v1685_v56 = vsub.f32 %v1665_v36, %v1681_v55 }
 0x40b   : > { %v3901_v57 = vpop.eup %2970  ;;  %v1692_v60 = vmul.f32 1.442695, %v1685_v56 }
 0x40c   : > { %v3903_v61 = vpop.eup %2972  ;;  %v1104_v62 = vpop.permute.xlu0 %1103  ;;  %v1694_v63 = vsel %vm1485_vm3, %v3901_v57, 0.0 }
 0x40d   : > { %2976 = vpow2.f32 %v1692_v60  ;;  %v1109_v1 = vcombine.low %v939_v43, %v1104_v62  ;;  %v1110_v2 = vcombine.high %v939_v43, %v1104_v62  ;;  %1695 = vadd.xlane.f32.xlu1 %v1694_v63  ;;  %v1697_v3 = vsel %vm1485_vm3, %v3903_v61, 0.0 }
 0x40e   : > { %1698 = vadd.xlane.f32.xlu0 %v1697_v3 }
 0x40f   : > { %v1117_v7 = vrot.slane %v1109_v1, %v3830_v34  ;;  %v1124_v8 = vrot.slane %v1110_v2, %v3830_v34  ;;  %v1916_v1 = vld [vmem:[%s4214_s3] sm:$0xf] }
 0x411   : > { %v1141_v9 = vcombine.low %v1117_v7, %v1133_v4  ;;  %v1142_v10 = vcombine.high %v1117_v7, %v1133_v4  ;;  %v1157_v11 = vcombine.low %v1124_v8, %v1140_v5  ;;  %v1158_v12 = vcombine.high %v1124_v8, %v1140_v5 }
 0x412   : > { %v1924_v4 = vsel %vm1730_vm5, %v1916_v1, 0 }
 0x413   : > { %v3913_v13 = vpop.eup %2974  ;;  %v1149_v14 = vrot.slane %v1141_v9, %v3833_v41  ;;  %v1156_v15 = vrot.slane %v1142_v10, %v3833_v41  ;;  %v1165_v16 = vrot.slane %v1157_v11, %v3833_v41  ;;  %v1172_v17 = vrot.slane %v1158_v12, %v3833_v41  ;;  %v1917_v9 = vld [vmem:[%s4214_s3 + $0x4] sm:$0xf]  ;;  %v1918_v11 = vld [vmem:[%s4214_s3 + $0x8] sm:$0xf]  ;;  %v1919_v12 = vld [vmem:[%s4214_s3 + $0xc] sm:$0xf] }
 0x414   : > { %v1700_v18 = vsel %vm1485_vm3, %v3913_v13, 0.0  ;;  %v1970_v10 = vsel %vm1730_vm5, %v1917_v9, 0 }
 0x415   : > { %v1177_v19 = vcombine.low %v1149_v14, %v1156_v15  ;;  %v2608_v20 = vcombine.high %v1149_v14, %v1156_v15  ;;  %v1193_v21 = vcombine.low %v1165_v16, %v1172_v17  ;;  %v2609_v22 = vcombine.high %v1165_v16, %v1172_v17  ;;  %1701 = vadd.xlane.f32.xlu0 %v1700_v18 }
 0x416   : > { %v2016_v17 = vsel %vm1730_vm5, %v1918_v11, 0 }
 0x417   : > { %v3921_v23 = vpop.eup %2976  ;;  %v1184_v24 = vrot.slane %v1177_v19, %v3830_v34  ;;  %v1192_v25 = vrot.slane %v2608_v20, %v3830_v34  ;;  %v1200_v26 = vrot.slane %v1193_v21, %v3830_v34  ;;  %v1208_v27 = vrot.slane %v2609_v22, %v3830_v34 }
 0x418   : > { %v1703_v30 = vsel %vm1485_vm3, %v3921_v23, 0.0  ;;  %v2062_v21 = vsel %vm1730_vm5, %v1919_v12, 0  ;;  %v2629_v12 = vld [vmem:[#allocation15] ss:$0 sm:$0xff] }
 0x419   : > { %v1209_v28 = vcombine.low %v1184_v24, %v1192_v25  ;;  %v1210_v29 = vcombine.high %v1184_v24, %v1192_v25  ;;  %v1225_v31 = vcombine.low %v1200_v26, %v1208_v27  ;;  %v1226_v32 = vcombine.high %v1200_v26, %v1208_v27  ;;  %1704 = vadd.xlane.f32.xlu1 %v1703_v30 }
 0x41b   : > { %v1217_v33 = vrot.slane %v1209_v28, %v3833_v41  ;;  %v1224_v35 = vrot.slane %v1210_v29, %v3833_v41  ;;  %v1233_v36 = vrot.slane %v1225_v31, %v3833_v41  ;;  %v1240_v37 = vrot.slane %v1226_v32, %v3833_v41 }
 0x41d   : > { %v1241_v38 = vcombine.low %v1217_v33, %v1233_v36  ;;  %v1242_v39 = vcombine.high %v1217_v33, %v1233_v36  ;;  %v1243_v40 = vcombine.low %v1224_v35, %v1240_v37  ;;  %v1244_v34 = vcombine.high %v1224_v35, %v1240_v37 }
 0x41f   : > { %v1245_v42 = vpack.c.bf16 %v1241_v38, %v1241_v38  ;;  %v1246_v43 = vpack.c.bf16 %v1242_v39, %v1242_v39  ;;  %v1247_v44 = vpack.c.bf16 %v1243_v40, %v1243_v40  ;;  %v1248_v45 = vpack.c.bf16 %v1244_v34, %v1244_v34 }
 0x421   : > { %1249 = vst.msk [vmem:[#allocation3] sm:$0xf] %vm1094_vm2, %v1245_v42  ;;  %1250 = vst.msk [vmem:[#allocation3 + $0x4] sm:$0xf] %vm1094_vm2, %v1246_v43 }
 0x422   : > { %1251 = vst.msk [vmem:[#allocation3 + $0x8] sm:$0xf] %vm1094_vm2, %v1247_v44  ;;  %1252 = vst.msk [vmem:[#allocation3 + $0xc] sm:$0xf] %vm1094_vm2, %v1248_v45 }
 0x428   : > { %v1723_v46 = vld [vmem:[#allocation3] sm:$0xf]  ;;  %v1724_v41 = vld [vmem:[#allocation3 + $0x4] sm:$0xf] }
 0x429   : > { %v1732_v47 = vsel %vm1730_vm5, %v1723_v46, 0  ;;  %v1778_v48 = vsel %vm1730_vm5, %v1724_v41, 0  ;;  %v1725_v58 = vld [vmem:[#allocation3 + $0x8] sm:$0xf]  ;;  %v1726_v60 = vld [vmem:[#allocation3 + $0xc] sm:$0xf] }
 0x42a   : > { %2741 = vmatpush3.bf16.msra.mxu1 %v1732_v47  ;;  %2747 = vmatpush3.bf16.msra.mxu0 %v1778_v48  ;;  %v1824_v63 = vsel %vm1730_vm5, %v1725_v58, 0 }
 0x42b   : > { %2752 = vmatprep.subr.bf16.mxu1 %v3358_v0  ;;  %2758 = vmatprep.subr.bf16.mxu0 %v3358_v0 }
 0x49a   : > { %v1696_v49 = vpop.xlane.xlu1 %1695 }
 0x49b   : > { %2978 = vrcp.f32 %v1696_v49  ;;  %v1699_v50 = vpop.xlane.xlu0 %1698 }
 0x49c   : > { %2980 = vrcp.f32 %v1699_v50 }
 0x4a2   : > { %v1702_v51 = vpop.xlane.xlu0 %1701 }
 0x4a3   : > { %2982 = vrcp.f32 %v1702_v51 }
 0x4a5   : > { %v2979_v52 = vpop.eup %2978 }
 0x4a6   : > { %v2981_v53 = vpop.eup %2980  ;;  %v1707_v54 = vmul.f32 %v2979_v52, %v3901_v57  ;;  %v1705_v55 = vpop.xlane.xlu1 %1704  ;;  %v1870_v57 = vsel %vm1730_vm5, %v1726_v60, 0 }
 0x4a7   : > { %v1709_v56 = vmul.f32 %v2981_v53, %v3903_v61  ;;  %2984 = vrcp.f32 %v1705_v55 }
 0x4a8   : > { %v1714_v59 = vpack.c.bf16 %v1707_v54, %v1707_v54  ;;  %v2628_v54 = vld [vmem:[#allocation13] ss:$0 sm:$0xff] }
 0x4a9   : > { %v1715_v62 = vpack.c.bf16 %v1709_v56, %v1709_v56 }
 0x4aa   : > { %1719 = vst.msk [vmem:[%s3944_s0] sm:$0xf] %vm1094_vm2, %v1714_v59  ;;  %2743 = vmatmul.mubr.msk.bf16.vlgmr.msra.gmra.mrb[16].mxu1 %vm1485_vm3, %v1714_v59 }
 0x4ab   : > { %1720 = vst.msk [vmem:[%s3944_s0 + $0x4] sm:$0xf] %vm1094_vm2, %v1715_v62  ;;  %2749 = vmatmul.mubr.msk.bf16.vlgmr.msra.gmra.mrb[12].mxu0 %vm1485_vm3, %v1715_v62  ;;  %2753 = vmatpush3.bf16.msra.mxu1 %v1824_v63 }
 0x4ac   : > { %2759 = vmatpush3.bf16.msra.mxu0 %v1870_v57  ;;  %2754 = vmatprep.mubr.msk.bf16.mxu1 %vm3359_vm0, %v3358_v0 }
 0x4ad   : > { %v2983_v61 = vpop.eup %2982  ;;  %2760 = vmatprep.mubr.msk.bf16.mxu0 %vm3359_vm0, %v3358_v0  ;;  %2764 = vmatprep.subr.bf16.mxu1 %v3358_v0 }
 0x4ae   : > { %v1711_v2 = vmul.f32 %v2983_v61, %v3913_v13  ;;  %2770 = vmatprep.subr.bf16.mxu0 %v3358_v0 }
 0x4b0   : > { %v1716_v3 = vpack.c.bf16 %v1711_v2, %v1711_v2 }
 0x4b1   : > { %v2985_v5 = vpop.eup %2984 }
 0x4b2   : > { %v1713_v7 = vmul.f32 %v2985_v5, %v3921_v23  ;;  %1721 = vst.msk [vmem:[%s3944_s0 + $0x8] sm:$0xf] %vm1094_vm2, %v1716_v3  ;;  %2755 = vmatmul.mubr.msk.bf16.vlgmr.msra.gmra.mrb[20].mxu1 %vm1485_vm3, %v1716_v3  ;;  %v2965_v5 = vld [vmem:[%s4215_s4 + $0x8] sm:$0xff]  }
 0x4b3   : > { %2765 = vmatpush3.bf16.msra.mxu1 %v1924_v4  ;;  %2766 = vmatprep.mubr.msk.bf16.mxu1 %vm3359_vm0, %v3358_v0  ;;  %v2964_v4 = vld [vmem:[%s4215_s4] sm:$0xff]  }
 0x4b4   : > { %v1717_v8 = vpack.c.bf16 %v1713_v7, %v1713_v7  ;;  %2776 = vmatprep.subr.bf16.mxu1 %v3358_v0  ;;  %v2967_v7 = vld [vmem:[%s4216_s18 + $0x8] sm:$0xff]  }
 0x4b6   : > { %1722 = vst.msk [vmem:[%s3944_s0 + $0xc] sm:$0xf] %vm1094_vm2, %v1717_v8  ;;  %2761 = vmatmul.mubr.msk.bf16.vlgmr.msra.gmra.mrb[16].mxu0 %vm1485_vm3, %v1717_v8 }
 0x4b7   : > { %2772 = vmatprep.mubr.msk.bf16.mxu0 %vm3359_vm0, %v3358_v0  ;;  %2771 = vmatpush3.bf16.msra.mxu0 %v1970_v10 }
 0x4b8   : > { %2782 = vmatprep.subr.bf16.mxu0 %v3358_v0 }
 0x57d   : > { %v1768_v13 = vpop.f32.mrb[16].mxu1 }
 0x57e   : > { %v1912_v14 = vpack.c.bf16 %v1768_v13, %v1768_v13  ;;  %v1814_v15 = vpop.f32.mrb[12].mxu0  ;;  %v2744_v16 = vpop.f32.mrb[17].mxu1 }
 0x57f   : > { %v1913_v18 = vpack.c.bf16 %v1814_v15, %v1814_v15  ;;  %v2750_v19 = vpop.f32.mrb[13].mxu0  ;;  %v1771_v20 = vpop.f32.mrb[18].mxu1 }
 0x580   : > { %v1817_v22 = vpop.f32.mrb[14].mxu0  ;;  %v2745_v23 = vpop.f32.mrb[19].mxu1  ;;  %2767 = vmatmul.mubr.msk.bf16.vlgmr.msra.gmra.mrb[24].mxu1 %vm1485_vm3, %v1912_v14  ;;  %v2630_v14 = vld [vmem:[#allocation16] ss:$0 sm:$0xff]  ;;  %v2969_v19 = vld [vmem:[%s4216_s18 + $0x18] sm:$0xff]  }
 0x581   : > { %v2751_v24 = vpop.f32.mrb[15].mxu0  ;;  %2773 = vmatmul.mubr.msk.bf16.vlgmr.msra.gmra.mrb[20].mxu0 %vm1485_vm3, %v1913_v18  ;;  %2777 = vmatpush3.bf16.msra.mxu1 %v2016_v17  ;;  %v2968_v18 = vld [vmem:[%s4216_s18 + $0x10] sm:$0xff]   ;;  %v2631_v20 = vld [vmem:[%s4217_s6] ss:$0 sm:$0xff]  ;;  %s4047_s6 = scalar_lea.hbm %s4219_s27, %s2650_s16 }
 0x582   : > { %2783 = vmatpush3.bf16.msra.mxu0 %v2062_v21  ;;  %2778 = vmatprep.mubr.msk.bf16.mxu1 %vm3359_vm0, %v3358_v0 }
 0x583   : > { %2784 = vmatprep.mubr.msk.bf16.mxu0 %vm3359_vm0, %v3358_v0  ;;  %2788 = vmatprep.subr.bf16.mxu1 %v3358_v0 }
 0x584   : > { %2796 = vmatprep.subr.bf16.mxu0 %v3358_v0 }
 0x585   : > { %v1860_v25 = vpop.f32.mrb[20].mxu1 }
 0x586   : > { %v1914_v26 = vpack.c.bf16 %v1860_v25, %v1860_v25  ;;  %v2756_v27 = vpop.f32.mrb[21].mxu1 }
 0x587   : > { %v1863_v30 = vpop.f32.mrb[22].mxu1 }
 0x588   : > { %v2757_v28 = vpop.f32.mrb[23].mxu1  ;;  %2779 = vmatmul.mubr.msk.bf16.vlgmr.msra.gmra.mrb[28].mxu1 %vm1485_vm3, %v1914_v26 }
 0x589   : > { %v1906_v29 = vpop.f32.mrb[16].mxu0  ;;  %2792 = vmatprep.mubr.msk.bf16.mxu1 %vm3359_vm0, %v3358_v0  ;;  %2789 = vmatpush3.bf16.msra.mxu1 %v2964_v4 }
 0x58a   : > { %v1915_v31 = vpack.c.bf16 %v1906_v29, %v1906_v29  ;;  %v2762_v32 = vpop.f32.mrb[17].mxu0  ;;  %2790 = vmatprep.subr.bf16.mxu1 %v3358_v0 }
 0x58b   : > { %v1909_v33 = vpop.f32.mrb[18].mxu0 }
 0x58c   : > { %v2763_v35 = vpop.f32.mrb[19].mxu0  ;;  %2785 = vmatmul.mubr.msk.bf16.vlgmr.msra.gmra.mrb[24].mxu0 %vm1485_vm3, %v1915_v31 }
 0x58d   : > { %2804 = vmatprep.mubr.msk.bf16.mxu0 %vm3359_vm0, %v3358_v0  ;;  %2791 = vmatpush3.bf16.msra.mxu1 %v2965_v5 }
 0x653   : > { %v1960_v36 = vpop.f32.mrb[24].mxu1 }
 0x654   : > { %v2104_v37 = vsel %vm837_vm1, %v1960_v36, 0.0  ;;  %v2006_v38 = vpop.f32.mrb[20].mxu0  ;;  %v2768_v39 = vpop.f32.mrb[25].mxu1 }
 0x655   : > { %v2105_v40 = vsel %vm837_vm1, %v2006_v38, 0.0  ;;  %v2774_v34 = vpop.f32.mrb[21].mxu0  ;;  %v1963_v42 = vpop.f32.mrb[26].mxu1 }
 0x656   : > { %v2106_v43 = vadd.f32 %v2105_v40, %v2104_v37  ;;  %v2009_v44 = vpop.f32.mrb[22].mxu0  ;;  %v2769_v45 = vpop.f32.mrb[27].mxu1 }
 0x657   : > { %v2775_v46 = vpop.f32.mrb[23].mxu0 }
 0x65b   : > { %v2052_v41 = vpop.f32.mrb[28].mxu1 }
 0x65c   : > { %v2107_v47 = vsel %vm837_vm1, %v2052_v41, 0.0  ;;  %v2780_v48 = vpop.f32.mrb[29].mxu1 }
 0x65d   : > { %v2108_v49 = vadd.f32 %v2107_v47, %v2106_v43  ;;  %v2055_v50 = vpop.f32.mrb[30].mxu1 }
 0x65e   : > { %v2781_v51 = vpop.f32.mrb[31].mxu1 }
 0x65f   : > { %v2098_v52 = vpop.f32.mrb[24].mxu0 }
 0x660   : > { %v2109_v53 = vsel %vm837_vm1, %v2098_v52, 0.0  ;;  %v2786_v55 = vpop.f32.mrb[25].mxu0 }
 0x661   : > { %v2110_v56 = vadd.f32 %v2109_v53, %v2108_v49  ;;  %v2101_v58 = vpop.f32.mrb[26].mxu0 }
 0x662   : > { %v2787_v59 = vpop.f32.mrb[27].mxu0 }
 0x663   : > { %v2118_v60 = vadd.f32 %v2628_v54, %v2110_v56 }
 0x665   : > { %v2119_v62 = vadd.f32 %v2118_v60, %v3801_v6  ;;  %v2966_v6 = vld [vmem:[%s4216_s18] sm:$0xff]  }
 0x666   : > { %2797 = vmatpush3.bf16.msra.mxu0 %v2966_v6 }
 0x667   : > { %v2120_v63 = vsel %vm837_vm1, %v2119_v62, 0.0  ;;  %2798 = vmatprep.subr.bf16.mxu0 %v3358_v0 }
 0x668   : > { %2121 = vadd.xlane.f32.xlu0 %v2120_v63 }
 0x66a   : > { %2799 = vmatpush3.bf16.msra.mxu0 %v2967_v7 }
 0x66b   : > { %2800 = vmatprep.subr.bf16.mxu0 %v3358_v0 }
 0x66e   : > { %2801 = vmatpush3.bf16.msra.mxu0 %v2968_v18 }
 0x66f   : > { %2802 = vmatprep.subr.bf16.mxu0 %v3358_v0  ;;  %v2635_v0 = vld [vmem:[%s4218_s9] ss:$0 sm:$0xff]  ;;  %s3366_s9 = smov [#allocation19]  }
 0x670   : > { %s3220_s3 = sshll.u32 %s3366_s9, 4  ;;  %s3221_s3 = int_to_ptr.vmem [resolvable:$false] %s3220_s3 }
 0x671   : > { %s3222_s0 = scalar_lea.vmem %s3221_s3, 512  ;;  %p3223_p4 = scmp.lt.s32.totalorder %s4049_s29, %s3221_s3 }
 0x672   : > { %2803 = vmatpush3.bf16.msra.mxu0 %v2969_v19  ;;  %p3224_p9 = scmp.lt.s32.totalorder %s3222_s0, %s3216_s26 }
 0x674   : > { %p3225_p8 = por %p3224_p9, %p3223_p4 }
 0x676   : > { %p3226_p3 = pnand %p3225_p8, %p3219_p2 }
 0x6f5   : > { %v2122_v57 = vpop.xlane.xlu0 %2121 }
 0x6f6   : > { %v2124_v61 = vmul.f32 0.03125, %v2122_v57 }
 0x6f8   : > { %v2125_v1 = vsub.f32 %v2119_v62, %v2124_v61 }
 0x6fa   : > { %v2126_v2 = vmul.f32 %v2125_v1, %v2125_v1 }
 0x6fc   : > { %v2127_v3 = vsel %vm837_vm1, %v2126_v2, 0.0 }
 0x6fd   : > { %2128 = vadd.xlane.f32.xlu1 %v2127_v3 }
 0x78a   : > { %v2129_v8 = vpop.xlane.xlu1 %2128 }
 0x78b   : > { %v2130_v9 = vmul.f32 0.03125, %v2129_v8 }
 0x78d   : > { %v2131_v10 = vadd.f32 1e-05, %v2130_v9 }
 0x78f   : > { %2986 = vrsqrt.f32 %v2131_v10 }
 0x799   : > { %v2987_v11 = vpop.eup %2986 }
 0x79a   : > { %v2133_v13 = vmul.f32 %v2987_v11, %v2125_v1 }
 0x79c   : > { %v2141_v15 = vmul.f32 %v2629_v12, %v2133_v13 }
 0x79e   : > { %v2149_v16 = vadd.f32 %v2630_v14, %v2141_v15 }
 0x7a0   : > { %v2150_v17 = vpack.c.bf16 %v2149_v16, %v2149_v16 }
 0x7a2   : > { %2793 = vmatmul.mubr.msk.bf16.vlgmr.msra.gmra.mrb[32].mxu1 %vm837_vm1, %v2150_v17 }
 0x875   : > { %v2211_v21 = vpop.f32.mrb[32].mxu1 }
 0x876   : > { %v2212_v22 = vadd.f32 %v2631_v20, %v2211_v21  ;;  %v2794_v23 = vpop.f32.mrb[33].mxu1 }
 0x877   : > { %v2214_v24 = vpop.f32.mrb[34].mxu1 }
 0x878   : > { %v2217_v25 = vmax.f32 %v2212_v22, 0.0  ;;  %v2795_v26 = vpop.f32.mrb[35].mxu1 }
 0x87a   : > { %v2218_v27 = vpack.c.bf16 %v2217_v25, %v2217_v25 }
 0x87c   : > { %2805 = vmatmul.mubr.msk.bf16.vlgmr.msra.gmra.mrb[28].mxu0 %vm2258_vm6, %v2218_v27 }
 0x94f   : > { %v2296_v30 = vpop.f32.mrb[28].mxu0 }
 0x950   : > { %v2297_v28 = vadd.f32 %v2635_v0, %v2296_v30  ;;  %v2806_v29 = vpop.f32.mrb[29].mxu0 }
 0x951   : > { %v2299_v31 = vpop.f32.mrb[30].mxu0 }
 0x952   : > { %v2807_v32 = vpop.f32.mrb[31].mxu0  ;;  %v2302_v33 = vadd.f32 %v2297_v28, %v2149_v16 }
 0x954   : > { %v2303_v35 = vsel %vm837_vm1, %v2302_v33, 0.0 }
 0x955   : > { %2304 = vadd.xlane.f32.xlu0 %v2303_v35 }
 0x9e2   : > { %v2305_v36 = vpop.xlane.xlu0 %2304 }
 0x9e3   : > { %v2306_v37 = vmul.f32 0.03125, %v2305_v36 }
 0x9e5   : > { %v2307_v38 = vsub.f32 %v2302_v33, %v2306_v37 }
 0x9e7   : > { %v2308_v39 = vmul.f32 %v2307_v38, %v2307_v38 }
 0x9e9   : > { %v2309_v40 = vsel %vm837_vm1, %v2308_v39, 0.0 }
 0x9ea   : > { %2310 = vadd.xlane.f32.xlu1 %v2309_v40 }
 0x9eb   : > { %3229 = shalt.err (!%p3226_p3)
}
 0x9ec   : > { %s3230_s16 = scalar_lea.hbm %s4047_s6, 256  ;;  %s3234_s9 = scalar_lea.hbm %s4219_s27, 512 }
 0x9ed   : > { %p3231_p12 = scmp.ne.s32.totalorder %s4047_s6, %s3230_s16  ;;  %p3235_p11 = scmp.lt.u32.totalorder %s4047_s6, %s4219_s27 }
 0x9ee   : > { %p3236_p7 = scmp.lt.u32.totalorder %s3234_s9, %s3230_s16  ;;  %p3238_p5 = scmp.lt.u32.totalorder %s3230_s16, %s4047_s6 }
 0x9ef   : > { %p3232_p13 = pnand %p3231_p12, %p4220_p10 }
 0x9f0   : > { %p3237_p6 = por %p3236_p7, %p3235_p11 }
 0x9f1   : > { %p3233_p0 = pneg %p3232_p13 }
 0x9f2   : > { %p3239_p1 = por %p3238_p5, %p3237_p6 }
 0x9f4   : > { %p3240_p2 = pnand %p3239_p1, %p3233_p0 }
 0x9f6   : > { %3243 = shalt.err (!%p3240_p2)
}
 0x9f7   : > { %s3367_s26 = smov 64   ;;  %s3368_s0 = smov 4  }
 0x9f8   : > { %s4221_s15 = scalar_lea.sflag [#allocation20], %s3755_s13  ;;  %s2594_s20 = sshll.u32 %s3755_s13, 3 }
 0x9f9   : > { %2839 = dma.vmem_to_hbm [thread:$0]  (%p4220_p10), %s4049_s29, 256, %s4047_s6, %s4221_s15, %s3367_s26, %s3367_s26, %s3368_s0  }
 0x9fa   : > { %s4222_s9 = sld [smem:[#allocation43_spill]]  ;;  %s4223_s7 = sld [smem:[#allocation44_spill]] }
 0x9fb   : > { %s2645_s8 = sshll.u32 %s3338_s24, 7  ;;  %s787_s10 = scalar_lea.vmem [#allocation18], %s2594_s20 }
 0x9fc   : > { %s2353_s29 = sshll.u32 %s787_s10, 4  ;;  %s4224_s0 = sld [smem:[#allocation45_spill]]  ;;  %s4088_s29 = int_to_ptr.vmem [resolvable:$true] %s2353_s29 }
 0x9fd   : > { %s2334_s16 = scalar_lea.sflag [#allocation6], %s3755_s13  ;;  %s3244_s4 = scalar_lea.vmem %s4088_s29, 128 }
 0x9fe   : > { %p3245_p4 = scmp.ne.s32.totalorder %s4088_s29, %s3244_s4 }
 0xa00   : > { %v2641_v45 = vld [vmem:[%s4222_s9] ss:$0 sm:$0xff]  ;;  %p3246_p9 = pnand %p3245_p4, %p4220_p10 }
 0xa01   : > { %v2642_v41 = vld [vmem:[%s4223_s7] ss:$0 sm:$0xff]  ;;  %s3369_s7 = smov [#allocation18]  }
 0xa02   : > { %s4086_s15 = scalar_lea.hbm %s4224_s0, %s2645_s8  ;;  %p3247_p8 = pneg %p3246_p9 }
 0xa03   : > { %s3248_s24 = sshll.u32 %s3369_s7, 4  ;;  %s3249_s24 = int_to_ptr.vmem [resolvable:$false] %s3248_s24 }
 0xa04   : > { %s3250_s20 = scalar_lea.vmem %s3249_s24, 256  ;;  %p3251_p3 = scmp.lt.s32.totalorder %s4088_s29, %s3249_s24 }
 0xa05   : > { %p3252_p12 = scmp.lt.s32.totalorder %s3250_s20, %s3244_s4 }
 0xa07   : > { %p3253_p13 = por %p3252_p12, %p3251_p3 }
 0xa09   : > { %p3254_p0 = pnand %p3253_p13, %p3247_p8 }
 0xa77   : > { %v2311_v34 = vpop.xlane.xlu1 %2310 }
 0xa78   : > { %v2312_v42 = vmul.f32 0.03125, %v2311_v34 }
 0xa7a   : > { %v2313_v43 = vadd.f32 1e-05, %v2312_v42 }
 0xa7c   : > { %2988 = vrsqrt.f32 %v2313_v43 }
 0xa86   : > { %v2989_v44 = vpop.eup %2988 }
 0xa87   : > { %v2315_v46 = vmul.f32 %v2989_v44, %v2307_v38 }
 0xa89   : > { %v2323_v47 = vmul.f32 %v2641_v45, %v2315_v46 }
 0xa8b   : > { %v2331_v48 = vadd.f32 %v2642_v41, %v2323_v47 }
 0xa8d   : > { %2332 = vst.msk [vmem:[%s787_s10] sm:$0xff] %vm837_vm1, %v2331_v48 }
 0xa8e   : > { %3257 = shalt.err (!%p3254_p0)
}
 0xa8f   : > { %s3258_s8 = scalar_lea.hbm %s4086_s15, 128  ;;  %s3262_s5 = scalar_lea.hbm %s4224_s0, 256 }
 0xa90   : > { %p3259_p11 = scmp.ne.s32.totalorder %s4086_s15, %s3258_s8  ;;  %p3263_p5 = scmp.lt.u32.totalorder %s4086_s15, %s4224_s0 }
 0xa91   : > { %p3264_p1 = scmp.lt.u32.totalorder %s3262_s5, %s3258_s8  ;;  %p3266_p4 = scmp.lt.u32.totalorder %s3258_s8, %s4086_s15 }
 0xa92   : > { %p3260_p7 = pnand %p3259_p11, %p4220_p10 }
 0xa93   : > { %p3265_p2 = por %p3264_p1, %p3263_p5 }
 0xa94   : > { %p3261_p6 = pneg %p3260_p7 }
 0xa95   : > { %p3267_p9 = por %p3266_p4, %p3265_p2 }
 0xa97   : > { %p3268_p8 = pnand %p3267_p9, %p3261_p6 }
 0xa99   : > { %3271 = shalt.err (!%p3268_p8)
}
 0xa9a   : > { %2838 = dma.vmem_to_hbm [thread:$0]  (%p4220_p10), %s4088_s29, 128, %s4086_s15, %s2334_s16  }
 0xa9b PF: > { %s2382_s6 = sand.u32 1, %s3326_s1   ;;  %p4225_p3 = scmp.ne.s32.totalorder %s4204_s17, 0 }
 0xa9c   : > { %p4226_p12 = scmp.ge.s32.totalorder %s3346_s25, 2  ;;  %s2383_s26 = scalar_lea.sflag [#allocation6], %s2382_s6 }
 0xa9e   : > { %p2869_p13 = pnand %p4226_p12, %p4225_p3 }
 0xaa0   : > { %3317 = dma.done.wait (!%p2869_p13), %s2383_s26, 128  }
 0xaa1   : > { %3319 = vsyncadd (!%p2869_p13), %s2383_s26, 4294967168  ;;  %s2392_s4 = scalar_lea.sflag [#allocation20], %s2382_s6 }
 0xaa2   : > { %3321 = dma.done.wait (!%p2869_p13), %s2392_s4, 256  }
 0xaa3   : > { %3323 = vsyncadd (!%p2869_p13), %s2392_s4, 4294967040  ;;  %s44_s25 = sadd.s32 1, %s3346_s25   ;;  %s4227_s1 = smov %s3330_s22 }
 0xaa4   : > { %p41_p0 = scmp.ge.s32.totalorder %s44_s25, 4   ;;  %s4228_s22 = smov %s3334_s23 }
 0xaa5   : > { %s4229_s23 = smov %s3706_s21  ;;  %s4230_s24 = smov %s3342_s2 }
 0xaa6   : > { %s4231_s2 = smov %s4233_s19  ;;  %43 = sbr.rel (!%p41_p0) target bundleno = 32 (0x20), region = 196 }
 0xaad   :  { %2397 = vsyncpa [#allocation5], 1 }
 0xaae   :  { %2399 = vsyncpa [#allocation5 + $0x1], 1 }
 0xaaf   :  { %2400 = vsyncpa [#allocation8], 1 }
 0xab0   :  { %2401 = vsyncpa [#allocation11], 1 }
 0xab1   :  { %2402 = vsyncpa [#allocation14], 1 }
 0xab2   :  { %2403 = vsyncpa [#allocation17], 1 }
 0xab3   :  { %2404 = vsyncpa [#allocation6], 1 }
 0xab4   :  { %2406 = vsyncpa [#allocation6 + $0x1], 1 }
 0xab5   :  { %2407 = vsyncpa [#allocation20], 1 }
 0xab6   :  { %2409 = vsyncpa [#allocation20 + $0x1], 1 }

</bundles_post_ra>
